<compile_context>
chip_gen: v7x
topology: tpu7x:2x2x1
jax: 0.10.0
libtpu: 0.0.40
codegen_flags: <defaults>
</compile_context>

<pallas_src>
import functools
import math

import jax
import jax.numpy as jnp
from jax.experimental import pallas as pl
from jax.experimental.pallas import tpu as pltpu

BN_EPS = 1e-5
BN_SCALE = 1.0 / math.sqrt(1.0 + BN_EPS)   # eval BatchNorm1d at default init == pure scale
LEAKY_SLOPE = 0.01                         # torch.nn.LeakyReLU default slope


# ----------------------------------------------------------------------------- in-kernel helpers
def _act(name, x):
    if name is None:
        return x
    if name == "relu":
        return jnp.maximum(x, 0.0)
    if name == "leaky_relu":
        return jnp.where(x > 0, x, LEAKY_SLOPE * x)
    raise ValueError(f"unsupported activation {name}")


class _MaskCache:
    """Per-trace cache of lane iotas / block-boundary masks (JAX does not CSE iota/broadcast)."""

    def __init__(self):
        self._iota = {}
        self._mask = {}

    def _lane_mod(self, rows, lanes, lb):
        key = (rows, lanes, lb)
        if key not in self._iota:
            lane = jax.lax.broadcasted_iota(jnp.int32, (rows, lanes), 1)
            self._iota[key] = lane % lb
        return self._iota[key]

    def valid(self, rows, lanes, lb, shift):
        """Lanes whose shift-by-`shift` source stays inside its own length-`lb` batch block."""
        key = (rows, lanes, lb, shift)
        if key not in self._mask:
            lane = self._lane_mod(rows, lanes, lb)
            self._mask[key] = (lane >= shift) if shift > 0 else (lane < lb + shift)
        return self._mask[key]


def _shift_lanes(x, s, fill):
    """result[:, j] = x[:, j - s]; global edges filled with `fill` (s != 0, |s| < lanes).

    Built with static lane slices + concat (portable lowering on Mosaic and in interpret
    mode).  TODO(synk): could use pltpu.roll(axis=1) + mask where that primitive is available."""
    c, n = x.shape
    pad = jnp.full((c, abs(s)), fill, x.dtype)
    if s > 0:
        return jnp.concatenate([pad, jax.lax.slice(x, (0, 0), (c, n - s))], axis=1)
    return jnp.concatenate([jax.lax.slice(x, (0, -s), (c, n)), pad], axis=1)


def _halo(h, s, lb, fill, masks):
    """Shift within each length-`lb` batch block; out-of-block lanes become `fill`."""
    x = _shift_lanes(h, s, fill)
    if lb == h.shape[1]:                          # one batch element: edge fill is enough
        return x
    return jnp.where(masks.valid(h.shape[0], h.shape[1], lb, s), x, fill)


def _conv_same(h, w_ref, b_ref, K, lb, masks):
    """'same' 1D conv over every batch block as ONE bf16 MXU matmul.

    W is (C_out, K*C_in) bf16, column index = k*C_in + c_in; halos are lane shifts with
    cached masks so side-by-side batch blocks never leak into each other."""
    pad = (K - 1) // 2
    pieces = []
    for k in range(K):
        s = pad - k
        pieces.append(h if s == 0 else _halo(h, s, lb, 0.0, masks))
    stacked = jnp.concatenate(pieces, axis=0).astype(jnp.bfloat16)   # (K*C_in, lanes)
    out = jnp.dot(w_ref[...], stacked, preferred_element_type=jnp.float32)
    return out + b_ref[...]                                          # (C_out, 1) broadcast


def _maxpool_right(h, ds, lb, masks):
    """MaxPool1d(kernel=ds, stride=1) with right -inf padding, applied per batch block."""
    m = h
    for d in range(1, ds):
        m = jnp.maximum(m, _halo(h, -d, lb, -jnp.inf, masks))
    return m


# ----------------------------------------------------------------------------- fused kernel
def _fused_forward_kernel(x_ref, *refs, n_batch, L, Lo, stem_k, k, ds,
                          act_name, preact, blocks, trace_stages):
    """Entire network for `n_batch` batch elements; channels on sublanes, batch along lanes."""
    o_ref = refs[-1]
    wrefs = refs[:-1]
    masks = _MaskCache()

    # assemble the per-step activation slab (C_in_pad, B*L): B lane-aligned slab loads + concat
    if n_batch == 1:
        x = x_ref[0].astype(jnp.float32)
    else:
        x = jnp.concatenate([x_ref[b] for b in range(n_batch)], axis=-1).astype(jnp.float32)

    # --- stem: conv only (no norm, no activation) ---
    h = _conv_same(x, wrefs[0], wrefs[1], stem_k, L, masks)

    # --- anti-aliased max downsampling (+ folded eval-BatchNorm scale) ---
    # maxpool via lane shifts; blur+subsample+BN is a host-precomputed resident (L, Lo) matrix,
    # applied per batch block with static 128-aligned lane slices.
    # TODO(synk): a strided-lane subsample would remove this matmul's MXU cost, but strided
    #             lane reads have no portable lowering; keep the fused matmul.
    m = _maxpool_right(h, ds, L, masks)
    s_mat = wrefs[2][...]                                            # (L, Lo) bf16
    pieces = [jnp.dot(m[:, b * L:(b + 1) * L].astype(jnp.bfloat16), s_mat,
                      preferred_element_type=jnp.float32) for b in range(n_batch)]
    h = pieces[0] if n_batch == 1 else jnp.concatenate(pieces, axis=-1)   # (C0, B*Lo)

    # --- residual backbone; per-stage per-batch means fused into the epilogue ---
    inv_lo = 1.0 / Lo
    n_stages = len(blocks)
    ri = 3
    out_row = 0
    col_b = None
    for si, n_blocks in enumerate(blocks):
        for _ in range(n_blocks):
            w1, b1, w2, b2 = wrefs[ri], wrefs[ri + 1], wrefs[ri + 2], wrefs[ri + 3]
            ri += 4
            if preact:
                # TODO(synk): bb.ResNet pre-activation wiring is guessed; eval-BatchNorm scale is
                # folded into W host-side (relu/leaky_relu are positively homogeneous), so no
                # in-kernel BN multiply remains.
                y = _conv_same(_act(act_name, h), w1, b1, k, Lo, masks)
                h = _conv_same(_act(act_name, y), w2, b2, k, Lo, masks) + h
            else:
                # eval BatchNorm scale folded into w/b on the host
                y = _act(act_name, _conv_same(h, w1, b1, k, Lo, masks))
                h = _act(act_name, _conv_same(y, w2, b2, k, Lo, masks) + h)
        if trace_stages or si == n_stages - 1:
            c_out = h.shape[0]
            if n_batch == 1:
                mean_cb = jnp.sum(h, axis=-1, keepdims=True) * inv_lo            # (C, 1)
            else:
                if col_b is None:
                    col_b = jax.lax.broadcasted_iota(jnp.int32, (c_out, n_batch), 1)
                mean_cb = jnp.zeros((c_out, n_batch), jnp.float32)
                for b in range(n_batch):
                    mb = jnp.sum(h[:, b * Lo:(b + 1) * Lo], axis=-1, keepdims=True) * inv_lo
                    mean_cb = jnp.where(col_b == b, mb, mean_cb)                  # (C, B)
            o_ref[0, out_row, :, :] = mean_cb.astype(o_ref.dtype)
            out_row += 1


# ----------------------------------------------------------------------------- parameter init
def init_params(key, cfg):
    """kaiming_normal(a=0.1, fan_out, leaky_relu) conv weights, zero biases (matches init_weights)."""
    gain = math.sqrt(2.0 / (1.0 + 0.1 ** 2))

    def conv(key, k, c_out, c_in):
        std = gain / math.sqrt(c_out * k)                   # fan_out = C_out * K
        w = std * jax.random.normal(key, (k, c_out, c_in), jnp.float32)   # (K, C_out, C_in)
        b = jnp.zeros((c_out, 1), jnp.float32)
        return w, b

    feats = cfg["features"]
    key, k_stem = jax.random.split(key)
    stem_w, stem_b = conv(k_stem, cfg["stem_kernel_size"], feats[0], cfg["in_features"])

    stages = []
    c_prev = feats[0]
    for si, n_blocks in enumerate(cfg["blocks"]):
        c = feats[si]
        stage = []
        for _ in range(n_blocks):
            key, k1, k2 = jax.random.split(key, 3)
            w1, b1 = conv(k1, cfg["kernel_size"], c, c_prev)
            w2, b2 = conv(k2, cfg["kernel_size"], c, c)
            stage.append((w1, b1, w2, b2))
            c_prev = c
        stages.append(stage)
    return {"stem_w": stem_w, "stem_b": stem_b, "stages": stages}


# ----------------------------------------------------------------------------- host-side prep
def _flatten_taps(w, c_in_pad=None, scale=1.0):
    """(K, C_out, C_in) -> bf16 (C_out, K*C_in[_pad]); column index = k*C_in + c_in."""
    k_, co, ci = w.shape
    if c_in_pad is not None and c_in_pad != ci:
        w = jnp.pad(w, ((0, 0), (0, 0), (0, c_in_pad - ci)))
        ci = c_in_pad
    w = jnp.transpose(w, (1, 0, 2)).reshape(co, k_ * ci)
    return (scale * w).astype(jnp.bfloat16)


def _downsample_matrix(L, ds):
    """(L, Lo) matrix: [1,2,1]/4 blur + subsample-by-ds + folded eval-BatchNorm scale (bf16)."""
    Lo = L // ds
    row = jnp.arange(L, dtype=jnp.int32)[:, None]
    col = jnp.arange(Lo, dtype=jnp.int32)[None, :]
    t = row - col * ds + 1                                   # blur tap index (valid: 0,1,2)
    s = (jnp.where(t == 0, 0.25, 0.0) + jnp.where(t == 1, 0.5, 0.0)
         + jnp.where(t == 2, 0.25, 0.0)) * BN_SCALE
    return s.astype(jnp.bfloat16)


def _pick_batch_block(n, cap=8):
    """Largest divisor of n (<= cap) that still leaves >= 2 grid steps (both v7x TensorCores)."""
    best = 1
    for b in range(1, min(n, cap) + 1):
        if n % b == 0 and n // b >= 2:
            best = b
    return best


# ----------------------------------------------------------------------------- forward wrapper
def local_activation_resnet_forward(x, params, cfg):
    N, c_in, L = x.shape
    ds = cfg["downsampling_factor"]
    assert ds >= 2 and L % ds == 0
    Lo = L // ds
    K = cfg["kernel_size"]
    Ks = cfg["stem_kernel_size"]
    preact = bool(cfg["preactivation"])
    act = cfg["activation"]
    blocks = tuple(cfg["blocks"])
    trace = bool(cfg["trace_stages"])
    if trace:
        assert len(set(cfg["features"])) == 1, "trace_stages stacking needs equal stage widths"

    B = _pick_batch_block(N)
    G = N // B

    # pad input channels to a sublane multiple once (tiny, one-time); padded channels are zero
    # and meet zero weight columns.
    c_in_pad = max(8, ((c_in + 7) // 8) * 8)
    x_in = jnp.pad(x, ((0, 0), (0, c_in_pad - c_in), (0, 0))) if c_in_pad != c_in else x

    inputs = [x_in,
              _flatten_taps(params["stem_w"], c_in_pad),     # stem: no norm -> no scale
              params["stem_b"].astype(jnp.float32),
              _downsample_matrix(L, ds)]
    in_specs = [pl.BlockSpec((B, c_in_pad, L), lambda g: (g, 0, 0))]
    in_specs += [pl.BlockSpec(a.shape, lambda g: (0, 0)) for a in inputs[1:]]

    c0 = params["stem_w"].shape[1]
    flops = 2 * c0 * (Ks * c_in_pad) * L + 2 * c0 * L * Lo
    c_prev = c0
    for stage in params["stages"]:
        for (w1, b1, w2, b2) in stage:
            c1, c2 = w1.shape[1], w2.shape[1]
            flops += 2 * c1 * (K * c_prev) * Lo + 2 * c2 * (K * c1) * Lo
            c_prev = c2
            # fold eval-mode BatchNorm1d (default init == pure 1/sqrt(1+eps) scale):
            #   post-activation: BN after conv  -> scale W and b
            #   pre-activation:  BN before conv -> scale W only (act positively homogeneous)
            layer = (_flatten_taps(w1, scale=BN_SCALE),
                     (b1 if preact else BN_SCALE * b1).astype(jnp.float32),
                     _flatten_taps(w2, scale=BN_SCALE),
                     (b2 if preact else BN_SCALE * b2).astype(jnp.float32))
            for a in layer:
                inputs.append(a)
                in_specs.append(pl.BlockSpec(a.shape, lambda g: (0, 0)))

    s_out = len(blocks) if trace else 1
    flops = int(flops * N)
    bytes_accessed = int(sum(int(a.size) * a.dtype.itemsize for a in inputs)
                         + N * s_out * c_prev * x.dtype.itemsize)

    kern = functools.partial(
        _fused_forward_kernel, n_batch=B, L=L, Lo=Lo, stem_k=Ks, k=K, ds=ds,
        act_name=act, preact=preact, blocks=blocks, trace_stages=trace)

    # one pallas_call for the whole network; grid over batch blocks only ("parallel" keeps both
    # v7x TensorCores busy), all weights/the blur matrix resident via constant index maps.
    out = pl.pallas_call(
        kern,
        out_shape=jax.ShapeDtypeStruct((G, s_out, c_prev, B), x.dtype),
        grid=(G,),
        in_specs=in_specs,
        out_specs=pl.BlockSpec((1, s_out, c_prev, B), lambda g: (g, 0, 0, 0)),
        compiler_params=pltpu.CompilerParams(dimension_semantics=("parallel",)),
        cost_estimate=pl.CostEstimate(flops=flops, transcendentals=0,
                                      bytes_accessed=bytes_accessed),
    )(*inputs)

    # kernel writes (G, S, C, B); module returns torch.mean(stacked, dim=3) == (N, S, C)
    return jnp.transpose(out, (0, 3, 1, 2)).reshape(N, s_out, c_prev)


# ----------------------------------------------------------------------------- main
if __name__ == "__main__":
    cfg = dict(
        in_features=4,
        kernel_size=3,
        blocks=(2, 2),
        features=(32, 32),
        stem_kernel_size=7,
        activation="relu",
        normalization="batchnorm",
        downsampling_factor=4,
        preactivation=False,
        trace_stages=True,
    )

    key = jax.random.PRNGKey(0)
    key, kx = jax.random.split(key)
    x = jax.random.normal(kx, (4, cfg["in_features"], 512), jnp.float32)  # (N, C, L)

    params = init_params(key, cfg)
    fwd = jax.jit(functools.partial(local_activation_resnet_forward, cfg=cfg))
    out = jax.block_until_ready(fwd(x, params))

    assert out.shape == (4, len(cfg["blocks"]), cfg["features"][-1]), out.shape
    assert bool(jnp.all(jnp.isfinite(out)))
    print("KERNEL_OK")
</pallas_src>

<mosaic_0001>
module attributes {stable_mosaic.version = 11 : i64} {
  func.func @_fused_forward_kernel(%arg0: i32, %arg1: memref<2x8x512xf32, #tpu.memory_space<vmem>>, %arg2: memref<32x56xbf16, #tpu.memory_space<vmem>>, %arg3: memref<32x1xf32, #tpu.memory_space<vmem>>, %arg4: memref<512x128xbf16, #tpu.memory_space<vmem>>, %arg5: memref<32x96xbf16, #tpu.memory_space<vmem>>, %arg6: memref<32x1xf32, #tpu.memory_space<vmem>>, %arg7: memref<32x96xbf16, #tpu.memory_space<vmem>>, %arg8: memref<32x1xf32, #tpu.memory_space<vmem>>, %arg9: memref<32x96xbf16, #tpu.memory_space<vmem>>, %arg10: memref<32x1xf32, #tpu.memory_space<vmem>>, %arg11: memref<32x96xbf16, #tpu.memory_space<vmem>>, %arg12: memref<32x1xf32, #tpu.memory_space<vmem>>, %arg13: memref<32x96xbf16, #tpu.memory_space<vmem>>, %arg14: memref<32x1xf32, #tpu.memory_space<vmem>>, %arg15: memref<32x96xbf16, #tpu.memory_space<vmem>>, %arg16: memref<32x1xf32, #tpu.memory_space<vmem>>, %arg17: memref<32x96xbf16, #tpu.memory_space<vmem>>, %arg18: memref<32x1xf32, #tpu.memory_space<vmem>>, %arg19: memref<32x96xbf16, #tpu.memory_space<vmem>>, %arg20: memref<32x1xf32, #tpu.memory_space<vmem>>, %arg21: memref<1x2x32x2xf32, #tpu.memory_space<vmem>>) attributes {dimension_semantics = [#tpu.dimension_semantics<parallel>], iteration_bounds = array<i64: 2>, scalar_prefetch = 0 : i64, scratch_operands = 0 : i64, tpu.core_type = #tpu.core_type<tc>, window_params = [{transform_indices = @transform_0, window_bounds = array<i64: 2, 8, 512>}, {pipeline_mode = #tpu.pipeline_mode<synchronous>, transform_indices = @transform_1, window_bounds = array<i64: 32, 56>}, {pipeline_mode = #tpu.pipeline_mode<synchronous>, transform_indices = @transform_2, window_bounds = array<i64: 32, 1>}, {pipeline_mode = #tpu.pipeline_mode<synchronous>, transform_indices = @transform_3, window_bounds = array<i64: 512, 128>}, {pipeline_mode = #tpu.pipeline_mode<synchronous>, transform_indices = @transform_4, window_bounds = array<i64: 32, 96>}, {pipeline_mode = #tpu.pipeline_mode<synchronous>, transform_indices = @transform_5, window_bounds = array<i64: 32, 1>}, {pipeline_mode = #tpu.pipeline_mode<synchronous>, transform_indices = @transform_6, window_bounds = array<i64: 32, 96>}, {pipeline_mode = #tpu.pipeline_mode<synchronous>, transform_indices = @transform_7, window_bounds = array<i64: 32, 1>}, {pipeline_mode = #tpu.pipeline_mode<synchronous>, transform_indices = @transform_8, window_bounds = array<i64: 32, 96>}, {pipeline_mode = #tpu.pipeline_mode<synchronous>, transform_indices = @transform_9, window_bounds = array<i64: 32, 1>}, {pipeline_mode = #tpu.pipeline_mode<synchronous>, transform_indices = @transform_10, window_bounds = array<i64: 32, 96>}, {pipeline_mode = #tpu.pipeline_mode<synchronous>, transform_indices = @transform_11, window_bounds = array<i64: 32, 1>}, {pipeline_mode = #tpu.pipeline_mode<synchronous>, transform_indices = @transform_12, window_bounds = array<i64: 32, 96>}, {pipeline_mode = #tpu.pipeline_mode<synchronous>, transform_indices = @transform_13, window_bounds = array<i64: 32, 1>}, {pipeline_mode = #tpu.pipeline_mode<synchronous>, transform_indices = @transform_14, window_bounds = array<i64: 32, 96>}, {pipeline_mode = #tpu.pipeline_mode<synchronous>, transform_indices = @transform_15, window_bounds = array<i64: 32, 1>}, {pipeline_mode = #tpu.pipeline_mode<synchronous>, transform_indices = @transform_16, window_bounds = array<i64: 32, 96>}, {pipeline_mode = #tpu.pipeline_mode<synchronous>, transform_indices = @transform_17, window_bounds = array<i64: 32, 1>}, {pipeline_mode = #tpu.pipeline_mode<synchronous>, transform_indices = @transform_18, window_bounds = array<i64: 32, 96>}, {pipeline_mode = #tpu.pipeline_mode<synchronous>, transform_indices = @transform_19, window_bounds = array<i64: 32, 1>}, {transform_indices = @transform_20, window_bounds = array<i64: 1, 2, 32, 2>}]} {
    %c0 = arith.constant 0 : index
    %c0_0 = arith.constant 0 : index
    %c0_1 = arith.constant 0 : index
    %0 = vector.load %arg1[%c0, %c0_0, %c0_1] : memref<2x8x512xf32, #tpu.memory_space<vmem>>, vector<1x8x512xf32>
    %1 = vector.shape_cast %0 : vector<1x8x512xf32> to vector<8x512xf32>
    %c1 = arith.constant 1 : index
    %c0_2 = arith.constant 0 : index
    %c0_3 = arith.constant 0 : index
    %2 = vector.load %arg1[%c1, %c0_2, %c0_3] : memref<2x8x512xf32, #tpu.memory_space<vmem>>, vector<1x8x512xf32>
    %3 = vector.shape_cast %2 : vector<1x8x512xf32> to vector<8x512xf32>
    %4 = tpu.concatenate %1, %3 in 1 : vector<8x512xf32>, vector<8x512xf32> -> vector<8x1024xf32>
    %cst = arith.constant 0.000000e+00 : f32
    %5 = vector.broadcast %cst : f32 to vector<8x3xf32>
    %6 = vector.extract_strided_slice %4 {offsets = [0, 0], sizes = [8, 1021], strides = [1, 1]} : vector<8x1024xf32> to vector<8x1021xf32>
    %7 = tpu.concatenate %5, %6 in 1 : vector<8x3xf32>, vector<8x1021xf32> -> vector<8x1024xf32>
    %8 = tpu.iota {dimensions = array<i32: 1>} : vector<8x1024xi32>
    %c512_i32 = arith.constant 512 : i32
    %c0_i32 = arith.constant 0 : i32
    %9 = arith.cmpi eq, %c512_i32, %c0_i32 : i32
    %c1_i32 = arith.constant 1 : i32
    %10 = arith.select %9, %c1_i32, %c512_i32 : i32
    %11 = vector.broadcast %10 : i32 to vector<8x1024xi32>
    %12 = arith.remsi %8, %11 : vector<8x1024xi32>
    %c0_i32_4 = arith.constant 0 : i32
    %13 = vector.broadcast %c0_i32_4 : i32 to vector<8x1024xi32>
    %14 = arith.cmpi ne, %12, %13 : vector<8x1024xi32>
    %c0_i32_5 = arith.constant 0 : i32
    %15 = vector.broadcast %c0_i32_5 : i32 to vector<8x1024xi32>
    %16 = arith.cmpi slt, %12, %15 : vector<8x1024xi32>
    %c0_i32_6 = arith.constant 0 : i32
    %17 = arith.cmpi slt, %10, %c0_i32_6 : i32
    %18 = vector.broadcast %17 : i1 to vector<8x1024xi1>
    %19 = vector.broadcast %18 : vector<8x1024xi1> to vector<8x1024xi1>
    %20 = arith.xori %16, %19 : vector<8x1024xi1>
    %21 = arith.andi %20, %14 : vector<8x1024xi1>
    %22 = vector.broadcast %10 : i32 to vector<8x1024xi32>
    %23 = arith.addi %12, %22 : vector<8x1024xi32>
    %24 = arith.select %21, %23, %12 : vector<8x1024xi1>, vector<8x1024xi32>
    %c3_i32 = arith.constant 3 : i32
    %25 = vector.broadcast %c3_i32 : i32 to vector<8x1024xi32>
    %26 = arith.cmpi sge, %24, %25 : vector<8x1024xi32>
    %cst_7 = arith.constant 0.000000e+00 : f32
    %27 = vector.broadcast %cst_7 : f32 to vector<8x1024xf32>
    %28 = arith.select %26, %7, %27 : vector<8x1024xi1>, vector<8x1024xf32>
    %cst_8 = arith.constant 0.000000e+00 : f32
    %29 = vector.broadcast %cst_8 : f32 to vector<8x2xf32>
    %30 = vector.extract_strided_slice %4 {offsets = [0, 0], sizes = [8, 1022], strides = [1, 1]} : vector<8x1024xf32> to vector<8x1022xf32>
    %31 = tpu.concatenate %29, %30 in 1 : vector<8x2xf32>, vector<8x1022xf32> -> vector<8x1024xf32>
    %c2_i32 = arith.constant 2 : i32
    %32 = vector.broadcast %c2_i32 : i32 to vector<8x1024xi32>
    %33 = arith.cmpi sge, %24, %32 : vector<8x1024xi32>
    %cst_9 = arith.constant 0.000000e+00 : f32
    %34 = vector.broadcast %cst_9 : f32 to vector<8x1024xf32>
    %35 = arith.select %33, %31, %34 : vector<8x1024xi1>, vector<8x1024xf32>
    %cst_10 = arith.constant 0.000000e+00 : f32
    %36 = vector.broadcast %cst_10 : f32 to vector<8x1xf32>
    %37 = vector.extract_strided_slice %4 {offsets = [0, 0], sizes = [8, 1023], strides = [1, 1]} : vector<8x1024xf32> to vector<8x1023xf32>
    %38 = tpu.concatenate %36, %37 in 1 : vector<8x1xf32>, vector<8x1023xf32> -> vector<8x1024xf32>
    %c1_i32_11 = arith.constant 1 : i32
    %39 = vector.broadcast %c1_i32_11 : i32 to vector<8x1024xi32>
    %40 = arith.cmpi sge, %24, %39 : vector<8x1024xi32>
    %cst_12 = arith.constant 0.000000e+00 : f32
    %41 = vector.broadcast %cst_12 : f32 to vector<8x1024xf32>
    %42 = arith.select %40, %38, %41 : vector<8x1024xi1>, vector<8x1024xf32>
    %cst_13 = arith.constant 0.000000e+00 : f32
    %43 = vector.broadcast %cst_13 : f32 to vector<8x1xf32>
    %44 = vector.extract_strided_slice %4 {offsets = [0, 1], sizes = [8, 1023], strides = [1, 1]} : vector<8x1024xf32> to vector<8x1023xf32>
    %45 = tpu.concatenate %44, %43 in 1 : vector<8x1023xf32>, vector<8x1xf32> -> vector<8x1024xf32>
    %c511_i32 = arith.constant 511 : i32
    %46 = vector.broadcast %c511_i32 : i32 to vector<8x1024xi32>
    %47 = arith.cmpi slt, %24, %46 : vector<8x1024xi32>
    %cst_14 = arith.constant 0.000000e+00 : f32
    %48 = vector.broadcast %cst_14 : f32 to vector<8x1024xf32>
    %49 = arith.select %47, %45, %48 : vector<8x1024xi1>, vector<8x1024xf32>
    %cst_15 = arith.constant 0.000000e+00 : f32
    %50 = vector.broadcast %cst_15 : f32 to vector<8x2xf32>
    %51 = vector.extract_strided_slice %4 {offsets = [0, 2], sizes = [8, 1022], strides = [1, 1]} : vector<8x1024xf32> to vector<8x1022xf32>
    %52 = tpu.concatenate %51, %50 in 1 : vector<8x1022xf32>, vector<8x2xf32> -> vector<8x1024xf32>
    %c510_i32 = arith.constant 510 : i32
    %53 = vector.broadcast %c510_i32 : i32 to vector<8x1024xi32>
    %54 = arith.cmpi slt, %24, %53 : vector<8x1024xi32>
    %cst_16 = arith.constant 0.000000e+00 : f32
    %55 = vector.broadcast %cst_16 : f32 to vector<8x1024xf32>
    %56 = arith.select %54, %52, %55 : vector<8x1024xi1>, vector<8x1024xf32>
    %cst_17 = arith.constant 0.000000e+00 : f32
    %57 = vector.broadcast %cst_17 : f32 to vector<8x3xf32>
    %58 = vector.extract_strided_slice %4 {offsets = [0, 3], sizes = [8, 1021], strides = [1, 1]} : vector<8x1024xf32> to vector<8x1021xf32>
    %59 = tpu.concatenate %58, %57 in 1 : vector<8x1021xf32>, vector<8x3xf32> -> vector<8x1024xf32>
    %c509_i32 = arith.constant 509 : i32
    %60 = vector.broadcast %c509_i32 : i32 to vector<8x1024xi32>
    %61 = arith.cmpi slt, %24, %60 : vector<8x1024xi32>
    %cst_18 = arith.constant 0.000000e+00 : f32
    %62 = vector.broadcast %cst_18 : f32 to vector<8x1024xf32>
    %63 = arith.select %61, %59, %62 : vector<8x1024xi1>, vector<8x1024xf32>
    %64 = tpu.concatenate %28, %35, %42, %4, %49, %56, %63 in 0 : vector<8x1024xf32>, vector<8x1024xf32>, vector<8x1024xf32>, vector<8x1024xf32>, vector<8x1024xf32>, vector<8x1024xf32>, vector<8x1024xf32> -> vector<56x1024xf32>
    %65 = arith.truncf %64 : vector<56x1024xf32> to vector<56x1024xbf16>
    %c0_19 = arith.constant 0 : index
    %c0_20 = arith.constant 0 : index
    %66 = vector.load %arg2[%c0_19, %c0_20] : memref<32x56xbf16, #tpu.memory_space<vmem>>, vector<32x56xbf16>
    %cst_21 = arith.constant dense<0.000000e+00> : vector<32x1024xf32>
    %67 = tpu.matmul %66, %65, %cst_21 {dimension_numbers = #tpu.dot_dimension_numbers<[1], [0], [0], [1], [0, 0, 1, 1], [], []>} : vector<32x56xbf16>, vector<56x1024xbf16>, vector<32x1024xf32> -> vector<32x1024xf32>
    %c0_22 = arith.constant 0 : index
    %c0_23 = arith.constant 0 : index
    %68 = vector.load %arg3[%c0_22, %c0_23] : memref<32x1xf32, #tpu.memory_space<vmem>>, vector<32x1xf32>
    %69 = vector.broadcast %68 : vector<32x1xf32> to vector<32x1024xf32>
    %70 = arith.addf %67, %69 : vector<32x1024xf32>
    %cst_24 = arith.constant 0xFF800000 : f32
    %71 = vector.broadcast %cst_24 : f32 to vector<32x1xf32>
    %72 = vector.extract_strided_slice %70 {offsets = [0, 1], sizes = [32, 1023], strides = [1, 1]} : vector<32x1024xf32> to vector<32x1023xf32>
    %73 = tpu.concatenate %72, %71 in 1 : vector<32x1023xf32>, vector<32x1xf32> -> vector<32x1024xf32>
    %74 = tpu.iota {dimensions = array<i32: 1>} : vector<32x1024xi32>
    %c512_i32_25 = arith.constant 512 : i32
    %c0_i32_26 = arith.constant 0 : i32
    %75 = arith.cmpi eq, %c512_i32_25, %c0_i32_26 : i32
    %c1_i32_27 = arith.constant 1 : i32
    %76 = arith.select %75, %c1_i32_27, %c512_i32_25 : i32
    %77 = vector.broadcast %76 : i32 to vector<32x1024xi32>
    %78 = arith.remsi %74, %77 : vector<32x1024xi32>
    %c0_i32_28 = arith.constant 0 : i32
    %79 = vector.broadcast %c0_i32_28 : i32 to vector<32x1024xi32>
    %80 = arith.cmpi ne, %78, %79 : vector<32x1024xi32>
    %c0_i32_29 = arith.constant 0 : i32
    %81 = vector.broadcast %c0_i32_29 : i32 to vector<32x1024xi32>
    %82 = arith.cmpi slt, %78, %81 : vector<32x1024xi32>
    %c0_i32_30 = arith.constant 0 : i32
    %83 = arith.cmpi slt, %76, %c0_i32_30 : i32
    %84 = vector.broadcast %83 : i1 to vector<32x1024xi1>
    %85 = vector.broadcast %84 : vector<32x1024xi1> to vector<32x1024xi1>
    %86 = arith.xori %82, %85 : vector<32x1024xi1>
    %87 = arith.andi %86, %80 : vector<32x1024xi1>
    %88 = vector.broadcast %76 : i32 to vector<32x1024xi32>
    %89 = arith.addi %78, %88 : vector<32x1024xi32>
    %90 = arith.select %87, %89, %78 : vector<32x1024xi1>, vector<32x1024xi32>
    %c511_i32_31 = arith.constant 511 : i32
    %91 = vector.broadcast %c511_i32_31 : i32 to vector<32x1024xi32>
    %92 = arith.cmpi slt, %90, %91 : vector<32x1024xi32>
    %cst_32 = arith.constant 0xFF800000 : f32
    %93 = vector.broadcast %cst_32 : f32 to vector<32x1024xf32>
    %94 = arith.select %92, %73, %93 : vector<32x1024xi1>, vector<32x1024xf32>
    %95 = arith.maximumf %70, %94 : vector<32x1024xf32>
    %cst_33 = arith.constant 0xFF800000 : f32
    %96 = vector.broadcast %cst_33 : f32 to vector<32x2xf32>
    %97 = vector.extract_strided_slice %70 {offsets = [0, 2], sizes = [32, 1022], strides = [1, 1]} : vector<32x1024xf32> to vector<32x1022xf32>
    %98 = tpu.concatenate %97, %96 in 1 : vector<32x1022xf32>, vector<32x2xf32> -> vector<32x1024xf32>
    %c510_i32_34 = arith.constant 510 : i32
    %99 = vector.broadcast %c510_i32_34 : i32 to vector<32x1024xi32>
    %100 = arith.cmpi slt, %90, %99 : vector<32x1024xi32>
    %cst_35 = arith.constant 0xFF800000 : f32
    %101 = vector.broadcast %cst_35 : f32 to vector<32x1024xf32>
    %102 = arith.select %100, %98, %101 : vector<32x1024xi1>, vector<32x1024xf32>
    %103 = arith.maximumf %95, %102 : vector<32x1024xf32>
    %cst_36 = arith.constant 0xFF800000 : f32
    %104 = vector.broadcast %cst_36 : f32 to vector<32x3xf32>
    %105 = vector.extract_strided_slice %70 {offsets = [0, 3], sizes = [32, 1021], strides = [1, 1]} : vector<32x1024xf32> to vector<32x1021xf32>
    %106 = tpu.concatenate %105, %104 in 1 : vector<32x1021xf32>, vector<32x3xf32> -> vector<32x1024xf32>
    %c509_i32_37 = arith.constant 509 : i32
    %107 = vector.broadcast %c509_i32_37 : i32 to vector<32x1024xi32>
    %108 = arith.cmpi slt, %90, %107 : vector<32x1024xi32>
    %cst_38 = arith.constant 0xFF800000 : f32
    %109 = vector.broadcast %cst_38 : f32 to vector<32x1024xf32>
    %110 = arith.select %108, %106, %109 : vector<32x1024xi1>, vector<32x1024xf32>
    %111 = arith.maximumf %103, %110 : vector<32x1024xf32>
    %c0_39 = arith.constant 0 : index
    %c0_40 = arith.constant 0 : index
    %112 = vector.load %arg4[%c0_39, %c0_40] : memref<512x128xbf16, #tpu.memory_space<vmem>>, vector<512x128xbf16>
    %113 = vector.extract_strided_slice %111 {offsets = [0, 0], sizes = [32, 512], strides = [1, 1]} : vector<32x1024xf32> to vector<32x512xf32>
    %114 = arith.truncf %113 : vector<32x512xf32> to vector<32x512xbf16>
    %cst_41 = arith.constant dense<0.000000e+00> : vector<32x128xf32>
    %115 = tpu.matmul %114, %112, %cst_41 {dimension_numbers = #tpu.dot_dimension_numbers<[1], [0], [0], [1], [0, 0, 1, 1], [], []>} : vector<32x512xbf16>, vector<512x128xbf16>, vector<32x128xf32> -> vector<32x128xf32>
    %116 = vector.extract_strided_slice %111 {offsets = [0, 512], sizes = [32, 512], strides = [1, 1]} : vector<32x1024xf32> to vector<32x512xf32>
    %117 = arith.truncf %116 : vector<32x512xf32> to vector<32x512xbf16>
    %cst_42 = arith.constant dense<0.000000e+00> : vector<32x128xf32>
    %118 = tpu.matmul %117, %112, %cst_42 {dimension_numbers = #tpu.dot_dimension_numbers<[1], [0], [0], [1], [0, 0, 1, 1], [], []>} : vector<32x512xbf16>, vector<512x128xbf16>, vector<32x128xf32> -> vector<32x128xf32>
    %119 = tpu.concatenate %115, %118 in 1 : vector<32x128xf32>, vector<32x128xf32> -> vector<32x256xf32>
    %cst_43 = arith.constant 0.000000e+00 : f32
    %120 = vector.broadcast %cst_43 : f32 to vector<32x1xf32>
    %121 = vector.extract_strided_slice %119 {offsets = [0, 0], sizes = [32, 255], strides = [1, 1]} : vector<32x256xf32> to vector<32x255xf32>
    %122 = tpu.concatenate %120, %121 in 1 : vector<32x1xf32>, vector<32x255xf32> -> vector<32x256xf32>
    %123 = tpu.iota {dimensions = array<i32: 1>} : vector<32x256xi32>
    %c128_i32 = arith.constant 128 : i32
    %c0_i32_44 = arith.constant 0 : i32
    %124 = arith.cmpi eq, %c128_i32, %c0_i32_44 : i32
    %c1_i32_45 = arith.constant 1 : i32
    %125 = arith.select %124, %c1_i32_45, %c128_i32 : i32
    %126 = vector.broadcast %125 : i32 to vector<32x256xi32>
    %127 = arith.remsi %123, %126 : vector<32x256xi32>
    %c0_i32_46 = arith.constant 0 : i32
    %128 = vector.broadcast %c0_i32_46 : i32 to vector<32x256xi32>
    %129 = arith.cmpi ne, %127, %128 : vector<32x256xi32>
    %c0_i32_47 = arith.constant 0 : i32
    %130 = vector.broadcast %c0_i32_47 : i32 to vector<32x256xi32>
    %131 = arith.cmpi slt, %127, %130 : vector<32x256xi32>
    %c0_i32_48 = arith.constant 0 : i32
    %132 = arith.cmpi slt, %125, %c0_i32_48 : i32
    %133 = vector.broadcast %132 : i1 to vector<32x256xi1>
    %134 = vector.broadcast %133 : vector<32x256xi1> to vector<32x256xi1>
    %135 = arith.xori %131, %134 : vector<32x256xi1>
    %136 = arith.andi %135, %129 : vector<32x256xi1>
    %137 = vector.broadcast %125 : i32 to vector<32x256xi32>
    %138 = arith.addi %127, %137 : vector<32x256xi32>
    %139 = arith.select %136, %138, %127 : vector<32x256xi1>, vector<32x256xi32>
    %c1_i32_49 = arith.constant 1 : i32
    %140 = vector.broadcast %c1_i32_49 : i32 to vector<32x256xi32>
    %141 = arith.cmpi sge, %139, %140 : vector<32x256xi32>
    %cst_50 = arith.constant 0.000000e+00 : f32
    %142 = vector.broadcast %cst_50 : f32 to vector<32x256xf32>
    %143 = arith.select %141, %122, %142 : vector<32x256xi1>, vector<32x256xf32>
    %cst_51 = arith.constant 0.000000e+00 : f32
    %144 = vector.broadcast %cst_51 : f32 to vector<32x1xf32>
    %145 = vector.extract_strided_slice %119 {offsets = [0, 1], sizes = [32, 255], strides = [1, 1]} : vector<32x256xf32> to vector<32x255xf32>
    %146 = tpu.concatenate %145, %144 in 1 : vector<32x255xf32>, vector<32x1xf32> -> vector<32x256xf32>
    %c127_i32 = arith.constant 127 : i32
    %147 = vector.broadcast %c127_i32 : i32 to vector<32x256xi32>
    %148 = arith.cmpi slt, %139, %147 : vector<32x256xi32>
    %cst_52 = arith.constant 0.000000e+00 : f32
    %149 = vector.broadcast %cst_52 : f32 to vector<32x256xf32>
    %150 = arith.select %148, %146, %149 : vector<32x256xi1>, vector<32x256xf32>
    %151 = tpu.concatenate %143, %119, %150 in 0 : vector<32x256xf32>, vector<32x256xf32>, vector<32x256xf32> -> vector<96x256xf32>
    %152 = arith.truncf %151 : vector<96x256xf32> to vector<96x256xbf16>
    %c0_53 = arith.constant 0 : index
    %c0_54 = arith.constant 0 : index
    %153 = vector.load %arg5[%c0_53, %c0_54] : memref<32x96xbf16, #tpu.memory_space<vmem>>, vector<32x96xbf16>
    %cst_55 = arith.constant dense<0.000000e+00> : vector<32x256xf32>
    %154 = tpu.matmul %153, %152, %cst_55 {dimension_numbers = #tpu.dot_dimension_numbers<[1], [0], [0], [1], [0, 0, 1, 1], [], []>} : vector<32x96xbf16>, vector<96x256xbf16>, vector<32x256xf32> -> vector<32x256xf32>
    %c0_56 = arith.constant 0 : index
    %c0_57 = arith.constant 0 : index
    %155 = vector.load %arg6[%c0_56, %c0_57] : memref<32x1xf32, #tpu.memory_space<vmem>>, vector<32x1xf32>
    %156 = vector.broadcast %155 : vector<32x1xf32> to vector<32x256xf32>
    %157 = arith.addf %154, %156 : vector<32x256xf32>
    %cst_58 = arith.constant 0.000000e+00 : f32
    %158 = vector.broadcast %cst_58 : f32 to vector<32x256xf32>
    %159 = arith.maximumf %157, %158 : vector<32x256xf32>
    %cst_59 = arith.constant 0.000000e+00 : f32
    %160 = vector.broadcast %cst_59 : f32 to vector<32x1xf32>
    %161 = vector.extract_strided_slice %159 {offsets = [0, 0], sizes = [32, 255], strides = [1, 1]} : vector<32x256xf32> to vector<32x255xf32>
    %162 = tpu.concatenate %160, %161 in 1 : vector<32x1xf32>, vector<32x255xf32> -> vector<32x256xf32>
    %cst_60 = arith.constant 0.000000e+00 : f32
    %163 = vector.broadcast %cst_60 : f32 to vector<32x256xf32>
    %164 = arith.select %141, %162, %163 : vector<32x256xi1>, vector<32x256xf32>
    %cst_61 = arith.constant 0.000000e+00 : f32
    %165 = vector.broadcast %cst_61 : f32 to vector<32x1xf32>
    %166 = vector.extract_strided_slice %159 {offsets = [0, 1], sizes = [32, 255], strides = [1, 1]} : vector<32x256xf32> to vector<32x255xf32>
    %167 = tpu.concatenate %166, %165 in 1 : vector<32x255xf32>, vector<32x1xf32> -> vector<32x256xf32>
    %cst_62 = arith.constant 0.000000e+00 : f32
    %168 = vector.broadcast %cst_62 : f32 to vector<32x256xf32>
    %169 = arith.select %148, %167, %168 : vector<32x256xi1>, vector<32x256xf32>
    %170 = tpu.concatenate %164, %159, %169 in 0 : vector<32x256xf32>, vector<32x256xf32>, vector<32x256xf32> -> vector<96x256xf32>
    %171 = arith.truncf %170 : vector<96x256xf32> to vector<96x256xbf16>
    %c0_63 = arith.constant 0 : index
    %c0_64 = arith.constant 0 : index
    %172 = vector.load %arg7[%c0_63, %c0_64] : memref<32x96xbf16, #tpu.memory_space<vmem>>, vector<32x96xbf16>
    %cst_65 = arith.constant dense<0.000000e+00> : vector<32x256xf32>
    %173 = tpu.matmul %172, %171, %cst_65 {dimension_numbers = #tpu.dot_dimension_numbers<[1], [0], [0], [1], [0, 0, 1, 1], [], []>} : vector<32x96xbf16>, vector<96x256xbf16>, vector<32x256xf32> -> vector<32x256xf32>
    %c0_66 = arith.constant 0 : index
    %c0_67 = arith.constant 0 : index
    %174 = vector.load %arg8[%c0_66, %c0_67] : memref<32x1xf32, #tpu.memory_space<vmem>>, vector<32x1xf32>
    %175 = vector.broadcast %174 : vector<32x1xf32> to vector<32x256xf32>
    %176 = arith.addf %173, %175 : vector<32x256xf32>
    %177 = arith.addf %176, %119 : vector<32x256xf32>
    %cst_68 = arith.constant 0.000000e+00 : f32
    %178 = vector.broadcast %cst_68 : f32 to vector<32x256xf32>
    %179 = arith.maximumf %177, %178 : vector<32x256xf32>
    %cst_69 = arith.constant 0.000000e+00 : f32
    %180 = vector.broadcast %cst_69 : f32 to vector<32x1xf32>
    %181 = vector.extract_strided_slice %179 {offsets = [0, 0], sizes = [32, 255], strides = [1, 1]} : vector<32x256xf32> to vector<32x255xf32>
    %182 = tpu.concatenate %180, %181 in 1 : vector<32x1xf32>, vector<32x255xf32> -> vector<32x256xf32>
    %cst_70 = arith.constant 0.000000e+00 : f32
    %183 = vector.broadcast %cst_70 : f32 to vector<32x256xf32>
    %184 = arith.select %141, %182, %183 : vector<32x256xi1>, vector<32x256xf32>
    %cst_71 = arith.constant 0.000000e+00 : f32
    %185 = vector.broadcast %cst_71 : f32 to vector<32x1xf32>
    %186 = vector.extract_strided_slice %179 {offsets = [0, 1], sizes = [32, 255], strides = [1, 1]} : vector<32x256xf32> to vector<32x255xf32>
    %187 = tpu.concatenate %186, %185 in 1 : vector<32x255xf32>, vector<32x1xf32> -> vector<32x256xf32>
    %cst_72 = arith.constant 0.000000e+00 : f32
    %188 = vector.broadcast %cst_72 : f32 to vector<32x256xf32>
    %189 = arith.select %148, %187, %188 : vector<32x256xi1>, vector<32x256xf32>
    %190 = tpu.concatenate %184, %179, %189 in 0 : vector<32x256xf32>, vector<32x256xf32>, vector<32x256xf32> -> vector<96x256xf32>
    %191 = arith.truncf %190 : vector<96x256xf32> to vector<96x256xbf16>
    %c0_73 = arith.constant 0 : index
    %c0_74 = arith.constant 0 : index
    %192 = vector.load %arg9[%c0_73, %c0_74] : memref<32x96xbf16, #tpu.memory_space<vmem>>, vector<32x96xbf16>
    %cst_75 = arith.constant dense<0.000000e+00> : vector<32x256xf32>
    %193 = tpu.matmul %192, %191, %cst_75 {dimension_numbers = #tpu.dot_dimension_numbers<[1], [0], [0], [1], [0, 0, 1, 1], [], []>} : vector<32x96xbf16>, vector<96x256xbf16>, vector<32x256xf32> -> vector<32x256xf32>
    %c0_76 = arith.constant 0 : index
    %c0_77 = arith.constant 0 : index
    %194 = vector.load %arg10[%c0_76, %c0_77] : memref<32x1xf32, #tpu.memory_space<vmem>>, vector<32x1xf32>
    %195 = vector.broadcast %194 : vector<32x1xf32> to vector<32x256xf32>
    %196 = arith.addf %193, %195 : vector<32x256xf32>
    %cst_78 = arith.constant 0.000000e+00 : f32
    %197 = vector.broadcast %cst_78 : f32 to vector<32x256xf32>
    %198 = arith.maximumf %196, %197 : vector<32x256xf32>
    %cst_79 = arith.constant 0.000000e+00 : f32
    %199 = vector.broadcast %cst_79 : f32 to vector<32x1xf32>
    %200 = vector.extract_strided_slice %198 {offsets = [0, 0], sizes = [32, 255], strides = [1, 1]} : vector<32x256xf32> to vector<32x255xf32>
    %201 = tpu.concatenate %199, %200 in 1 : vector<32x1xf32>, vector<32x255xf32> -> vector<32x256xf32>
    %cst_80 = arith.constant 0.000000e+00 : f32
    %202 = vector.broadcast %cst_80 : f32 to vector<32x256xf32>
    %203 = arith.select %141, %201, %202 : vector<32x256xi1>, vector<32x256xf32>
    %cst_81 = arith.constant 0.000000e+00 : f32
    %204 = vector.broadcast %cst_81 : f32 to vector<32x1xf32>
    %205 = vector.extract_strided_slice %198 {offsets = [0, 1], sizes = [32, 255], strides = [1, 1]} : vector<32x256xf32> to vector<32x255xf32>
    %206 = tpu.concatenate %205, %204 in 1 : vector<32x255xf32>, vector<32x1xf32> -> vector<32x256xf32>
    %cst_82 = arith.constant 0.000000e+00 : f32
    %207 = vector.broadcast %cst_82 : f32 to vector<32x256xf32>
    %208 = arith.select %148, %206, %207 : vector<32x256xi1>, vector<32x256xf32>
    %209 = tpu.concatenate %203, %198, %208 in 0 : vector<32x256xf32>, vector<32x256xf32>, vector<32x256xf32> -> vector<96x256xf32>
    %210 = arith.truncf %209 : vector<96x256xf32> to vector<96x256xbf16>
    %c0_83 = arith.constant 0 : index
    %c0_84 = arith.constant 0 : index
    %211 = vector.load %arg11[%c0_83, %c0_84] : memref<32x96xbf16, #tpu.memory_space<vmem>>, vector<32x96xbf16>
    %cst_85 = arith.constant dense<0.000000e+00> : vector<32x256xf32>
    %212 = tpu.matmul %211, %210, %cst_85 {dimension_numbers = #tpu.dot_dimension_numbers<[1], [0], [0], [1], [0, 0, 1, 1], [], []>} : vector<32x96xbf16>, vector<96x256xbf16>, vector<32x256xf32> -> vector<32x256xf32>
    %c0_86 = arith.constant 0 : index
    %c0_87 = arith.constant 0 : index
    %213 = vector.load %arg12[%c0_86, %c0_87] : memref<32x1xf32, #tpu.memory_space<vmem>>, vector<32x1xf32>
    %214 = vector.broadcast %213 : vector<32x1xf32> to vector<32x256xf32>
    %215 = arith.addf %212, %214 : vector<32x256xf32>
    %216 = arith.addf %215, %179 : vector<32x256xf32>
    %cst_88 = arith.constant 0.000000e+00 : f32
    %217 = vector.broadcast %cst_88 : f32 to vector<32x256xf32>
    %218 = arith.maximumf %216, %217 : vector<32x256xf32>
    %219 = tpu.iota {dimensions = array<i32: 1>} : vector<32x2xi32>
    %cst_89 = arith.constant 0.000000e+00 : f32
    %220 = vector.broadcast %cst_89 : f32 to vector<32x2xf32>
    %221 = vector.extract_strided_slice %218 {offsets = [0, 0], sizes = [32, 128], strides = [1, 1]} : vector<32x256xf32> to vector<32x128xf32>
    %cst_90 = arith.constant dense<0.000000e+00> : vector<32xf32>
    %222 = vector.multi_reduction <add>, %221, %cst_90 [1] : vector<32x128xf32> to vector<32xf32>
    %223 = vector.shape_cast %222 : vector<32xf32> to vector<32x1xf32>
    %cst_91 = arith.constant 7.812500e-03 : f32
    %224 = vector.broadcast %cst_91 : f32 to vector<32x1xf32>
    %225 = arith.mulf %223, %224 : vector<32x1xf32>
    %c0_i32_92 = arith.constant 0 : i32
    %226 = vector.broadcast %c0_i32_92 : i32 to vector<32x2xi32>
    %227 = arith.cmpi eq, %219, %226 : vector<32x2xi32>
    %228 = vector.shape_cast %225 : vector<32x1xf32> to vector<32x1xf32>
    %229 = vector.broadcast %228 : vector<32x1xf32> to vector<32x2xf32>
    %230 = arith.select %227, %229, %220 : vector<32x2xi1>, vector<32x2xf32>
    %231 = vector.extract_strided_slice %218 {offsets = [0, 128], sizes = [32, 128], strides = [1, 1]} : vector<32x256xf32> to vector<32x128xf32>
    %cst_93 = arith.constant dense<0.000000e+00> : vector<32xf32>
    %232 = vector.multi_reduction <add>, %231, %cst_93 [1] : vector<32x128xf32> to vector<32xf32>
    %233 = vector.shape_cast %232 : vector<32xf32> to vector<32x1xf32>
    %cst_94 = arith.constant 7.812500e-03 : f32
    %234 = vector.broadcast %cst_94 : f32 to vector<32x1xf32>
    %235 = arith.mulf %233, %234 : vector<32x1xf32>
    %c1_i32_95 = arith.constant 1 : i32
    %236 = vector.broadcast %c1_i32_95 : i32 to vector<32x2xi32>
    %237 = arith.cmpi eq, %219, %236 : vector<32x2xi32>
    %238 = vector.shape_cast %235 : vector<32x1xf32> to vector<32x1xf32>
    %239 = vector.broadcast %238 : vector<32x1xf32> to vector<32x2xf32>
    %240 = arith.select %237, %239, %230 : vector<32x2xi1>, vector<32x2xf32>
    %c0_96 = arith.constant 0 : index
    %c0_97 = arith.constant 0 : index
    %c0_98 = arith.constant 0 : index
    %c0_99 = arith.constant 0 : index
    %241 = vector.load %arg21[%c0_96, %c0_97, %c0_98, %c0_99] : memref<1x2x32x2xf32, #tpu.memory_space<vmem>>, vector<1x1x32x2xf32>
    %242 = vector.shape_cast %241 : vector<1x1x32x2xf32> to vector<32x2xf32>
    %243 = vector.shape_cast %240 : vector<32x2xf32> to vector<1x1x32x2xf32>
    tpu.vector_store %arg21[%c0_96, %c0_97, %c0_98, %c0_99], %243 {strides = array<i32>} : memref<1x2x32x2xf32, #tpu.memory_space<vmem>>, vector<1x1x32x2xf32>,
    %cst_100 = arith.constant 0.000000e+00 : f32
    %244 = vector.broadcast %cst_100 : f32 to vector<32x1xf32>
    %245 = vector.extract_strided_slice %218 {offsets = [0, 0], sizes = [32, 255], strides = [1, 1]} : vector<32x256xf32> to vector<32x255xf32>
    %246 = tpu.concatenate %244, %245 in 1 : vector<32x1xf32>, vector<32x255xf32> -> vector<32x256xf32>
    %cst_101 = arith.constant 0.000000e+00 : f32
    %247 = vector.broadcast %cst_101 : f32 to vector<32x256xf32>
    %248 = arith.select %141, %246, %247 : vector<32x256xi1>, vector<32x256xf32>
    %cst_102 = arith.constant 0.000000e+00 : f32
    %249 = vector.broadcast %cst_102 : f32 to vector<32x1xf32>
    %250 = vector.extract_strided_slice %218 {offsets = [0, 1], sizes = [32, 255], strides = [1, 1]} : vector<32x256xf32> to vector<32x255xf32>
    %251 = tpu.concatenate %250, %249 in 1 : vector<32x255xf32>, vector<32x1xf32> -> vector<32x256xf32>
    %cst_103 = arith.constant 0.000000e+00 : f32
    %252 = vector.broadcast %cst_103 : f32 to vector<32x256xf32>
    %253 = arith.select %148, %251, %252 : vector<32x256xi1>, vector<32x256xf32>
    %254 = tpu.concatenate %248, %218, %253 in 0 : vector<32x256xf32>, vector<32x256xf32>, vector<32x256xf32> -> vector<96x256xf32>
    %255 = arith.truncf %254 : vector<96x256xf32> to vector<96x256xbf16>
    %c0_104 = arith.constant 0 : index
    %c0_105 = arith.constant 0 : index
    %256 = vector.load %arg13[%c0_104, %c0_105] : memref<32x96xbf16, #tpu.memory_space<vmem>>, vector<32x96xbf16>
    %cst_106 = arith.constant dense<0.000000e+00> : vector<32x256xf32>
    %257 = tpu.matmul %256, %255, %cst_106 {dimension_numbers = #tpu.dot_dimension_numbers<[1], [0], [0], [1], [0, 0, 1, 1], [], []>} : vector<32x96xbf16>, vector<96x256xbf16>, vector<32x256xf32> -> vector<32x256xf32>
    %c0_107 = arith.constant 0 : index
    %c0_108 = arith.constant 0 : index
    %258 = vector.load %arg14[%c0_107, %c0_108] : memref<32x1xf32, #tpu.memory_space<vmem>>, vector<32x1xf32>
    %259 = vector.broadcast %258 : vector<32x1xf32> to vector<32x256xf32>
    %260 = arith.addf %257, %259 : vector<32x256xf32>
    %cst_109 = arith.constant 0.000000e+00 : f32
    %261 = vector.broadcast %cst_109 : f32 to vector<32x256xf32>
    %262 = arith.maximumf %260, %261 : vector<32x256xf32>
    %cst_110 = arith.constant 0.000000e+00 : f32
    %263 = vector.broadcast %cst_110 : f32 to vector<32x1xf32>
    %264 = vector.extract_strided_slice %262 {offsets = [0, 0], sizes = [32, 255], strides = [1, 1]} : vector<32x256xf32> to vector<32x255xf32>
    %265 = tpu.concatenate %263, %264 in 1 : vector<32x1xf32>, vector<32x255xf32> -> vector<32x256xf32>
    %cst_111 = arith.constant 0.000000e+00 : f32
    %266 = vector.broadcast %cst_111 : f32 to vector<32x256xf32>
    %267 = arith.select %141, %265, %266 : vector<32x256xi1>, vector<32x256xf32>
    %cst_112 = arith.constant 0.000000e+00 : f32
    %268 = vector.broadcast %cst_112 : f32 to vector<32x1xf32>
    %269 = vector.extract_strided_slice %262 {offsets = [0, 1], sizes = [32, 255], strides = [1, 1]} : vector<32x256xf32> to vector<32x255xf32>
    %270 = tpu.concatenate %269, %268 in 1 : vector<32x255xf32>, vector<32x1xf32> -> vector<32x256xf32>
    %cst_113 = arith.constant 0.000000e+00 : f32
    %271 = vector.broadcast %cst_113 : f32 to vector<32x256xf32>
    %272 = arith.select %148, %270, %271 : vector<32x256xi1>, vector<32x256xf32>
    %273 = tpu.concatenate %267, %262, %272 in 0 : vector<32x256xf32>, vector<32x256xf32>, vector<32x256xf32> -> vector<96x256xf32>
    %274 = arith.truncf %273 : vector<96x256xf32> to vector<96x256xbf16>
    %c0_114 = arith.constant 0 : index
    %c0_115 = arith.constant 0 : index
    %275 = vector.load %arg15[%c0_114, %c0_115] : memref<32x96xbf16, #tpu.memory_space<vmem>>, vector<32x96xbf16>
    %cst_116 = arith.constant dense<0.000000e+00> : vector<32x256xf32>
    %276 = tpu.matmul %275, %274, %cst_116 {dimension_numbers = #tpu.dot_dimension_numbers<[1], [0], [0], [1], [0, 0, 1, 1], [], []>} : vector<32x96xbf16>, vector<96x256xbf16>, vector<32x256xf32> -> vector<32x256xf32>
    %c0_117 = arith.constant 0 : index
    %c0_118 = arith.constant 0 : index
    %277 = vector.load %arg16[%c0_117, %c0_118] : memref<32x1xf32, #tpu.memory_space<vmem>>, vector<32x1xf32>
    %278 = vector.broadcast %277 : vector<32x1xf32> to vector<32x256xf32>
    %279 = arith.addf %276, %278 : vector<32x256xf32>
    %280 = arith.addf %279, %218 : vector<32x256xf32>
    %cst_119 = arith.constant 0.000000e+00 : f32
    %281 = vector.broadcast %cst_119 : f32 to vector<32x256xf32>
    %282 = arith.maximumf %280, %281 : vector<32x256xf32>
    %cst_120 = arith.constant 0.000000e+00 : f32
    %283 = vector.broadcast %cst_120 : f32 to vector<32x1xf32>
    %284 = vector.extract_strided_slice %282 {offsets = [0, 0], sizes = [32, 255], strides = [1, 1]} : vector<32x256xf32> to vector<32x255xf32>
    %285 = tpu.concatenate %283, %284 in 1 : vector<32x1xf32>, vector<32x255xf32> -> vector<32x256xf32>
    %cst_121 = arith.constant 0.000000e+00 : f32
    %286 = vector.broadcast %cst_121 : f32 to vector<32x256xf32>
    %287 = arith.select %141, %285, %286 : vector<32x256xi1>, vector<32x256xf32>
    %cst_122 = arith.constant 0.000000e+00 : f32
    %288 = vector.broadcast %cst_122 : f32 to vector<32x1xf32>
    %289 = vector.extract_strided_slice %282 {offsets = [0, 1], sizes = [32, 255], strides = [1, 1]} : vector<32x256xf32> to vector<32x255xf32>
    %290 = tpu.concatenate %289, %288 in 1 : vector<32x255xf32>, vector<32x1xf32> -> vector<32x256xf32>
    %cst_123 = arith.constant 0.000000e+00 : f32
    %291 = vector.broadcast %cst_123 : f32 to vector<32x256xf32>
    %292 = arith.select %148, %290, %291 : vector<32x256xi1>, vector<32x256xf32>
    %293 = tpu.concatenate %287, %282, %292 in 0 : vector<32x256xf32>, vector<32x256xf32>, vector<32x256xf32> -> vector<96x256xf32>
    %294 = arith.truncf %293 : vector<96x256xf32> to vector<96x256xbf16>
    %c0_124 = arith.constant 0 : index
    %c0_125 = arith.constant 0 : index
    %295 = vector.load %arg17[%c0_124, %c0_125] : memref<32x96xbf16, #tpu.memory_space<vmem>>, vector<32x96xbf16>
    %cst_126 = arith.constant dense<0.000000e+00> : vector<32x256xf32>
    %296 = tpu.matmul %295, %294, %cst_126 {dimension_numbers = #tpu.dot_dimension_numbers<[1], [0], [0], [1], [0, 0, 1, 1], [], []>} : vector<32x96xbf16>, vector<96x256xbf16>, vector<32x256xf32> -> vector<32x256xf32>
    %c0_127 = arith.constant 0 : index
    %c0_128 = arith.constant 0 : index
    %297 = vector.load %arg18[%c0_127, %c0_128] : memref<32x1xf32, #tpu.memory_space<vmem>>, vector<32x1xf32>
    %298 = vector.broadcast %297 : vector<32x1xf32> to vector<32x256xf32>
    %299 = arith.addf %296, %298 : vector<32x256xf32>
    %cst_129 = arith.constant 0.000000e+00 : f32
    %300 = vector.broadcast %cst_129 : f32 to vector<32x256xf32>
    %301 = arith.maximumf %299, %300 : vector<32x256xf32>
    %cst_130 = arith.constant 0.000000e+00 : f32
    %302 = vector.broadcast %cst_130 : f32 to vector<32x1xf32>
    %303 = vector.extract_strided_slice %301 {offsets = [0, 0], sizes = [32, 255], strides = [1, 1]} : vector<32x256xf32> to vector<32x255xf32>
    %304 = tpu.concatenate %302, %303 in 1 : vector<32x1xf32>, vector<32x255xf32> -> vector<32x256xf32>
    %cst_131 = arith.constant 0.000000e+00 : f32
    %305 = vector.broadcast %cst_131 : f32 to vector<32x256xf32>
    %306 = arith.select %141, %304, %305 : vector<32x256xi1>, vector<32x256xf32>
    %cst_132 = arith.constant 0.000000e+00 : f32
    %307 = vector.broadcast %cst_132 : f32 to vector<32x1xf32>
    %308 = vector.extract_strided_slice %301 {offsets = [0, 1], sizes = [32, 255], strides = [1, 1]} : vector<32x256xf32> to vector<32x255xf32>
    %309 = tpu.concatenate %308, %307 in 1 : vector<32x255xf32>, vector<32x1xf32> -> vector<32x256xf32>
    %cst_133 = arith.constant 0.000000e+00 : f32
    %310 = vector.broadcast %cst_133 : f32 to vector<32x256xf32>
    %311 = arith.select %148, %309, %310 : vector<32x256xi1>, vector<32x256xf32>
    %312 = tpu.concatenate %306, %301, %311 in 0 : vector<32x256xf32>, vector<32x256xf32>, vector<32x256xf32> -> vector<96x256xf32>
    %313 = arith.truncf %312 : vector<96x256xf32> to vector<96x256xbf16>
    %c0_134 = arith.constant 0 : index
    %c0_135 = arith.constant 0 : index
    %314 = vector.load %arg19[%c0_134, %c0_135] : memref<32x96xbf16, #tpu.memory_space<vmem>>, vector<32x96xbf16>
    %cst_136 = arith.constant dense<0.000000e+00> : vector<32x256xf32>
    %315 = tpu.matmul %314, %313, %cst_136 {dimension_numbers = #tpu.dot_dimension_numbers<[1], [0], [0], [1], [0, 0, 1, 1], [], []>} : vector<32x96xbf16>, vector<96x256xbf16>, vector<32x256xf32> -> vector<32x256xf32>
    %c0_137 = arith.constant 0 : index
    %c0_138 = arith.constant 0 : index
    %316 = vector.load %arg20[%c0_137, %c0_138] : memref<32x1xf32, #tpu.memory_space<vmem>>, vector<32x1xf32>
    %317 = vector.broadcast %316 : vector<32x1xf32> to vector<32x256xf32>
    %318 = arith.addf %315, %317 : vector<32x256xf32>
    %319 = arith.addf %318, %282 : vector<32x256xf32>
    %cst_139 = arith.constant 0.000000e+00 : f32
    %320 = vector.broadcast %cst_139 : f32 to vector<32x256xf32>
    %321 = arith.maximumf %319, %320 : vector<32x256xf32>
    %cst_140 = arith.constant 0.000000e+00 : f32
    %322 = vector.broadcast %cst_140 : f32 to vector<32x2xf32>
    %323 = vector.extract_strided_slice %321 {offsets = [0, 0], sizes = [32, 128], strides = [1, 1]} : vector<32x256xf32> to vector<32x128xf32>
    %cst_141 = arith.constant dense<0.000000e+00> : vector<32xf32>
    %324 = vector.multi_reduction <add>, %323, %cst_141 [1] : vector<32x128xf32> to vector<32xf32>
    %325 = vector.shape_cast %324 : vector<32xf32> to vector<32x1xf32>
    %cst_142 = arith.constant 7.812500e-03 : f32
    %326 = vector.broadcast %cst_142 : f32 to vector<32x1xf32>
    %327 = arith.mulf %325, %326 : vector<32x1xf32>
    %c0_i32_143 = arith.constant 0 : i32
    %328 = vector.broadcast %c0_i32_143 : i32 to vector<32x2xi32>
    %329 = arith.cmpi eq, %219, %328 : vector<32x2xi32>
    %330 = vector.shape_cast %327 : vector<32x1xf32> to vector<32x1xf32>
    %331 = vector.broadcast %330 : vector<32x1xf32> to vector<32x2xf32>
    %332 = arith.select %329, %331, %322 : vector<32x2xi1>, vector<32x2xf32>
    %333 = vector.extract_strided_slice %321 {offsets = [0, 128], sizes = [32, 128], strides = [1, 1]} : vector<32x256xf32> to vector<32x128xf32>
    %cst_144 = arith.constant dense<0.000000e+00> : vector<32xf32>
    %334 = vector.multi_reduction <add>, %333, %cst_144 [1] : vector<32x128xf32> to vector<32xf32>
    %335 = vector.shape_cast %334 : vector<32xf32> to vector<32x1xf32>
    %cst_145 = arith.constant 7.812500e-03 : f32
    %336 = vector.broadcast %cst_145 : f32 to vector<32x1xf32>
    %337 = arith.mulf %335, %336 : vector<32x1xf32>
    %c1_i32_146 = arith.constant 1 : i32
    %338 = vector.broadcast %c1_i32_146 : i32 to vector<32x2xi32>
    %339 = arith.cmpi eq, %219, %338 : vector<32x2xi32>
    %340 = vector.shape_cast %337 : vector<32x1xf32> to vector<32x1xf32>
    %341 = vector.broadcast %340 : vector<32x1xf32> to vector<32x2xf32>
    %342 = arith.select %339, %341, %332 : vector<32x2xi1>, vector<32x2xf32>
    %c0_147 = arith.constant 0 : index
    %c1_148 = arith.constant 1 : index
    %c0_149 = arith.constant 0 : index
    %c0_150 = arith.constant 0 : index
    %343 = vector.load %arg21[%c0_147, %c1_148, %c0_149, %c0_150] : memref<1x2x32x2xf32, #tpu.memory_space<vmem>>, vector<1x1x32x2xf32>
    %344 = vector.shape_cast %343 : vector<1x1x32x2xf32> to vector<32x2xf32>
    %345 = vector.shape_cast %342 : vector<32x2xf32> to vector<1x1x32x2xf32>
    tpu.vector_store %arg21[%c0_147, %c1_148, %c0_149, %c0_150], %345 {strides = array<i32>} : memref<1x2x32x2xf32, #tpu.memory_space<vmem>>, vector<1x1x32x2xf32>,
    return
  }
  func.func @transform_0(%arg0: i32) -> (i32, i32, i32) {
    %c0_i32 = arith.constant 0 : i32
    %c0_i32_0 = arith.constant 0 : i32
    %c0_i32_1 = arith.constant 0 : i32
    return %arg0, %c0_i32, %c0_i32_0 : i32, i32, i32
  }
  func.func @transform_1(%arg0: i32) -> (i32, i32) {
    %c0_i32 = arith.constant 0 : i32
    %c0_i32_0 = arith.constant 0 : i32
    %c0_i32_1 = arith.constant 0 : i32
    return %c0_i32, %c0_i32_0 : i32, i32
  }
  func.func @transform_2(%arg0: i32) -> (i32, i32) {
    %c0_i32 = arith.constant 0 : i32
    %c0_i32_0 = arith.constant 0 : i32
    %c0_i32_1 = arith.constant 0 : i32
    return %c0_i32, %c0_i32_0 : i32, i32
  }
  func.func @transform_3(%arg0: i32) -> (i32, i32) {
    %c0_i32 = arith.constant 0 : i32
    %c0_i32_0 = arith.constant 0 : i32
    %c0_i32_1 = arith.constant 0 : i32
    return %c0_i32, %c0_i32_0 : i32, i32
  }
  func.func @transform_4(%arg0: i32) -> (i32, i32) {
    %c0_i32 = arith.constant 0 : i32
    %c0_i32_0 = arith.constant 0 : i32
    %c0_i32_1 = arith.constant 0 : i32
    return %c0_i32, %c0_i32_0 : i32, i32
  }
  func.func @transform_5(%arg0: i32) -> (i32, i32) {
    %c0_i32 = arith.constant 0 : i32
    %c0_i32_0 = arith.constant 0 : i32
    %c0_i32_1 = arith.constant 0 : i32
    return %c0_i32, %c0_i32_0 : i32, i32
  }
  func.func @transform_6(%arg0: i32) -> (i32, i32) {
    %c0_i32 = arith.constant 0 : i32
    %c0_i32_0 = arith.constant 0 : i32
    %c0_i32_1 = arith.constant 0 : i32
    return %c0_i32, %c0_i32_0 : i32, i32
  }
  func.func @transform_7(%arg0: i32) -> (i32, i32) {
    %c0_i32 = arith.constant 0 : i32
    %c0_i32_0 = arith.constant 0 : i32
    %c0_i32_1 = arith.constant 0 : i32
    return %c0_i32, %c0_i32_0 : i32, i32
  }
  func.func @transform_8(%arg0: i32) -> (i32, i32) {
    %c0_i32 = arith.constant 0 : i32
    %c0_i32_0 = arith.constant 0 : i32
    %c0_i32_1 = arith.constant 0 : i32
    return %c0_i32, %c0_i32_0 : i32, i32
  }
  func.func @transform_9(%arg0: i32) -> (i32, i32) {
    %c0_i32 = arith.constant 0 : i32
    %c0_i32_0 = arith.constant 0 : i32
    %c0_i32_1 = arith.constant 0 : i32
    return %c0_i32, %c0_i32_0 : i32, i32
  }
  func.func @transform_10(%arg0: i32) -> (i32, i32) {
    %c0_i32 = arith.constant 0 : i32
    %c0_i32_0 = arith.constant 0 : i32
    %c0_i32_1 = arith.constant 0 : i32
    return %c0_i32, %c0_i32_0 : i32, i32
  }
  func.func @transform_11(%arg0: i32) -> (i32, i32) {
    %c0_i32 = arith.constant 0 : i32
    %c0_i32_0 = arith.constant 0 : i32
    %c0_i32_1 = arith.constant 0 : i32
    return %c0_i32, %c0_i32_0 : i32, i32
  }
  func.func @transform_12(%arg0: i32) -> (i32, i32) {
    %c0_i32 = arith.constant 0 : i32
    %c0_i32_0 = arith.constant 0 : i32
    %c0_i32_1 = arith.constant 0 : i32
    return %c0_i32, %c0_i32_0 : i32, i32
  }
  func.func @transform_13(%arg0: i32) -> (i32, i32) {
    %c0_i32 = arith.constant 0 : i32
    %c0_i32_0 = arith.constant 0 : i32
    %c0_i32_1 = arith.constant 0 : i32
    return %c0_i32, %c0_i32_0 : i32, i32
  }
  func.func @transform_14(%arg0: i32) -> (i32, i32) {
    %c0_i32 = arith.constant 0 : i32
    %c0_i32_0 = arith.constant 0 : i32
    %c0_i32_1 = arith.constant 0 : i32
    return %c0_i32, %c0_i32_0 : i32, i32
  }
  func.func @transform_15(%arg0: i32) -> (i32, i32) {
    %c0_i32 = arith.constant 0 : i32
    %c0_i32_0 = arith.constant 0 : i32
    %c0_i32_1 = arith.constant 0 : i32
    return %c0_i32, %c0_i32_0 : i32, i32
  }
  func.func @transform_16(%arg0: i32) -> (i32, i32) {
    %c0_i32 = arith.constant 0 : i32
    %c0_i32_0 = arith.constant 0 : i32
    %c0_i32_1 = arith.constant 0 : i32
    return %c0_i32, %c0_i32_0 : i32, i32
  }
  func.func @transform_17(%arg0: i32) -> (i32, i32) {
    %c0_i32 = arith.constant 0 : i32
    %c0_i32_0 = arith.constant 0 : i32
    %c0_i32_1 = arith.constant 0 : i32
    return %c0_i32, %c0_i32_0 : i32, i32
  }
  func.func @transform_18(%arg0: i32) -> (i32, i32) {
    %c0_i32 = arith.constant 0 : i32
    %c0_i32_0 = arith.constant 0 : i32
    %c0_i32_1 = arith.constant 0 : i32
    return %c0_i32, %c0_i32_0 : i32, i32
  }
  func.func @transform_19(%arg0: i32) -> (i32, i32) {
    %c0_i32 = arith.constant 0 : i32
    %c0_i32_0 = arith.constant 0 : i32
    %c0_i32_1 = arith.constant 0 : i32
    return %c0_i32, %c0_i32_0 : i32, i32
  }
  func.func @transform_20(%arg0: i32) -> (i32, i32, i32, i32) {
    %c0_i32 = arith.constant 0 : i32
    %c0_i32_0 = arith.constant 0 : i32
    %c0_i32_1 = arith.constant 0 : i32
    %c0_i32_2 = arith.constant 0 : i32
    return %arg0, %c0_i32, %c0_i32_0, %c0_i32_1 : i32, i32, i32, i32
  }
}

</mosaic_0001>

<bundles_post_ra>
// kernel: local_activation_resnet_forward.1
= control target key start
LH: loop header
LB: loop body
LE: loop exit
PB: predicated region body
PF: predicated region fallthrough
CT: control target
= control target key end

     0   :  { %s7775_s0 = inlined_call_operand.vmem [shape: f32[4,8,512], index: 0, kind: input, shape index: {}]   ;;  %s7776_s1 = inlined_call_operand.vmem [shape: bf16[32,56], index: 1, kind: input, shape index: {}]   ;;  %s7777_s2 = inlined_call_operand.vmem [shape: f32[32,1], index: 2, kind: input, shape index: {}]   ;;  %s7778_s3 = inlined_call_operand.vmem [shape: bf16[512,128], index: 3, kind: input, shape index: {}]   ;;  %s7779_s4 = inlined_call_operand.vmem [shape: bf16[32,96], index: 4, kind: input, shape index: {}]   ;;  %s7780_s5 = inlined_call_operand.vmem [shape: f32[32,1], index: 5, kind: input, shape index: {}]   ;;  %s7781_s6 = inlined_call_operand.vmem [shape: bf16[32,96], index: 6, kind: input, shape index: {}]   ;;  %s7782_s7 = inlined_call_operand.vmem [shape: f32[32,1], index: 7, kind: input, shape index: {}]   ;;  %s7783_s8 = inlined_call_operand.vmem [shape: bf16[32,96], index: 8, kind: input, shape index: {}]   ;;  %s7784_s9 = inlined_call_operand.vmem [shape: f32[32,1], index: 9, kind: input, shape index: {}]   ;;  %s7785_s10 = inlined_call_operand.vmem [shape: bf16[32,96], index: 10, kind: input, shape index: {}]   ;;  %s7786_s11 = inlined_call_operand.vmem [shape: f32[32,1], index: 11, kind: input, shape index: {}]   ;;  %s7787_s12 = inlined_call_operand.vmem [shape: bf16[32,96], index: 12, kind: input, shape index: {}]   ;;  %s7788_s13 = inlined_call_operand.vmem [shape: f32[32,1], index: 13, kind: input, shape index: {}]   ;;  %s7789_s14 = inlined_call_operand.vmem [shape: bf16[32,96], index: 14, kind: input, shape index: {}]   ;;  %s7790_s15 = inlined_call_operand.vmem [shape: f32[32,1], index: 15, kind: input, shape index: {}]   ;;  %s7791_s16 = inlined_call_operand.vmem [shape: bf16[32,96], index: 16, kind: input, shape index: {}]   ;;  %s7792_s17 = inlined_call_operand.vmem [shape: f32[32,1], index: 17, kind: input, shape index: {}]   ;;  %s7793_s18 = inlined_call_operand.vmem [shape: bf16[32,96], index: 18, kind: input, shape index: {}]   ;;  %s7794_s19 = inlined_call_operand.vmem [shape: f32[32,1], index: 19, kind: input, shape index: {}]   ;;  %s7795_s20 = inlined_call_operand.vmem [shape: f32[2,2,32,2], index: 20, kind: output, shape index: {}]  }
   0x1   :  { %7844 = sst [smem:[#allocation32_spill]] %s7775_s0 }
   0x2   :  { %7845 = sst [smem:[#allocation33_spill]] %s7776_s1  ;;  %s5549_s1 = smov 0  }
   0x3   :  { %7846 = sst [smem:[#allocation34_spill]] %s7777_s2 }
   0x4   :  { %7847 = sst [smem:[#allocation35_spill]] %s7778_s3 }
   0x5   :  { %7848 = sst [smem:[#allocation36_spill]] %s7779_s4 }
   0x6 LB: > { %s5555_s22 = sadd.s32 4294967295, %s5434_s1   ;;  %p4277_p0 = scmp.ge.s32.totalorder %s5434_s1, 1  ;;  %s5434_s1 = sphi %s5549_s1, %s30_s1  }
   0x7   : > { %p564_p1 = scmp.lt.s32.totalorder %s5434_s1, 3 }
   0x9   : > { %p565_p2 = pnand %p4277_p0, %p564_p1 }
   0xb   : > { %568 = sbr.rel (%p565_p2) target bundleno = 3957 (0xf75), region = 100 }
  0x12   : > { %s4278_s23 = sshll.u32 %s5555_s22, 1  ;;  %s7849_s3 = sld [smem:[#allocation32_spill]]  ;;  %v7804_v11 = vmov 0   ;;  %v686_v21 = vlaneseq  ;;  %vm669_vm0 = vcmask 23552   ;;  %vm872_vm1 = vcmask 7168  }
  0x13   : > { %p624_p3 = scmp.lt.s32.totalorder %s4278_s23, 3  ;;  %s7800_s27 = smov 1   ;;  %1186 = vmatprep.mubr.bf16.mxu0 %v7804_v11  ;;  %1239 = vmatprep.mubr.bf16.mxu1 %v7804_v11  ;;  %vm823_vm2 = vcmask 15360   ;;  %vm970_vm6 = vcmask 1031168   ;;  %vm921_vm8 = vcmask 1039360   ;;  %vm5443_vm9 = vmmov 1  }
  0x14   : > { %s5437_s28 = smov 3   ;;  %s5438_s4 = smov 127   ;;  %4816 = vset.pattern.permute.xlu1 %v7804_v11  ;;  %4817 = vset.pattern.permute.xlu0 %v7804_v11  ;;  %v5654_v22 = vand.u32 127, %v686_v21  ;;  %vm1019_vm11 = vcmask 1022976   ;;  %vm1129_vm12 = vcmask 1043456   ;;  %vm1122_vm13 = vcmask 457728  }
  0x15   : > { %s7939_s23 = smov (!%p624_p3, %s4278_s23), 3  ;;  %s5439_s29 = smov 2  }
  0x16   : > { %s4581_s24 = sshll.u32 %s7939_s23, 5  ;;  %s5440_s30 = smov 126   ;;  %7851 = vst [vmem:[#allocation2_spill] sm:$0xff] %v5654_v22  ;;  %v699_v25 = vand.u32 511, %v5654_v22  ;;  %v691_v62 = vadd.s32 512, %v5654_v22 }
  0x17   : > { %s7802_s0 = smov 125   ;;  %s7852_s2 = sld [smem:[#allocation33_spill]] }
  0x18   : > { %s5563_s26 = scalar_lea.vmem %s7849_s3, %s4581_s24  ;;  %s7850_s24 = sld [smem:[#allocation34_spill]]  ;;  %vm791_vm3 = vcmp.ge.s32.totalorder %v699_v25, 3  ;;  %vm840_vm4 = vcmp.ge.s32.totalorder %v699_v25, 2  ;;  %vm889_vm5 = vcmp.ge.s32.totalorder %v699_v25, 1 }
  0x19   : > { %v5566_v0 = vld [vmem:[%s5563_s26] sm:$0xff]  ;;  %v5569_v1 = vld [vmem:[%s5563_s26 + $0x8] sm:$0xff]  ;;  %v5572_v2 = vld [vmem:[%s5563_s26 + $0x10] sm:$0xff]  ;;  %s7937_s3 = sld [smem:[#allocation36_spill]]  ;;  %p630_p4 = scmp.lt.s32.totalorder %s5555_s22, 1 }
  0x1a   : > { %v4721_v3 = vpack.i.bf16 %v5569_v1, %v5566_v0  ;;  %v5577_v4 = vld [vmem:[%s5563_s26 + $0x18] sm:$0xff]  ;;  %v4726_v5 = vpack.i.bf16 %v5572_v2, %v5569_v1  ;;  %v5590_v7 = vld [vmem:[%s5563_s26 + $0x20] sm:$0xff]  ;;  %v5593_v8 = vld [vmem:[%s5563_s26 + $0x28] sm:$0xff] }
  0x1b   : > { %v4736_v6 = vpack.i.bf16 %v5577_v4, %v5566_v0  ;;  %v4751_v9 = vpack.i.bf16 %v5577_v4, %v5572_v2  ;;  %v4761_v10 = vpack.i.bf16 %v5593_v8, %v5590_v7  ;;  %v5613_v12 = vld [vmem:[%s5563_s26 + $0x30] sm:$0xff]  ;;  %v5618_v13 = vld [vmem:[%s5563_s26 + $0x38] sm:$0xff]  ;;  %v4791_v14 = vpack.i.bf16 %v5590_v7, %v5577_v4  ;;  %vm4289_vm7 = vmpackc.low %vm840_vm4, %vm791_vm3  ;;  %s7854_s26 = smov 125   ;;  %s7941_s22 = smov (!%p630_p4, %s5555_s22), 1 }
  0x1c   : > { %4722 = vrot.lane.b32.xlu1 %v4721_v3, %s7800_s27  ;;  %4712 = vrot.lane.b32.xlu0 %v4721_v3, %s5437_s28  ;;  %v4801_v15 = vpack.i.bf16 %v5618_v13, %v5613_v12  ;;  %v4796_v16 = vpack.i.bf16 %v5613_v12, %v5593_v8  ;;  %vm4292_vm10 = vmpackc.low %vm5443_vm9, %vm889_vm5  ;;  %s4582_s21 = sshll.u32 %s7941_s22, 6 }
  0x1d   : > { %v5724_v25 = vld [vmem:[%s7852_s2] sm:$0xff]   ;;  %s7714_s25 = scalar_lea.vmem %s7795_s20, %s4582_s21 }
  0x1e   : > { %v1088_v17 = vld [vmem:[%s7850_s24] sm:$0xff]  ;;  %v1089_v18 = vld [vmem:[%s7850_s24 + $0x8] sm:$0xff]  ;;  %v1090_v19 = vld [vmem:[%s7850_s24 + $0x10] sm:$0xff] }
  0x1f   : > { %v1091_v20 = vld [vmem:[%s7850_s24 + $0x18] sm:$0xff] }
  0x20   : > { %4727 = vrot.lane.b32.xlu1 %v4726_v5, %s5438_s4  ;;  %4717 = vrot.lane.b32.xlu0 %v4721_v3, %s5439_s29 }
  0x24   : > { %4737 = vrot.lane.b32.xlu1 %v4736_v6, %s5438_s4  ;;  %4732 = vrot.lane.b32.xlu0 %v4726_v5, %s5440_s30 }
  0x28   : > { %4747 = vrot.lane.b32.xlu1 %v4721_v3, %s7802_s0  ;;  %4742 = vrot.lane.b32.xlu0 %v4736_v6, %s5440_s30 }
  0x2c   : > { %4752 = vrot.lane.b32.xlu1 %v4751_v9, %s5437_s28  ;;  %1007 = vrot.lane.b32.xlu0 %v5572_v2, %s7802_s0 }
  0x30   : > { %4762 = vrot.lane.b32.xlu1 %v4761_v10, %s5437_s28  ;;  %4757 = vrot.lane.b32.xlu0 %v4751_v9, %s5439_s29 }
  0x34   : > { %4772 = vrot.lane.b32.xlu1 %v4751_v9, %s7800_s27  ;;  %4767 = vrot.lane.b32.xlu0 %v4761_v10, %s5439_s29 }
  0x38   : > { %4782 = vrot.lane.b32.xlu1 %v4761_v10, %s5438_s4  ;;  %4777 = vrot.lane.b32.xlu0 %v4761_v10, %s7800_s27 }
  0x3c   : > { %917 = vrot.lane.b32.xlu1 %v5613_v12, %s5438_s4  ;;  %4787 = vrot.lane.b32.xlu0 %v4761_v10, %s5440_s30 }
  0x40   : > { %4792 = vrot.lane.b32.xlu1 %v4791_v14, %s7802_s0  ;;  %966 = vrot.lane.b32.xlu0 %v5613_v12, %s5440_s30  ;;  %v5713_v14 = vand.u32 511, %v691_v62 }
  0x42   : > { %vm795_vm14 = vcmp.ge.s32.totalorder %v5713_v14, 3  ;;  %vm844_vm15 = vcmp.ge.s32.totalorder %v5713_v14, 2  ;;  %vm893_vm4 = vcmp.ge.s32.totalorder %v5713_v14, 1 }
  0x43   : > { %vm4304_vm3 = vmpackc.low %vm844_vm15, %vm795_vm14 }
  0x44   : > { %4802 = vrot.lane.b32.xlu1 %v4801_v15, %s5437_s28  ;;  %4797 = vrot.lane.b32.xlu0 %v4796_v16, %s7802_s0 }
  0x48   : > { %4812 = vrot.lane.b32.xlu1 %v4801_v15, %s7800_s27  ;;  %4807 = vrot.lane.b32.xlu0 %v4801_v15, %s5439_s29  ;;  %s7853_s29 = sld [smem:[#allocation35_spill]] }
  0x4c   : > { %968 = vrot.lane.b32.xlu1 %v5618_v13, %s5440_s30  ;;  %919 = vrot.lane.b32.xlu0 %v5618_v13, %s5438_s4 }
  0x50   : > { %1017 = vrot.lane.b32.xlu0 %v5618_v13, %s7802_s0  ;;  %1094 = vperm.xlu1 %4816, %v1088_v17  }
  0x54   : > { %1099 = vperm.xlu0 %4817, %v1089_v18   ;;  %1104 = vperm.xlu1 %4816, %v1090_v19  }
  0x58   : > { %1109 = vperm.xlu1 %4816, %v1091_v20  }
  0x8e   : > { %v5656_v23 = vpop.permute.xlu1 %4722  ;;  %v5658_v24 = vpop.permute.xlu0 %4712 }
  0x8f   : > { %v4715_v26 = vunpack.i.h.bf16 %v5658_v24  ;;  %v4714_v27 = vunpack.i.l.bf16 %v5658_v24  ;;  %v4725_v28 = vunpack.i.h.bf16 %v5656_v23  ;;  %v4724_v29 = vunpack.i.l.bf16 %v5656_v23 }
  0x91   : > { %v670_v34 = vsel %vm669_vm0, %v4714_v27, %v4715_v26  ;;  %v685_v36 = vsel %vm669_vm0, 0.0, %v4714_v27  ;;  %v873_v38 = vsel %vm872_vm1, %v4724_v29, %v4725_v28  ;;  %v888_v39 = vsel %vm872_vm1, 0.0, %v4724_v29 }
  0x92   : > { %v5665_v30 = vpop.permute.xlu1 %4727  ;;  %v5667_v31 = vpop.permute.xlu0 %4717  ;;  %v1061_v48 = vpack.c.bf16 %v5569_v1, %v873_v38  ;;  %v4293_v51 = vpack.c.bf16 %v5566_v0, %v888_v39  ;;  %v690_v27 = vadd.s32 384, %v5654_v22 }
  0x93   : > { %v4720_v32 = vunpack.i.h.bf16 %v5667_v31  ;;  %v4719_v33 = vunpack.i.l.bf16 %v5667_v31  ;;  %v4730_v44 = vunpack.i.h.bf16 %v5665_v30  ;;  %v4729_v45 = vunpack.i.l.bf16 %v5665_v30 }
  0x95   : > { %v824_v35 = vsel %vm823_vm2, %v4719_v33, %v4720_v32  ;;  %v839_v37 = vsel %vm823_vm2, 0.0, %v4719_v33  ;;  %v923_v57 = vsel %vm921_vm8, %v4729_v45, %v4730_v44 }
  0x96   : > { %v5683_v40 = vpop.permute.xlu1 %4737  ;;  %v5685_v41 = vpop.permute.xlu0 %4732  ;;  %v1053_v42 = vpack.c.bf16 %v824_v35, %v670_v34  ;;  %v4290_v43 = vpack.c.bf16 %v839_v37, %v685_v36 }
  0x97   : > { %v4735_v46 = vunpack.i.h.bf16 %v5685_v41  ;;  %v4734_v47 = vunpack.i.l.bf16 %v5685_v41  ;;  %v4739_v49 = vunpack.i.l.bf16 %v5683_v40 }
  0x98   : > { %1154 = vmatprep.subr.bf16.mxu0 %v1053_v42 }
  0x99   : > { %4291 = vmatpush1.bf16.msk.msra.mxu0 %vm4289_vm7, %v4290_v43  ;;  %v972_v50 = vsel %vm970_vm6, %v4734_v47, %v4735_v46  ;;  %v922_v59 = vsel %vm921_vm8, %v4739_v49, %v4729_v45 }
  0x9a   : > { %v4748_v52 = vpop.permute.xlu1 %4747  ;;  %v5697_v53 = vpop.permute.xlu0 %4742  ;;  %1156 = vmatprep.subr.bf16.mxu0 %v1061_v48  ;;  %v1069_v58 = vpack.c.bf16 %v972_v50, %v923_v57 }
  0x9b   : > { %v4750_v54 = vunpack.i.h.bf16 %v4748_v52  ;;  %v4749_v55 = vunpack.i.l.bf16 %v4748_v52  ;;  %v4744_v56 = vunpack.i.l.bf16 %v5697_v53  ;;  %v4745_v23 = vunpack.i.h.bf16 %v5697_v53 }
  0x9d   : > { %4294 = vmatpush1.bf16.msk.msra.mxu0 %vm4292_vm10, %v4293_v51  ;;  %v971_v60 = vsel %vm970_vm6, %v4744_v56, %v4734_v47  ;;  %v1020_v61 = vsel %vm1019_vm11, %v4749_v55, %v4750_v54  ;;  %vm4307_vm10 = vmpackc.low %vm5443_vm9, %vm893_vm4 }
  0x9e   : > { %v4753_v63 = vpop.permute.xlu1 %4752  ;;  %v5709_v0 = vpop.permute.xlu0 %1007  ;;  %1158 = vmatprep.subr.bf16.mxu0 %v1069_v58  ;;  %v1068_v1 = vpack.c.bf16 %v971_v60, %v922_v59  ;;  %v1076_v6 = vpack.c.bf16 %v1020_v61, %v1020_v61 }
  0x9f   : > { %v1021_v3 = vsel %vm1019_vm11, %v4750_v54, %v5709_v0  ;;  %v4755_v9 = vunpack.i.h.bf16 %v4753_v63  ;;  %v4754_v10 = vunpack.i.l.bf16 %v4753_v63 }
  0xa0   : > { %v1077_v5 = vpack.c.bf16 %v1021_v3, %v1021_v3  ;;  %v1131_v21 = vsel %vm1129_vm12, %v1076_v6, 0 }
  0xa1   : > { %1159 = vmatpush1.bf16.msra.mxu0 %v1068_v1  ;;  %v672_v29 = vsel %vm669_vm0, %v4754_v10, %v4755_v9  ;;  %v671_v34 = vsel %vm669_vm0, %v4715_v26, %v4754_v10 }
  0xa2   : > { %v5715_v15 = vpop.permute.xlu1 %4762  ;;  %v4758_v16 = vpop.permute.xlu0 %4757  ;;  %4295 = vmatprep.subr.msk.bf16.mxu0 %vm1129_vm12, %v1077_v5 }
  0xa3   : > { %v4760_v17 = vunpack.i.h.bf16 %v4758_v16  ;;  %v4759_v18 = vunpack.i.l.bf16 %v4758_v16  ;;  %v4765_v19 = vunpack.i.h.bf16 %v5715_v15  ;;  %v4764_v20 = vunpack.i.l.bf16 %v5715_v15 }
  0xa5   : > { %1161 = vmatpush1.bf16.msra.mxu0 %v1131_v21  ;;  %v826_v33 = vsel %vm823_vm2, %v4759_v18, %v4760_v17  ;;  %v825_v35 = vsel %vm823_vm2, %v4720_v32, %v4759_v18  ;;  %v673_v26 = vsel %vm669_vm0, %v4755_v9, %v4764_v20  ;;  %v674_v31 = vsel %vm669_vm0, %v4764_v20, %v4765_v19 }
  0xa6   : > { %v4773_v36 = vpop.permute.xlu1 %4772  ;;  %v5735_v37 = vpop.permute.xlu0 %4767  ;;  %v1055_v38 = vpack.c.bf16 %v826_v33, %v672_v29  ;;  %v1054_v39 = vpack.c.bf16 %v825_v35, %v671_v34  ;;  %v5747_v32 = vand.u32 511, %v690_v27 }
  0xa7   : > { %v4775_v42 = vunpack.i.h.bf16 %v4773_v36  ;;  %v4774_v43 = vunpack.i.l.bf16 %v4773_v36  ;;  %v4770_v45 = vunpack.i.h.bf16 %v5735_v37  ;;  %v4769_v24 = vunpack.i.l.bf16 %v5735_v37 }
  0xa8   : > { %1207 = vmatprep.subr.bf16.mxu1 %v1055_v38  ;;  %4296 = vmatmul.mubr.msk.bf16.vlgmr.msra.gmra.mrb[0].mxu0 %vm1122_vm13, %v5724_v25  ;;  %vm941_vm5 = vcmp.lt.s32.totalorder %v5747_v32, 511  ;;  %vm990_vm7 = vcmp.lt.s32.totalorder %v5747_v32, 510  ;;  %vm1039_vm14 = vcmp.lt.s32.totalorder %v5747_v32, 509 }
  0xa9   : > { %v827_v47 = vsel %vm823_vm2, %v4760_v17, %v4769_v24  ;;  %1208 = vmatpush1.bf16.msra.mxu1 %v1054_v39  ;;  %v875_v48 = vsel %vm872_vm1, %v4774_v43, %v4775_v42  ;;  %v828_v49 = vsel %vm823_vm2, %v4769_v24, %v4770_v45  ;;  %v874_v50 = vsel %vm872_vm1, %v4725_v28, %v4774_v43  ;;  %vm4298_vm9 = vmpackc.low %vm990_vm7, %vm941_vm5 }
  0xaa   : > { %v4305_v51 = vpack.c.bf16 %v827_v47, %v673_v26  ;;  %v4783_v52 = vpop.permute.xlu1 %4782  ;;  %v5757_v54 = vpop.permute.xlu0 %4777  ;;  %v1063_v55 = vpack.c.bf16 %v5577_v4, %v875_v48  ;;  %v1057_v56 = vpack.c.bf16 %v828_v49, %v674_v31  ;;  %v1062_v57 = vpack.c.bf16 %v5572_v2, %v874_v50  ;;  %1196 = vmatprep.mubr.bf16.mxu0 %v7804_v11  ;;  %v5773_v2 = vld [vmem:[%s7852_s2 + $0x8] sm:$0xff]  }
  0xab   : > { %v4780_v28 = vunpack.i.h.bf16 %v5757_v54  ;;  %v4779_v58 = vunpack.i.l.bf16 %v5757_v54  ;;  %v4740_v4 = vunpack.i.h.bf16 %v5683_v40  ;;  %v4784_v59 = vunpack.i.l.bf16 %v4783_v52 }
  0xac   : > { %1209 = vmatprep.subr.bf16.mxu1 %v1063_v55  ;;  %1260 = vmatprep.subr.bf16.mxu0 %v1057_v56  ;;  %v4785_v5 = vunpack.i.h.bf16 %v4783_v52  ;;  %v694_v47 = vadd.s32 896, %v5654_v22 }
  0xad   : > { %v876_v60 = vsel %vm872_vm1, %v4775_v42, %v4779_v58  ;;  %1210 = vmatpush1.bf16.msra.mxu1 %v1062_v57  ;;  %4306 = vmatpush1.bf16.msk.msra.mxu0 %vm4304_vm3, %v4305_v51  ;;  %v877_v63 = vsel %vm872_vm1, %v4779_v58, %v4780_v28  ;;  %v925_v6 = vsel %vm921_vm8, %v4740_v4, %v4784_v59 }
  0xae   : > { %v4308_v53 = vpack.c.bf16 %v5590_v7, %v876_v60  ;;  %v5778_v61 = vpop.permute.xlu1 %917  ;;  %v4788_v62 = vpop.permute.xlu0 %4787  ;;  %v1065_v3 = vpack.c.bf16 %v5593_v8, %v877_v63  ;;  %v973_v7 = vsel %vm970_vm6, %v4735_v46, %v4745_v23  ;;  %v924_v8 = vsel %vm921_vm8, %v4730_v44, %v4740_v4 }
  0xaf   : > { %v4790_v40 = vunpack.i.h.bf16 %v4788_v62  ;;  %v4789_v1 = vunpack.i.l.bf16 %v4788_v62  ;;  %v1070_v16 = vpack.c.bf16 %v973_v7, %v924_v8  ;;  %v927_v17 = vsel %vm921_vm8, %v4785_v5, %v5778_v61 }
  0xb0   : > { %4297 = vmatmul.mubr.msk.bf16.gmra.mrb[4].mxu0 %vm1122_vm13, %v5773_v2  ;;  %1262 = vmatprep.subr.bf16.mxu0 %v1065_v3  ;;  %v926_v44 = vsel %vm921_vm8, %v4784_v59, %v4785_v5  ;;  %v5826_v59 = vand.u32 511, %v694_v47 }
  0xb1   : > { %v974_v9 = vsel %vm970_vm6, %v4745_v23, %v4789_v1  ;;  %1292 = vmatprep.mubr.bf16.mxu0 %v7804_v11  ;;  %v975_v41 = vsel %vm970_vm6, %v4789_v1, %v4790_v40  ;;  %4309 = vmatpush1.bf16.msk.msra.mxu0 %vm4307_vm10, %v4308_v53 }
  0xb2   : > { %v4793_v46 = vpop.permute.xlu1 %4792  ;;  %v5805_v10 = vpop.permute.xlu0 %966  ;;  %v4299_v14 = vpack.c.bf16 %v974_v9, %v925_v6  ;;  %v1072_v29 = vpack.c.bf16 %v975_v41, %v926_v44  ;;  %vm994_vm15 = vcmp.lt.s32.totalorder %v5826_v59, 510  ;;  %vm1043_vm3 = vcmp.lt.s32.totalorder %v5826_v59, 509 }
  0xb3   : > { %v4795_v18 = vunpack.i.h.bf16 %v4793_v46  ;;  %v4794_v20 = vunpack.i.l.bf16 %v4793_v46  ;;  %v976_v30 = vsel %vm970_vm6, %v4790_v40, %v5805_v10 }
  0xb4   : > { %4300 = vmatprep.subr.msk.bf16.mxu1 %vm4298_vm9, %v4299_v14  ;;  %v1073_v21 = vpack.c.bf16 %v976_v30, %v927_v17  ;;  %v5889_v17 = vld [vmem:[%s7853_s29 + $0x48] sm:$0xff]  }
  0xb5   : > { %v1023_v27 = vsel %vm1019_vm11, %v4794_v20, %v4795_v18  ;;  %1212 = vmatpush1.bf16.msra.mxu1 %v1070_v16  ;;  %v1022_v33 = vsel %vm1019_vm11, %v5709_v0, %v4794_v20  ;;  %v5884_v16 = vld [vmem:[%s7853_s29] sm:$0xff]  }
  0xb6   : > { %v4803_v34 = vpop.permute.xlu1 %4802  ;;  %v4798_v35 = vpop.permute.xlu0 %4797  ;;  %1264 = vmatprep.subr.bf16.mxu0 %v1073_v21  ;;  %v1047_v36 = vsel %vm1039_vm14, %v1023_v27, 0.0  ;;  %v1078_v38 = vpack.c.bf16 %v1022_v33, %v1022_v33  ;;  %v5909_v33 = vld [vmem:[%s7853_s29 + $0x50] sm:$0xff]  }
  0xb7   : > { %v4805_v39 = vunpack.i.h.bf16 %v4803_v34  ;;  %v4800_v42 = vunpack.i.h.bf16 %v4798_v35  ;;  %v4799_v43 = vunpack.i.l.bf16 %v4798_v35  ;;  %1265 = vmatpush1.bf16.msra.mxu0 %v1072_v29  ;;  %v4804_v24 = vunpack.i.l.bf16 %v4803_v34  ;;  %v5914_v34 = vld [vmem:[%s7853_s29 + $0x10] sm:$0xff]   ;;  %v5921_v35 = vld [vmem:[%s7853_s29 + $0x58] sm:$0xff]  }
  0xb8   : > { %v1079_v26 = vpack.c.bf16 %v1047_v36, %v1047_v36  ;;  %v1137_v31 = vsel %vm1129_vm12, %v1078_v38, 0  ;;  %v5928_v38 = vld [vmem:[%s7853_s29 + $0x18] sm:$0xff]  }
  0xb9   : > { %v1025_v48 = vsel %vm1019_vm11, %v4799_v43, %v4800_v42  ;;  %v1024_v0 = vsel %vm1019_vm11, %v4795_v18, %v4799_v43  ;;  %v676_v55 = vsel %vm669_vm0, %v4804_v24, %v4805_v39  ;;  %v675_v60 = vsel %vm669_vm0, %v4765_v19, %v4804_v24 }
  0xba   : > { %4301 = vmatprep.subr.msk.bf16.mxu1 %vm1129_vm12, %v1079_v26  ;;  %v4813_v49 = vpop.permute.xlu1 %4812  ;;  %v4808_v50 = vpop.permute.xlu0 %4807  ;;  %v1081_v51 = vpack.c.bf16 %v1025_v48, %v1025_v48  ;;  %v1080_v52 = vpack.c.bf16 %v1024_v0, %v1024_v0  ;;  %vm945_vm0 = vcmp.lt.s32.totalorder %v5826_v59, 511  ;;  %v5952_v0 = vld [vmem:[%s7853_s29 + $0x20] sm:$0xff]  }
  0xbb   : > { %v4815_v56 = vunpack.i.h.bf16 %v4813_v49  ;;  %v4814_v57 = vunpack.i.l.bf16 %v4813_v49  ;;  %v4810_v23 = vunpack.i.h.bf16 %v4808_v50  ;;  %v4809_v58 = vunpack.i.l.bf16 %v4808_v50  ;;  %1214 = vmatpush1.bf16.msra.mxu1 %v1137_v31  ;;  %vm4313_vm4 = vmpackc.low %vm994_vm15, %vm945_vm0  ;;  %v5945_v31 = vld [vmem:[%s7853_s29 + $0x60] sm:$0xff]  }
  0xbc   : > { %4310 = vmatprep.subr.msk.bf16.mxu0 %vm1129_vm12, %v1081_v51  ;;  %v1143_v4 = vsel %vm1129_vm12, %v1080_v52, 0 }
  0xbd   : > { %v829_v53 = vsel %vm823_vm2, %v4770_v45, %v4809_v58  ;;  %1267 = vmatpush1.bf16.msra.mxu0 %v1143_v4  ;;  %v830_v62 = vsel %vm823_vm2, %v4809_v58, %v4810_v23  ;;  %v879_v63 = vsel %vm872_vm1, %v4814_v57, %v4815_v56  ;;  %v878_v45 = vsel %vm872_vm1, %v4780_v28, %v4814_v57  ;;  %v5977_v23 = vld [vmem:[%s7853_s29 + $0x68] sm:$0xff]  }
  0xbe   : > { %4302 = vmatmul.mubr.msk.bf16.vlgmr.msra.gmra.mrb[0].mxu1 %vm1122_vm13, %v5724_v25  ;;  %v969_v40 = vpop.permute.xlu1 %968  ;;  %v920_v1 = vpop.permute.xlu0 %919  ;;  %v1059_v3 = vpack.c.bf16 %v830_v62, %v676_v55  ;;  %v1058_v7 = vpack.c.bf16 %v829_v53, %v675_v60  ;;  %v1067_v15 = vpack.c.bf16 %v5618_v13, %v879_v63  ;;  %v1066_v54 = vpack.c.bf16 %v5613_v12, %v878_v45  ;;  %v5982_v58 = vld [vmem:[%s7853_s29 + $0x28] sm:$0xff]  }
  0xbf   : > { %v986_v19 = vsel %vm970_vm6, %v969_v40, 0.0  ;;  %v937_v37 = vsel %vm921_vm8, %v920_v1, 0.0  ;;  %1249 = vmatprep.mubr.bf16.mxu1 %v7804_v11  ;;  %v977_v9 = vsel %vm970_vm6, %v5805_v10, %v969_v40  ;;  %v928_v8 = vsel %vm921_vm8, %v5778_v61, %v920_v1  ;;  %v5879_v10 = vld [vmem:[%s7853_s29 + $0x40] sm:$0xff]   ;;  %v6001_v40 = vld [vmem:[%s7853_s29 + $0x70] sm:$0xff]  }
  0xc0   : > { %4311 = vmatmul.mubr.msk.bf16.vlgmr.msra.gmra.mrb[8].mxu0 %vm1122_vm13, %v5724_v25  ;;  %1313 = vmatprep.subr.bf16.mxu1 %v1059_v3  ;;  %v4314_v13 = vpack.c.bf16 %v986_v19, %v937_v37  ;;  %v1074_v14 = vpack.c.bf16 %v977_v9, %v928_v8 }
  0xc1   : > { %1314 = vmatpush1.bf16.msra.mxu1 %v1058_v7  ;;  %1302 = vmatprep.mubr.bf16.mxu0 %v7804_v11  ;;  %v6008_v7 = vld [vmem:[%s7853_s29 + $0x30] sm:$0xff]  }
  0xc2   : > { %1315 = vmatprep.subr.bf16.mxu1 %v1067_v15  ;;  %v1018_v5 = vpop.permute.xlu0 %1017  ;;  %4583 = vmatprep.subr.bf16.mxu0 %v5879_v10 }
  0xc3   : > { %v1026_v28 = vsel %vm1019_vm11, %v4800_v42, %v1018_v5  ;;  %v1035_v6 = vsel %vm1019_vm11, %v1018_v5, 0.0  ;;  %4584 = vmatpush3.bf16.msra.mxu0 %v5884_v16  ;;  %v6027_v5 = vld [vmem:[%s7853_s29 + $0x78] sm:$0xff]  }
  0xc4   : > { %v1051_v41 = vsel %vm1043_vm3, %v1035_v6, 0.0  ;;  %v1082_v12 = vpack.c.bf16 %v1026_v28, %v1026_v28  ;;  %4585 = vmatprep.subr.bf16.mxu0 %v5889_v17  ;;  %v6034_v28 = vld [vmem:[%s7853_s29 + $0x38] sm:$0xff]  }
  0xc5   : > { %1316 = vmatpush1.bf16.msra.mxu1 %v1066_v54  ;;  %v1083_v46 = vpack.c.bf16 %v1051_v41, %v1051_v41 }
  0xc6   : > { %4303 = vmatmul.mubr.msk.bf16.gmra.mrb[4].mxu1 %vm1122_vm13, %v5773_v2  ;;  %4315 = vmatprep.subr.msk.bf16.mxu1 %vm4313_vm4, %v4314_v13  ;;  %v1149_v61 = vsel %vm1129_vm12, %v1082_v12, 0 }
  0xc7   : > { %1345 = vmatprep.mubr.bf16.mxu1 %v7804_v11 }
  0xc8   : > { %4312 = vmatmul.mubr.msk.bf16.gmra.mrb[12].mxu0 %vm1122_vm13, %v5773_v2 }
  0xc9   : > { %1318 = vmatpush1.bf16.msra.mxu1 %v1074_v14 }
  0xca   : > { %4316 = vmatprep.subr.msk.bf16.mxu1 %vm1129_vm12, %v1083_v46  ;;  %v6054_v46 = vld [vmem:[%s7853_s29 + $0xc0] sm:$0xff]  }
  0xcd   : > { %1320 = vmatpush1.bf16.msra.mxu1 %v1149_v61 }
  0xce   : > { %4611 = vmatprep.subr.bf16.mxu1 %v6054_v46 }
  0xcf   : > { %v5923_v36 = vpop.permute.xlu1 %1094 }
  0xd0   : > { %4317 = vmatmul.mubr.msk.bf16.vlgmr.msra.gmra.mrb[8].mxu1 %vm1122_vm13, %v5724_v25  ;;  %v5896_v25 = vld [vmem:[%s7853_s29 + $0x8] sm:$0xff]  }
  0xd1   : > { %1355 = vmatprep.mubr.bf16.mxu1 %v7804_v11  ;;  %4586 = vmatpush3.bf16.msra.mxu0 %v5896_v25  ;;  %v6127_v11 = vld [vmem:[%s7853_s29 + $0xd8] sm:$0xff]  }
  0xd2   : > { %4587 = vmatprep.subr.bf16.mxu0 %v5909_v33  ;;  %7862 = vst [vmem:[#allocation10_spill] sm:$0xff] %v6127_v11 }
  0xd3   : > { %v5934_v42 = vpop.permute.xlu0 %1099  ;;  %v6029_v54 = vpop.permute.xlu1 %1104 }
  0xd5   : > { %4588 = vmatpush3.bf16.msra.mxu0 %v5914_v34 }
  0xd6   : > { %4589 = vmatprep.subr.bf16.mxu0 %v5921_v35 }
  0xd7   : > { %v6056_v14 = vpop.permute.xlu1 %1109 }
  0xd8   : > { %4318 = vmatmul.mubr.msk.bf16.gmra.mrb[12].mxu1 %vm1122_vm13, %v5773_v2 }
  0xd9   : > { %4590 = vmatpush3.bf16.msra.mxu0 %v5928_v38 }
  0xda   : > { %4591 = vmatprep.subr.bf16.mxu0 %v5945_v31 }
  0xdd   : > { %4592 = vmatpush3.bf16.msra.mxu0 %v5952_v0 }
  0xde   : > { %4593 = vmatprep.subr.bf16.mxu0 %v5977_v23 }
  0xe1   : > { %4594 = vmatpush3.bf16.msra.mxu0 %v5982_v58 }
  0xe2   : > { %4595 = vmatprep.subr.bf16.mxu0 %v6001_v40 }
  0xe5   : > { %4596 = vmatpush3.bf16.msra.mxu0 %v6008_v7 }
  0xe6   : > { %4597 = vmatprep.subr.bf16.mxu0 %v6027_v5 }
  0xe9   : > { %4598 = vmatpush3.bf16.msra.mxu0 %v6034_v28 }
  0xea   : > { %4639 = vmatprep.subr.bf16.mxu0 %v5879_v10 }
 0x17b   : > { %v1188_v2 = vpop.f32.mrb[0].mxu0 }
 0x17c   : > { %v1190_v18 = vpop.f32.mrb[1].mxu0  ;;  %v5955_v49 = vadd.f32 %v1188_v2, %v5923_v36  ;;  %v6063_v2 = vld [vmem:[%s7853_s29 + $0x80] sm:$0xff]  }
 0x17d   : > { %v1192_v20 = vpop.f32.mrb[2].mxu0  ;;  %v5931_v39 = vadd.f32 %v1190_v18, %v5923_v36  ;;  %7856 = vst [vmem:[#allocation4_spill] sm:$0xff] %v6063_v2  ;;  %4612 = vmatpush3.bf16.msra.mxu1 %v6063_v2 }
 0x17e   : > { %v1194_v30 = vpop.f32.mrb[3].mxu0  ;;  %v5964_v55 = vadd.f32 %v1192_v20, %v5934_v42 }
 0x17f   : > { %v5996_v63 = vadd.f32 %v1194_v30, %v5934_v42  ;;  %v6080_v30 = vld [vmem:[%s7853_s29 + $0xc8] sm:$0xff]  }
 0x180   : > { %v4838_v60 = vpack.i.bf16 %v5964_v55, %v5955_v49  ;;  %7857 = vst [vmem:[#allocation5_spill] sm:$0xff] %v6080_v30  ;;  %4613 = vmatprep.subr.bf16.mxu1 %v6080_v30 }
 0x183   : > { %v5900_v44 = vpop.f32.mrb[4].mxu0 }
 0x184   : > { %v1200_v21 = vpop.f32.mrb[5].mxu0  ;;  %v6070_v18 = vadd.f32 %v5900_v44, %v6029_v54 }
 0x185   : > { %v5902_v27 = vpop.f32.mrb[6].mxu0  ;;  %v6042_v9 = vadd.f32 %v1200_v21, %v6029_v54  ;;  %v6085_v21 = vld [vmem:[%s7853_s29 + $0x88] sm:$0xff]  }
 0x186   : > { %v5904_v29 = vpop.f32.mrb[7].mxu0  ;;  %v6074_v20 = vadd.f32 %v5902_v27, %v6056_v14  ;;  %7858 = vst [vmem:[#allocation6_spill] sm:$0xff] %v6085_v21  ;;  %4614 = vmatpush3.bf16.msra.mxu1 %v6085_v21 }
 0x191   : > { %v1241_v43 = vpop.f32.mrb[0].mxu1 }
 0x192   : > { %v5938_v24 = vadd.f32 %v1241_v43, %v5923_v36  ;;  %v5940_v26 = vpop.f32.mrb[1].mxu1 }
 0x193   : > { %v1245_v47 = vpop.f32.mrb[2].mxu1  ;;  %v5947_v48 = vpop.f32.mrb[8].mxu0 }
 0x194   : > { %v5957_v50 = vpop.f32.mrb[3].mxu1  ;;  %v5959_v51 = vpop.f32.mrb[9].mxu0  ;;  %v4823_v52 = vpack.i.bf16 %v5938_v24, %v5931_v39  ;;  %v5985_v4 = vadd.f32 %v1245_v47, %v5934_v42  ;;  %v4878_v47 = vpack.i.bf16 %v6074_v20, %v6070_v18  ;;  %v6139_v22 = vadd.f32 %v5947_v48, %v5923_v36 }
 0x195   : > { %v5967_v56 = vpop.f32.mrb[10].mxu0 }
 0x196   : > { %4824 = vrot.lane.b32.xlu1 %v4823_v52, %s5440_s30  ;;  %4819 = vrot.lane.b32.xlu0 %v4823_v52, %s5438_s4  ;;  %v5972_v57 = vpop.f32.mrb[11].mxu0  ;;  %v4848_v37 = vpack.i.bf16 %v5985_v4, %v5996_v63 }
 0x199   : > { %v1251_v53 = vpop.f32.mrb[4].mxu1 }
 0x19a   : > { %v5991_v62 = vpop.f32.mrb[5].mxu1  ;;  %4829 = vrot.lane.b32.xlu0 %v4823_v52, %s7854_s26  ;;  %4839 = vrot.lane.b32.xlu1 %v4838_v60, %s5440_s30  ;;  %v6037_v6 = vadd.f32 %v1251_v53, %v6029_v54  ;;  %v6103_v52 = vld [vmem:[%s7853_s29 + $0xd0] sm:$0xff]  }
 0x19b   : > { %v1255_v1 = vpop.f32.mrb[6].mxu1  ;;  %v6003_v3 = vpop.f32.mrb[12].mxu0  ;;  %7860 = vst [vmem:[#allocation8_spill] sm:$0xff] %v6103_v52  ;;  %v6110_v53 = vld [vmem:[%s7853_s29 + $0x90] sm:$0xff]   ;;  %4615 = vmatprep.subr.bf16.mxu1 %v6103_v52  ;;  %v6150_v52 = vld [vmem:[%s7853_s29 + $0xa0] sm:$0xff]  }
 0x19c   : > { %v6010_v15 = vpop.f32.mrb[7].mxu1  ;;  %v6012_v19 = vpop.f32.mrb[13].mxu0  ;;  %7855 = vst [vmem:[#allocation3_spill] sm:$0xff] %v6037_v6  ;;  %v4863_v12 = vpack.i.bf16 %v6037_v6, %v6042_v9  ;;  %v6093_v27 = vadd.f32 %v1255_v1, %v6056_v14  ;;  %7861 = vst [vmem:[#allocation9_spill] sm:$0xff] %v6110_v53  ;;  %v6114_v1 = vadd.f32 %v5904_v29, %v6056_v14  ;;  %4616 = vmatpush3.bf16.msra.mxu1 %v6110_v53  ;;  %v6132_v29 = vld [vmem:[%s7853_s29 + $0x98] sm:$0xff]   ;;  %v6145_v53 = vld [vmem:[%s7853_s29 + $0xe0] sm:$0xff]  }
 0x19d   : > { %v6017_v45 = vpop.f32.mrb[14].mxu0  ;;  %7863 = vst [vmem:[#allocation11_spill] sm:$0xff] %v6132_v29  ;;  %4617 = vmatprep.subr.bf16.mxu1 %v6127_v11  ;;  %7864 = vst [vmem:[#allocation12_spill] sm:$0xff] %v6145_v53  ;;  %v6168_v11 = vld [vmem:[%s7853_s29 + $0xe8] sm:$0xff]  }
 0x19e   : > { %4849 = vrot.lane.b32.xlu1 %v4848_v37, %s5438_s4  ;;  %4834 = vrot.lane.b32.xlu0 %v4838_v60, %s5438_s4  ;;  %v6022_v13 = vpop.f32.mrb[15].mxu0  ;;  %7859 = vst [vmem:[#allocation7_spill] sm:$0xff] %v6093_v27  ;;  %7865 = vst [vmem:[#allocation13_spill] sm:$0xff] %v6150_v52 }
 0x19f   : > { %7866 = vst [vmem:[#allocation14_spill] sm:$0xff] %v6168_v11 }
 0x1a0   : > { %4618 = vmatpush3.bf16.msra.mxu1 %v6132_v29 }
 0x1a1   : > { %4619 = vmatprep.subr.bf16.mxu1 %v6145_v53  ;;  %v6210_v53 = vadd.f32 %v5957_v50, %v5934_v42 }
 0x1a2   : > { %4859 = vrot.lane.b32.xlu1 %v4848_v37, %s7854_s26  ;;  %4844 = vrot.lane.b32.xlu0 %v4838_v60, %s7854_s26 }
 0x1a3   : > { %v1347_v8 = vpop.f32.mrb[8].mxu1 }
 0x1a4   : > { %v6047_v41 = vpop.f32.mrb[9].mxu1  ;;  %v6160_v48 = vadd.f32 %v1347_v8, %v5923_v36  ;;  %4620 = vmatpush3.bf16.msra.mxu1 %v6150_v52  ;;  %v6188_v52 = vld [vmem:[%s7853_s29 + $0xf0] sm:$0xff]  }
 0x1a5   : > { %v6058_v61 = vpop.f32.mrb[10].mxu1  ;;  %4621 = vmatprep.subr.bf16.mxu1 %v6168_v11  ;;  %7868 = vst [vmem:[#allocation16_spill] sm:$0xff] %v6188_v52  ;;  %v6200_v11 = vadd.f32 %v5967_v56, %v5934_v42  ;;  %v6217_v56 = vld [vmem:[%s7853_s29 + $0xb8] sm:$0xff]   ;;  %v6229_v50 = vadd.f32 %v6047_v41, %v5923_v36  ;;  %v6251_v41 = vadd.f32 %v6003_v3, %v6029_v54 }
 0x1a6   : > { %4864 = vrot.lane.b32.xlu1 %v4863_v12, %s5438_s4  ;;  %4854 = vrot.lane.b32.xlu0 %v4848_v37, %s5440_s30  ;;  %v1353_v10 = vpop.f32.mrb[11].mxu1  ;;  %7872 = vst [vmem:[#allocation20_spill] sm:$0xff] %v6217_v56 }
 0x1a7   : > { %7870 = vst [vmem:[#allocation18_spill] sm:$0xff] %v6200_v11  ;;  %7874 = vst [vmem:[#allocation22_spill] sm:$0xff] %v6251_v41 }
 0x1aa   : > { %4874 = vrot.lane.b32.xlu1 %v4863_v12, %s7854_s26  ;;  %4869 = vrot.lane.b32.xlu0 %v4863_v12, %s5440_s30  ;;  %v4893_v12 = vpack.i.bf16 %v6093_v27, %v6114_v1 }
 0x1ab   : > { %v6089_v44 = vpop.f32.mrb[12].mxu1 }
 0x1ac   : > { %v6095_v43 = vpop.f32.mrb[13].mxu1  ;;  %v6277_v3 = vadd.f32 %v6089_v44, %v6029_v54 }
 0x1ad   : > { %v6105_v60 = vpop.f32.mrb[14].mxu1 }
 0x1ae   : > { %4879 = vrot.lane.b32.xlu1 %v4878_v47, %s5438_s4  ;;  %4884 = vrot.lane.b32.xlu0 %v4878_v47, %s5440_s30  ;;  %v6118_v37 = vpop.f32.mrb[15].mxu1  ;;  %7878 = vst [vmem:[#allocation26_spill] sm:$0xff] %v6277_v3 }
 0x1b2   : > { %4889 = vrot.lane.b32.xlu1 %v4878_v47, %s7854_s26  ;;  %4894 = vrot.lane.b32.xlu0 %v4893_v12, %s5438_s4  ;;  %v6154_v47 = vadd.f32 %v5940_v26, %v5923_v36  ;;  %v6173_v26 = vld [vmem:[%s7853_s29 + $0xa8] sm:$0xff]  }
 0x1b3   : > { %7867 = vst [vmem:[#allocation15_spill] sm:$0xff] %v6173_v26  ;;  %4622 = vmatpush3.bf16.msra.mxu1 %v6173_v26  ;;  %v6206_v26 = vld [vmem:[%s7853_s29 + $0xf8] sm:$0xff]  }
 0x1b4   : > { %v4913_v29 = vpack.i.bf16 %v6139_v22, %v6154_v47  ;;  %4623 = vmatprep.subr.bf16.mxu1 %v6188_v52  ;;  %7871 = vst [vmem:[#allocation19_spill] sm:$0xff] %v6206_v26 }
 0x1b6   : > { %4899 = vrot.lane.b32.xlu1 %v4893_v12, %s5440_s30  ;;  %4904 = vrot.lane.b32.xlu0 %v4893_v12, %s7854_s26  ;;  %v6177_v12 = vadd.f32 %v5959_v51, %v5923_v36  ;;  %v6193_v51 = vld [vmem:[%s7853_s29 + $0xb0] sm:$0xff]  }
 0x1b7   : > { %7869 = vst [vmem:[#allocation17_spill] sm:$0xff] %v6193_v51  ;;  %4624 = vmatpush3.bf16.msra.mxu1 %v6193_v51  ;;  %v4938_v51 = vpack.i.bf16 %v6200_v11, %v6210_v53 }
 0x1b8   : > { %v4923_v8 = vpack.i.bf16 %v6160_v48, %v6177_v12  ;;  %4625 = vmatprep.subr.bf16.mxu1 %v6206_v26 }
 0x1ba   : > { %4914 = vrot.lane.b32.xlu1 %v4913_v29, %s5440_s30  ;;  %4909 = vrot.lane.b32.xlu0 %v4913_v29, %s5438_s4 }
 0x1bb   : > { %4626 = vmatpush3.bf16.msra.mxu1 %v6217_v56  ;;  %v6241_v56 = vadd.f32 %v5972_v57, %v5934_v42 }
 0x1bc   : > { %4667 = vmatprep.subr.bf16.mxu1 %v6054_v46  ;;  %v6255_v46 = vadd.f32 %v5991_v62, %v6029_v54 }
 0x1bd   : > { %7873 = vst [vmem:[#allocation21_spill] sm:$0xff] %v6241_v56 }
 0x1be   : > { %4924 = vrot.lane.b32.xlu1 %v4923_v8, %s5438_s4  ;;  %4919 = vrot.lane.b32.xlu0 %v4913_v29, %s7854_s26  ;;  %v6221_v29 = vadd.f32 %v1353_v10, %v5934_v42  ;;  %7875 = vst [vmem:[#allocation23_spill] sm:$0xff] %v6255_v46  ;;  %v4978_v57 = vpack.i.bf16 %v6251_v41, %v6255_v46 }
 0x1c0   : > { %v4953_v10 = vpack.i.bf16 %v6221_v29, %v6229_v50 }
 0x1c2   : > { %4934 = vrot.lane.b32.xlu1 %v4923_v8, %s7854_s26  ;;  %4929 = vrot.lane.b32.xlu0 %v4923_v8, %s5440_s30  ;;  %v6235_v8 = vadd.f32 %v6058_v61, %v5934_v42  ;;  %v6261_v42 = vadd.f32 %v6017_v45, %v6056_v14  ;;  %v6267_v61 = vadd.f32 %v6010_v15, %v6056_v14 }
 0x1c3   : > { %v6281_v45 = vadd.f32 %v6012_v19, %v6029_v54  ;;  %v6287_v15 = vadd.f32 %v6118_v37, %v6056_v14  ;;  %v6299_v19 = vadd.f32 %v6105_v60, %v6056_v14  ;;  %v6305_v37 = vadd.f32 %v6022_v13, %v6056_v14 }
 0x1c4   : > { %v4958_v36 = vpack.i.bf16 %v6235_v8, %v6241_v56  ;;  %7876 = vst [vmem:[#allocation24_spill] sm:$0xff] %v6261_v42  ;;  %7877 = vst [vmem:[#allocation25_spill] sm:$0xff] %v6267_v61  ;;  %v4993_v62 = vpack.i.bf16 %v6261_v42, %v6267_v61 }
 0x1c5   : > { %7879 = vst [vmem:[#allocation27_spill] sm:$0xff] %v6281_v45  ;;  %7880 = vst [vmem:[#allocation28_spill] sm:$0xff] %v6287_v15 }
 0x1c6   : > { %4939 = vrot.lane.b32.xlu1 %v4938_v51, %s5438_s4  ;;  %4944 = vrot.lane.b32.xlu0 %v4938_v51, %s5440_s30  ;;  %7882 = vst [vmem:[#allocation30_spill] sm:$0xff] %v6299_v19  ;;  %7883 = vst [vmem:[#allocation31_spill] sm:$0xff] %v6305_v37 }
 0x1ca   : > { %4949 = vrot.lane.b32.xlu1 %v4938_v51, %s7854_s26  ;;  %4954 = vrot.lane.b32.xlu0 %v4953_v10, %s5438_s4  ;;  %v5018_v51 = vpack.i.bf16 %v6277_v3, %v6281_v45 }
 0x1ce   : > { %4964 = vrot.lane.b32.xlu1 %v4953_v10, %s5440_s30  ;;  %4959 = vrot.lane.b32.xlu0 %v4958_v36, %s5438_s4 }
 0x1d2   : > { %4969 = vrot.lane.b32.xlu1 %v4958_v36, %s5440_s30  ;;  %4974 = vrot.lane.b32.xlu0 %v4953_v10, %s7854_s26  ;;  %v6293_v10 = vadd.f32 %v6095_v43, %v6029_v54  ;;  %v5028_v54 = vpack.i.bf16 %v6299_v19, %v6305_v37 }
 0x1d4   : > { %7881 = vst [vmem:[#allocation29_spill] sm:$0xff] %v6293_v10  ;;  %v5023_v44 = vpack.i.bf16 %v6287_v15, %v6293_v10 }
 0x1d6   : > { %4979 = vrot.lane.b32.xlu1 %v4978_v57, %s5438_s4  ;;  %4984 = vrot.lane.b32.xlu0 %v4978_v57, %s5440_s30 }
 0x1da   : > { %4989 = vrot.lane.b32.xlu1 %v4978_v57, %s7854_s26  ;;  %4994 = vrot.lane.b32.xlu0 %v4993_v62, %s5438_s4 }
 0x1de   : > { %4999 = vrot.lane.b32.xlu1 %v4993_v62, %s5440_s30  ;;  %5004 = vrot.lane.b32.xlu0 %v4993_v62, %s7854_s26 }
 0x1e2   : > { %5019 = vrot.lane.b32.xlu1 %v5018_v51, %s5440_s30  ;;  %5009 = vrot.lane.b32.xlu0 %v4958_v36, %s7854_s26 }
 0x1e6   : > { %5024 = vrot.lane.b32.xlu1 %v5023_v44, %s5438_s4  ;;  %5014 = vrot.lane.b32.xlu0 %v5018_v51, %s5438_s4 }
 0x1ea   : > { %5029 = vrot.lane.b32.xlu1 %v5028_v54, %s5438_s4  ;;  %5034 = vrot.lane.b32.xlu0 %v5023_v44, %s5440_s30 }
 0x1ee   : > { %5049 = vrot.lane.b32.xlu1 %v5023_v44, %s7854_s26  ;;  %5039 = vrot.lane.b32.xlu0 %v5028_v54, %s5440_s30  ;;  %s7927_s30 = smov 1  }
 0x1f2   : > { %5054 = vrot.lane.b32.xlu1 %v5028_v54, %s7854_s26  ;;  %5044 = vrot.lane.b32.xlu0 %v5018_v51, %s7854_s26 }
 0x208   : > { %v6317_v13 = vpop.permute.xlu1 %4824  ;;  %v6319_v14 = vpop.permute.xlu0 %4819 }
 0x209   : > { %v7830_v36 = vunpack.i.h.bf16 %v6319_v14  ;;  %v4821_v57 = vunpack.i.l.bf16 %v6319_v14  ;;  %v4826_v41 = vunpack.i.l.bf16 %v6317_v13  ;;  %v7885_v21 = vunpack.i.h.bf16 %v6317_v13 }
 0x20b   : > { %v1463_v54 = vsel %vm921_vm8, %v4821_v57, %v7830_v36  ;;  %v1655_v27 = vsel %vm970_vm6, %v4826_v41, %v7885_v21 }
 0x20c   : > { %v6321_v43 = vpop.permute.xlu0 %4829  ;;  %v4840_v60 = vpop.permute.xlu1 %4839  ;;  %v1559_v15 = vmax.f32 %v5931_v39, %v1463_v54 }
 0x20d   : > { %v4841_v45 = vunpack.i.l.bf16 %v4840_v60  ;;  %v4831_v51 = vunpack.i.l.bf16 %v6321_v43  ;;  %v4842_v46 = vunpack.i.h.bf16 %v4840_v60 }
 0x20e   : > { %v1751_v6 = vmax.f32 %v1559_v15, %v1655_v27 }
 0x20f   : > { %v1654_v39 = vsel %vm970_vm6, %v4841_v45, %v4826_v41 }
 0x210   : > { %v6325_v62 = vpop.permute.xlu1 %4849  ;;  %v4835_v44 = vpop.permute.xlu0 %4834 }
 0x211   : > { %v4836_v19 = vunpack.i.l.bf16 %v4835_v44  ;;  %v4851_v26 = vunpack.i.l.bf16 %v6325_v62  ;;  %v4837_v52 = vunpack.i.h.bf16 %v4835_v44  ;;  %v7884_v44 = vunpack.i.h.bf16 %v6325_v62 }
 0x213   : > { %v1462_v37 = vsel %vm921_vm8, %v4836_v19, %v4821_v57  ;;  %v1470_v19 = vsel %vm921_vm8, %v4851_v26, %v7884_v44  ;;  %v1469_v57 = vsel %vm921_vm8, %v4837_v52, %v4851_v26 }
 0x214   : > { %v6335_v3 = vpop.permute.xlu1 %4859  ;;  %v4845_v10 = vpop.permute.xlu0 %4844  ;;  %v1558_v36 = vmax.f32 %v5955_v49, %v1462_v37  ;;  %v1567_v26 = vmax.f32 %v5996_v63, %v1470_v19  ;;  %v1566_v21 = vmax.f32 %v5964_v55, %v1469_v57 }
 0x215   : > { %v4846_v42 = vunpack.i.l.bf16 %v4845_v10  ;;  %v4861_v37 = vunpack.i.l.bf16 %v6335_v3  ;;  %v4847_v30 = vunpack.i.h.bf16 %v4845_v10  ;;  %v7886_v10 = vunpack.i.h.bf16 %v6321_v43 }
 0x216   : > { %v1750_v60 = vmax.f32 %v1558_v36, %v1654_v39 }
 0x217   : > { %v1846_v41 = vsel %vm1019_vm11, %v4846_v42, %v4831_v51  ;;  %v1847_v2 = vsel %vm1019_vm11, %v4831_v51, %v7886_v10  ;;  %v1853_v27 = vsel %vm1019_vm11, %v4847_v30, %v4861_v37  ;;  %v7887_v42 = vunpack.i.h.bf16 %v6335_v3 }
 0x218   : > { %v6350_v61 = vpop.permute.xlu1 %4864  ;;  %v6352_v49 = vpop.permute.xlu0 %4854  ;;  %v1942_v15 = vmax.f32 %v1750_v60, %v1846_v41  ;;  %v1943_v19 = vmax.f32 %v1751_v6, %v1847_v2 }
 0x219   : > { %v7839_v44 = vunpack.i.h.bf16 %v6352_v49  ;;  %v4856_v52 = vunpack.i.l.bf16 %v6352_v49  ;;  %v7842_v39 = vunpack.i.h.bf16 %v6350_v61  ;;  %v4866_v51 = vunpack.i.l.bf16 %v6350_v61 }
 0x21b   : > { %v1661_v45 = vsel %vm970_vm6, %v4842_v46, %v4856_v52  ;;  %v1662_v54 = vsel %vm970_vm6, %v4856_v52, %v7839_v44  ;;  %v1854_v46 = vsel %vm1019_vm11, %v4861_v37, %v7887_v42  ;;  %v1477_v30 = vsel %vm921_vm8, %v4866_v51, %v7842_v39 }
 0x21c   : > { %v1758_v56 = vmax.f32 %v1566_v21, %v1661_v45  ;;  %v6367_v11 = vpop.permute.xlu1 %4874  ;;  %v6369_v63 = vpop.permute.xlu0 %4869  ;;  %v1759_v55 = vmax.f32 %v1567_v26, %v1662_v54 }
 0x21d   : > { %v7840_v54 = vunpack.i.h.bf16 %v6369_v63 }
 0x21e   : > { %v1950_v36 = vmax.f32 %v1758_v56, %v1853_v27  ;;  %v1951_v57 = vmax.f32 %v1759_v55, %v1854_v46  ;;  %v4871_v56 = vunpack.i.l.bf16 %v6369_v63  ;;  %v1575_v27 = vmax.f32 %v6042_v9, %v1477_v30 }
 0x220   : > { %v4880_v52 = vpop.permute.xlu1 %4879  ;;  %v4885_v21 = vpop.permute.xlu0 %4884  ;;  %v2039_v45 = vpack.c.bf16 %v1951_v57, %v1943_v19  ;;  %v2038_v10 = vpack.c.bf16 %v1950_v36, %v1942_v15  ;;  %v4877_v36 = vunpack.i.h.bf16 %v6367_v11  ;;  %v4876_v19 = vunpack.i.l.bf16 %v6367_v11 }
 0x221   : > { %v4881_v44 = vunpack.i.l.bf16 %v4880_v52  ;;  %v4886_v2 = vunpack.i.l.bf16 %v4885_v21  ;;  %v4882_v60 = vunpack.i.h.bf16 %v4880_v52 }
 0x222   : > { %2270 = vmatprep.mubr.bf16.mxu0 %v2039_v45 }
 0x223   : > { %v1476_v6 = vsel %vm921_vm8, %v4881_v44, %v4866_v51  ;;  %2271 = vmatmul.mubr.bf16.vlgmr.msra.gmra.mrb[16].mxu0 %v2038_v10  ;;  %v1669_v44 = vsel %vm970_vm6, %v4871_v56, %v7840_v54  ;;  %v1668_v9 = vsel %vm970_vm6, %v4886_v2, %v4871_v56 }
 0x224   : > { %v4890_v37 = vpop.permute.xlu1 %4889  ;;  %v6383_v26 = vpop.permute.xlu0 %4894  ;;  %4640 = vmatpush3.bf16.msra.mxu0 %v5884_v16  ;;  %v1574_v42 = vmax.f32 %v6070_v18, %v1476_v6  ;;  %v1767_v56 = vmax.f32 %v1575_v27, %v1669_v44 }
 0x225   : > { %v7841_v41 = vunpack.i.h.bf16 %v6383_v26  ;;  %v4896_v55 = vunpack.i.l.bf16 %v6383_v26  ;;  %4641 = vmatprep.subr.bf16.mxu0 %v5889_v17  ;;  %v4891_v46 = vunpack.i.l.bf16 %v4890_v37  ;;  %v4887_v17 = vunpack.i.h.bf16 %v4885_v21 }
 0x226   : > { %v1766_v6 = vmax.f32 %v1574_v42, %v1668_v9  ;;  %v4892_v2 = vunpack.i.h.bf16 %v4890_v37 }
 0x227   : > { %v1483_v15 = vsel %vm921_vm8, %v4882_v60, %v4896_v55  ;;  %v1484_v16 = vsel %vm921_vm8, %v4896_v55, %v7841_v41  ;;  %v1860_v55 = vsel %vm1019_vm11, %v4891_v46, %v4876_v19 }
 0x228   : > { %v6401_v57 = vpop.permute.xlu1 %4899  ;;  %v6403_v18 = vpop.permute.xlu0 %4904  ;;  %4642 = vmatpush3.bf16.msra.mxu0 %v5896_v25  ;;  %v1582_v21 = vmax.f32 %v6074_v20, %v1483_v15  ;;  %v1583_v30 = vmax.f32 %v6114_v1, %v1484_v16  ;;  %v1958_v15 = vmax.f32 %v1766_v6, %v1860_v55  ;;  %v7889_v6 = vunpack.i.h.bf16 %v6317_v13 }
 0x229   : > { %v4902_v51 = vunpack.i.h.bf16 %v6401_v57  ;;  %v4901_v52 = vunpack.i.l.bf16 %v6401_v57  ;;  %v4907_v45 = vunpack.i.h.bf16 %v6403_v18  ;;  %v4906_v10 = vunpack.i.l.bf16 %v6403_v18  ;;  %4643 = vmatprep.subr.bf16.mxu0 %v5909_v33 }
 0x22a   : > { %v1861_v33 = vsel %vm1019_vm11, %v4876_v19, %v4877_v36 }
 0x22b   : > { %v1675_v60 = vsel %vm970_vm6, %v4887_v17, %v4901_v52  ;;  %v1676_v25 = vsel %vm970_vm6, %v4901_v52, %v4902_v51  ;;  %v1868_v27 = vsel %vm1019_vm11, %v4906_v10, %v4907_v45  ;;  %v1867_v42 = vsel %vm1019_vm11, %v4892_v2, %v4906_v10 }
 0x22c   : > { %v4915_v54 = vpop.permute.xlu1 %4914  ;;  %v4910_v41 = vpop.permute.xlu0 %4909  ;;  %v1775_v39 = vmax.f32 %v1583_v30, %v1676_v25  ;;  %v1774_v20 = vmax.f32 %v1582_v21, %v1675_v60  ;;  %4644 = vmatpush3.bf16.msra.mxu0 %v5914_v34  ;;  %v1959_v44 = vmax.f32 %v1767_v56, %v1861_v33  ;;  %v7888_v17 = vunpack.i.h.bf16 %v6319_v14 }
 0x22d   : > { %v4912_v1 = vunpack.i.h.bf16 %v4910_v41  ;;  %v4911_v37 = vunpack.i.l.bf16 %v4910_v41  ;;  %4645 = vmatprep.subr.bf16.mxu0 %v5921_v35  ;;  %v4917_v9 = vunpack.i.h.bf16 %v4915_v54  ;;  %v4916_v41 = vunpack.i.l.bf16 %v4915_v54 }
 0x22e   : > { %v1967_v46 = vmax.f32 %v1775_v39, %v1868_v27  ;;  %v1966_v16 = vmax.f32 %v1774_v20, %v1867_v42 }
 0x22f   : > { %v1464_v19 = vsel %vm921_vm8, %v7888_v17, %v4911_v37  ;;  %v1465_v34 = vsel %vm921_vm8, %v4911_v37, %v4912_v1  ;;  %v1656_v2 = vsel %vm970_vm6, %v7889_v6, %v4916_v41 }
 0x230   : > { %v6431_v52 = vpop.permute.xlu1 %4924  ;;  %v4920_v21 = vpop.permute.xlu0 %4919  ;;  %v2043_v30 = vpack.c.bf16 %v1967_v46, %v1959_v44  ;;  %v2042_v60 = vpack.c.bf16 %v1966_v16, %v1958_v15  ;;  %4646 = vmatpush3.bf16.msra.mxu0 %v5928_v38  ;;  %v1529_v35 = vsel %vm941_vm5, %v1465_v34, -inf  ;;  %v1560_v56 = vmax.f32 %v5938_v24, %v1464_v19 }
 0x231   : > { %v4926_v39 = vunpack.i.l.bf16 %v6431_v52  ;;  %v4922_v10 = vunpack.i.h.bf16 %v4920_v21  ;;  %v4921_v14 = vunpack.i.l.bf16 %v4920_v21  ;;  %4647 = vmatprep.subr.bf16.mxu0 %v5945_v31  ;;  %v4927_v54 = vunpack.i.h.bf16 %v6431_v52 }
 0x232   : > { %2278 = vmatprep.mubr.bf16.mxu0 %v2043_v30  ;;  %v1657_v38 = vsel %vm970_vm6, %v4916_v41, %v4917_v9  ;;  %v1561_v33 = vmax.f32 %v6154_v47, %v1529_v35  ;;  %v6455_v37 = vmax.f32 %v1560_v56, %v1656_v2  ;;  %v7890_v44 = vunpack.i.h.bf16 %v6321_v43 }
 0x233   : > { %2279 = vmatmul.mubr.bf16.gmra.mrb[20].mxu0 %v2042_v60  ;;  %v1466_v24 = vsel %vm921_vm8, %v4912_v1, %v4926_v39  ;;  %v1849_v13 = vsel %vm1019_vm11, %v4921_v14, %v4922_v10  ;;  %v1467_v27 = vsel %vm921_vm8, %v4926_v39, %v4927_v54  ;;  %v7891_v60 = vunpack.i.h.bf16 %v6325_v62 }
 0x234   : > { %v6444_v25 = vpop.permute.xlu1 %4934  ;;  %v6446_v55 = vpop.permute.xlu0 %4929  ;;  %4648 = vmatpush3.bf16.msra.mxu0 %v5952_v0  ;;  %v1721_v0 = vsel %vm990_vm7, %v1657_v38, -inf  ;;  %v1562_v1 = vmax.f32 %v6139_v22, %v1466_v24  ;;  %v6466_v46 = vsel %vm1019_vm11, %v7890_v44, %v4921_v14  ;;  %v6476_v17 = vsel %vm1039_vm14, %v1849_v13, -inf }
 0x235   : > { %v4932_v31 = vunpack.i.h.bf16 %v6446_v55  ;;  %v4931_v20 = vunpack.i.l.bf16 %v6446_v55  ;;  %4649 = vmatprep.subr.bf16.mxu0 %v5977_v23  ;;  %v4936_v42 = vunpack.i.l.bf16 %v6444_v25  ;;  %v6472_v16 = vmax.f32 %v1561_v33, %v1721_v0 }
 0x236   : > { %v4937_v41 = vunpack.i.h.bf16 %v6444_v25  ;;  %v1944_v21 = vmax.f32 %v6455_v37, %v6466_v46  ;;  %v7892_v39 = vunpack.i.h.bf16 %v6352_v49  ;;  %v7893_v13 = vunpack.i.h.bf16 %v6335_v3 }
 0x237   : > { %v1658_v47 = vsel %vm970_vm6, %v4917_v9, %v4931_v20  ;;  %v1659_v22 = vsel %vm970_vm6, %v4931_v20, %v4932_v31  ;;  %v1563_v9 = vmax.f32 %v6177_v12, %v1467_v27  ;;  %v6494_v30 = vsel %vm1019_vm11, %v4922_v10, %v4936_v42 }
 0x238   : > { %v6468_v15 = vpop.permute.xlu1 %4939  ;;  %v6470_v23 = vpop.permute.xlu0 %4944  ;;  %4650 = vmatpush3.bf16.msra.mxu0 %v5982_v58  ;;  %v6488_v52 = vmax.f32 %v1562_v1, %v1658_v47  ;;  %v1945_v10 = vmax.f32 %v6472_v16, %v6476_v17 }
 0x239   : > { %v4942_v43 = vunpack.i.h.bf16 %v6468_v15  ;;  %v4941_v19 = vunpack.i.l.bf16 %v6468_v15  ;;  %v4946_v34 = vunpack.i.l.bf16 %v6470_v23  ;;  %4651 = vmatprep.subr.bf16.mxu0 %v6001_v40  ;;  %v4947_v58 = vunpack.i.h.bf16 %v6470_v23 }
 0x23a   : > { %v6511_v62 = vmax.f32 %v1563_v9, %v1659_v22  ;;  %v1946_v49 = vmax.f32 %v6488_v52, %v6494_v30 }
 0x23b   : > { %v1471_v35 = vsel %vm921_vm8, %v7891_v60, %v4941_v19  ;;  %v1472_v40 = vsel %vm921_vm8, %v4941_v19, %v4942_v43  ;;  %v1663_v14 = vsel %vm970_vm6, %v7892_v39, %v4946_v34  ;;  %v1664_v24 = vsel %vm970_vm6, %v4946_v34, %v4947_v58 }
 0x23c   : > { %v1568_v12 = vmax.f32 %v5985_v4, %v1471_v35  ;;  %v6506_v56 = vpop.permute.xlu1 %4949  ;;  %v4955_v6 = vpop.permute.xlu0 %4954  ;;  %4652 = vmatpush3.bf16.msra.mxu0 %v6008_v7  ;;  %v1537_v2 = vsel %vm941_vm5, %v1472_v40, -inf  ;;  %v6525_v7 = vsel %vm1019_vm11, %v4936_v42, %v4937_v41  ;;  %v1729_v40 = vsel %vm990_vm7, %v1664_v24, -inf }
 0x23d   : > { %v4951_v38 = vunpack.i.l.bf16 %v6506_v56  ;;  %v4957_v4 = vunpack.i.h.bf16 %v4955_v6  ;;  %v4956_v33 = vunpack.i.l.bf16 %v4955_v6  ;;  %4653 = vmatprep.subr.bf16.mxu0 %v6027_v5  ;;  %v4952_v0 = vunpack.i.h.bf16 %v6506_v56 }
 0x23e   : > { %v1760_v20 = vmax.f32 %v1568_v12, %v1663_v14  ;;  %v1569_v42 = vmax.f32 %v6210_v53, %v1537_v2  ;;  %v1947_v3 = vmax.f32 %v6511_v62, %v6525_v7 }
 0x23f   : > { %v1855_v37 = vsel %vm1019_vm11, %v7893_v13, %v4951_v38  ;;  %v1523_v27 = vsel %vm921_vm8, %v4957_v4, -inf  ;;  %v1468_v5 = vsel %vm921_vm8, %v4927_v54, %v4956_v33  ;;  %v1522_v47 = vsel %vm921_vm8, %v4956_v33, -inf }
 0x240   : > { %v1541_v1 = vsel %vm945_vm0, %v1523_v27, -inf  ;;  %v4965_v44 = vpop.permute.xlu1 %4964  ;;  %v4960_v46 = vpop.permute.xlu0 %4959  ;;  %4654 = vmatpush3.bf16.msra.mxu0 %v6034_v28  ;;  %v1952_v22 = vmax.f32 %v1760_v20, %v1855_v37  ;;  %v1533_v54 = vsel %vm945_vm0, %v1522_v47, -inf  ;;  %v1564_v9 = vmax.f32 %v6160_v48, %v1468_v5 }
 0x241   : > { %v4967_v19 = vunpack.i.h.bf16 %v4965_v44  ;;  %v4966_v34 = vunpack.i.l.bf16 %v4965_v44  ;;  %v4962_v60 = vunpack.i.h.bf16 %v4960_v46  ;;  %v4961_v35 = vunpack.i.l.bf16 %v4960_v46 }
 0x242   : > { %v1573_v53 = vmax.f32 %v6221_v29, %v1541_v1  ;;  %v1565_v14 = vmax.f32 %v6229_v50, %v1533_v54  ;;  %v1761_v33 = vmax.f32 %v1569_v42, %v1729_v40  ;;  %v1856_v29 = vsel %vm1019_vm11, %v4951_v38, %v4952_v0  ;;  %v7894_v42 = vld [vmem:[#allocation18_spill] sm:$0xff]  ;;  %v7895_v54 = vld [vmem:[#allocation21_spill] sm:$0xff] }
 0x243   : > { %v1715_v28 = vsel %vm970_vm6, %v4967_v19, -inf  ;;  %v1660_v12 = vsel %vm970_vm6, %v4932_v31, %v4966_v34  ;;  %v1714_v39 = vsel %vm970_vm6, %v4966_v34, -inf  ;;  %v2040_v24 = vpack.c.bf16 %v1952_v22, %v1944_v21 }
 0x244   : > { %v1725_v48 = vsel %vm994_vm15, %v1714_v39, -inf  ;;  %v4970_v6 = vpop.permute.xlu1 %4969  ;;  %v6554_v2 = vpop.permute.xlu0 %4974  ;;  %v1733_v55 = vsel %vm994_vm15, %v1715_v28, -inf  ;;  %v6561_v31 = vmax.f32 %v1564_v9, %v1660_v12  ;;  %v1475_v20 = vsel %vm921_vm8, %v4962_v60, %v4957_v4 }
 0x245   : > { %v6564_v50 = vmax.f32 %v1565_v14, %v1725_v48  ;;  %v1473_v13 = vsel %vm921_vm8, %v4942_v43, %v4961_v35  ;;  %v1474_v37 = vsel %vm921_vm8, %v4961_v35, %v4962_v60  ;;  %v4972_v27 = vunpack.i.h.bf16 %v4970_v6 }
 0x246   : > { %v4971_v5 = vunpack.i.l.bf16 %v4970_v6  ;;  %v4977_v38 = vunpack.i.h.bf16 %v6554_v2  ;;  %v4976_v21 = vunpack.i.l.bf16 %v6554_v2  ;;  %v1921_v47 = vsel %vm1039_vm14, %v1856_v29, -inf }
 0x247   : > { %v6574_v1 = vmax.f32 %v1573_v53, %v1733_v55  ;;  %v1572_v4 = vmax.f32 %v6235_v8, %v1475_v20  ;;  %v1667_v44 = vsel %vm970_vm6, %v4972_v27, %v4967_v19  ;;  %v1953_v15 = vmax.f32 %v1761_v33, %v1921_v47  ;;  %v7899_v47 = vld [vmem:[#allocation3_spill] sm:$0xff] }
 0x248   : > { %v6578_v46 = vpop.permute.xlu1 %4979  ;;  %v6580_v43 = vpop.permute.xlu0 %4984  ;;  %v1570_v22 = vmax.f32 %v7894_v42, %v1473_v13  ;;  %v1571_v34 = vmax.f32 %v7895_v54, %v1474_v37  ;;  %v1665_v9 = vsel %vm970_vm6, %v4947_v58, %v4971_v5  ;;  %v1907_v60 = vsel %vm1019_vm11, %v4977_v38, -inf  ;;  %v7897_v37 = vld [vmem:[#allocation4_spill] sm:$0xff] }
 0x249   : > { %v1666_v8 = vsel %vm970_vm6, %v4971_v5, %v4972_v27  ;;  %v6591_v19 = vmax.f32 %v1572_v4, %v1667_v44  ;;  %v6596_v35 = vsel %vm1019_vm11, %v4937_v41, %v4976_v21  ;;  %v1906_v40 = vsel %vm1019_vm11, %v4976_v21, -inf  ;;  %v7900_v44 = vld [vmem:[#allocation5_spill] sm:$0xff] }
 0x24a   : > { %v6599_v53 = vmax.f32 %v1570_v22, %v1665_v9  ;;  %v6603_v23 = vsel %vm1043_vm3, %v1907_v60, -inf  ;;  %v2041_v58 = vpack.c.bf16 %v1953_v15, %v1945_v10  ;;  %v4982_v28 = vunpack.i.h.bf16 %v6578_v46 }
 0x24b   : > { %v6611_v25 = vsel %vm1043_vm3, %v1906_v40, -inf  ;;  %v4981_v41 = vunpack.i.l.bf16 %v6578_v46  ;;  %v4987_v12 = vunpack.i.h.bf16 %v6580_v43  ;;  %v4986_v39 = vunpack.i.l.bf16 %v6580_v43 }
 0x24c   : > { %v6616_v14 = vpop.permute.xlu1 %4989  ;;  %v6618_v48 = vpop.permute.xlu0 %4994  ;;  %v1948_v16 = vmax.f32 %v6561_v31, %v6596_v35  ;;  %2319 = vmatprep.mubr.bf16.mxu1 %v2041_v58  ;;  %v7896_v33 = vunpack.i.h.bf16 %v6350_v61  ;;  %v7898_v5 = vunpack.i.h.bf16 %v6383_v26  ;;  %v6642_v21 = vmax.f32 %v1571_v34, %v1666_v8  ;;  %v7901_v26 = vld [vmem:[#allocation23_spill] sm:$0xff] }
 0x24d   : > { %v4992_v17 = vunpack.i.h.bf16 %v6616_v14  ;;  %v4997_v10 = vunpack.i.h.bf16 %v6618_v48  ;;  %v4996_v6 = vunpack.i.l.bf16 %v6618_v48  ;;  %2320 = vmatmul.mubr.bf16.vlgmr.msra.gmra.mrb[16].mxu1 %v2040_v24  ;;  %v1479_v55 = vsel %vm921_vm8, %v4981_v41, %v4982_v28 }
 0x24e   : > { %v1478_v29 = vsel %vm921_vm8, %v7896_v33, %v4981_v41  ;;  %v1671_v20 = vsel %vm970_vm6, %v4986_v39, %v4987_v12  ;;  %v4991_v13 = vunpack.i.l.bf16 %v6616_v14  ;;  %4668 = vmatpush3.bf16.msra.mxu1 %v7897_v37  ;;  %v1545_v27 = vsel %vm941_vm5, %v1479_v55, -inf  ;;  %v7903_v41 = vld [vmem:[#allocation7_spill] sm:$0xff]  ;;  %v7904_v55 = vld [vmem:[#allocation6_spill] sm:$0xff] }
 0x24f   : > { %v1485_v24 = vsel %vm921_vm8, %v7898_v5, %v4996_v6  ;;  %v1486_v61 = vsel %vm921_vm8, %v4996_v6, %v4997_v10  ;;  %v1576_v4 = vmax.f32 %v7899_v47, %v1478_v29  ;;  %4669 = vmatprep.subr.bf16.mxu1 %v7900_v44  ;;  %v1577_v22 = vmax.f32 %v7901_v26, %v1545_v27  ;;  %v7905_v27 = vld [vmem:[#allocation8_spill] sm:$0xff] }
 0x250   : > { %v1553_v15 = vsel %vm941_vm5, %v1486_v61, -inf  ;;  %v6648_v43 = vpop.permute.xlu1 %4999  ;;  %v6650_v42 = vpop.permute.xlu0 %5004  ;;  %v1737_v54 = vsel %vm990_vm7, %v1671_v20, -inf  ;;  %v7902_v40 = vunpack.i.h.bf16 %v6369_v63  ;;  %v1584_v6 = vmax.f32 %v7903_v41, %v1485_v24  ;;  %v7906_v61 = vld [vmem:[#allocation25_spill] sm:$0xff] }
 0x251   : > { %v5002_v9 = vunpack.i.h.bf16 %v6648_v43  ;;  %v5001_v34 = vunpack.i.l.bf16 %v6648_v43  ;;  %v5007_v60 = vunpack.i.h.bf16 %v6650_v42  ;;  %v5006_v8 = vunpack.i.l.bf16 %v6650_v42 }
 0x252   : > { %v1670_v58 = vsel %vm970_vm6, %v7902_v40, %v4986_v39  ;;  %v1769_v33 = vmax.f32 %v1577_v22, %v1737_v54  ;;  %v1863_v29 = vsel %vm1019_vm11, %v4991_v13, %v4992_v17  ;;  %4670 = vmatpush3.bf16.msra.mxu1 %v7904_v55  ;;  %v1585_v57 = vmax.f32 %v7906_v61, %v1553_v15  ;;  %v7907_v55 = vld [vmem:[#allocation9_spill] sm:$0xff] }
 0x253   : > { %v1677_v20 = vsel %vm970_vm6, %v4902_v51, %v5001_v34  ;;  %v1678_v37 = vsel %vm970_vm6, %v5001_v34, %v5002_v9  ;;  %v1870_v63 = vsel %vm1019_vm11, %v5006_v8, %v5007_v60  ;;  %v1929_v39 = vsel %vm1039_vm14, %v1863_v29, -inf  ;;  %4671 = vmatprep.subr.bf16.mxu1 %v7905_v27 }
 0x254   : > { %v6679_v5 = vpop.permute.xlu1 %5019  ;;  %v5010_v24 = vpop.permute.xlu0 %5009  ;;  %v1745_v51 = vsel %vm990_vm7, %v1678_v37, -inf  ;;  %v1937_v47 = vsel %vm1039_vm14, %v1870_v63, -inf  ;;  %v1768_v44 = vmax.f32 %v1576_v4, %v1670_v58  ;;  %v1961_v41 = vmax.f32 %v1769_v33, %v1929_v39  ;;  %v7909_v37 = vld [vmem:[#allocation11_spill] sm:$0xff] }
 0x255   : > { %v5022_v26 = vunpack.i.h.bf16 %v6679_v5  ;;  %v5021_v22 = vunpack.i.l.bf16 %v6679_v5  ;;  %v5012_v54 = vunpack.i.h.bf16 %v5010_v24  ;;  %v5011_v34 = vunpack.i.l.bf16 %v5010_v24  ;;  %v7910_v24 = vld [vmem:[#allocation12_spill] sm:$0xff] }
 0x256   : > { %v1777_v40 = vmax.f32 %v1585_v57, %v1745_v51  ;;  %v1776_v29 = vmax.f32 %v1584_v6, %v1677_v20  ;;  %v1862_v15 = vsel %vm1019_vm11, %v4877_v36, %v4991_v13  ;;  %4672 = vmatpush3.bf16.msra.mxu1 %v7907_v55  ;;  %v1869_v58 = vsel %vm1019_vm11, %v4907_v45, %v5006_v8  ;;  %v7908_v6 = vld [vmem:[#allocation10_spill] sm:$0xff] }
 0x257   : > { %v1857_v32 = vsel %vm1019_vm11, %v4952_v0, %v5011_v34  ;;  %v6698_v4 = vsel %vm1019_vm11, %v5012_v54, %v4977_v38  ;;  %v1949_v11 = vmax.f32 %v6564_v50, %v6611_v25  ;;  %4673 = vmatprep.subr.bf16.mxu1 %v7908_v6  ;;  %v6707_v36 = vsel %vm970_vm6, %v4987_v12, %v5021_v22 }
 0x258   : > { %v1673_v56 = vsel %vm970_vm6, %v5021_v22, %v5022_v26  ;;  %v1954_v0 = vmax.f32 %v6599_v53, %v1857_v32  ;;  %v5025_v2 = vpop.permute.xlu1 %5024  ;;  %v5015_v38 = vpop.permute.xlu0 %5014  ;;  %v1969_v13 = vmax.f32 %v1777_v40, %v1937_v47  ;;  %v1956_v50 = vmax.f32 %v6591_v19, %v6698_v4  ;;  %v7911_v47 = vld [vmem:[#allocation28_spill] sm:$0xff]  ;;  %v7912_v22 = vld [vmem:[#allocation29_spill] sm:$0xff] }
 0x259   : > { %v5027_v18 = vunpack.i.h.bf16 %v5025_v2  ;;  %v5026_v33 = vunpack.i.l.bf16 %v5025_v2  ;;  %v5017_v45 = vunpack.i.h.bf16 %v5015_v38  ;;  %v5016_v8 = vunpack.i.l.bf16 %v5015_v38 }
 0x25a   : > { %v6718_v25 = vpack.c.bf16 %v1954_v0, %v1946_v49  ;;  %v2045_v12 = vpack.c.bf16 %v1969_v13, %v1961_v41  ;;  %v1960_v20 = vmax.f32 %v1768_v44, %v1862_v15  ;;  %4674 = vmatpush3.bf16.msra.mxu1 %v7909_v37  ;;  %v1968_v27 = vmax.f32 %v1776_v29, %v1869_v58  ;;  %v7913_v41 = vld [vmem:[#allocation26_spill] sm:$0xff]  ;;  %v7914_v15 = vld [vmem:[#allocation27_spill] sm:$0xff] }
 0x25b   : > { %v1525_v53 = vsel %vm921_vm8, %v5027_v18, -inf  ;;  %v1524_v63 = vsel %vm921_vm8, %v5026_v33, -inf  ;;  %v6724_v39 = vsel %vm921_vm8, %v5017_v45, %v5026_v33  ;;  %4675 = vmatprep.subr.bf16.mxu1 %v7910_v24  ;;  %v6734_v30 = vsel %vm921_vm8, %v4982_v28, %v5016_v8  ;;  %v7915_v28 = vld [vmem:[#allocation13_spill] sm:$0xff]  ;;  %v7916_v0 = vld [vmem:[#allocation22_spill] sm:$0xff] }
 0x25c   : > { %v1557_v61 = vsel %vm945_vm0, %v1525_v53, -inf  ;;  %v1549_v52 = vsel %vm945_vm0, %v1524_v63, -inf  ;;  %v1481_v49 = vsel %vm921_vm8, %v5016_v8, %v5017_v45  ;;  %2327 = vmatprep.mubr.bf16.mxu1 %v2045_v12  ;;  %v5030_v57 = vpop.permute.xlu1 %5029  ;;  %v5035_v51 = vpop.permute.xlu0 %5034  ;;  %v1580_v29 = vmax.f32 %v7913_v41, %v6724_v39  ;;  %v7917_v45 = vld [vmem:[#allocation14_spill] sm:$0xff] }
 0x25d   : > { %v1589_v44 = vmax.f32 %v7911_v47, %v1557_v61  ;;  %v1581_v40 = vmax.f32 %v7912_v22, %v1549_v52  ;;  %v1579_v55 = vmax.f32 %v7914_v15, %v1481_v49  ;;  %v5032_v32 = vunpack.i.h.bf16 %v5030_v57 }
 0x25e   : > { %v5031_v58 = vunpack.i.l.bf16 %v5030_v57  ;;  %v5037_v46 = vunpack.i.h.bf16 %v5035_v51  ;;  %v5036_v6 = vunpack.i.l.bf16 %v5035_v51  ;;  %4676 = vmatpush3.bf16.msra.mxu1 %v7915_v28  ;;  %v1578_v2 = vmax.f32 %v7916_v0, %v6734_v30 }
 0x25f   : > { %v2044_v38 = vpack.c.bf16 %v1968_v27, %v1960_v20  ;;  %v1858_v13 = vsel %vm1019_vm11, %v5011_v34, %v5012_v54  ;;  %v1957_v33 = vmax.f32 %v6574_v1, %v6603_v23  ;;  %4677 = vmatprep.subr.bf16.mxu1 %v7917_v45  ;;  %v1771_v24 = vmax.f32 %v1579_v55, %v1673_v56  ;;  %v7918_v54 = vld [vmem:[#allocation24_spill] sm:$0xff]  ;;  %v7919_v27 = vld [vmem:[#allocation31_spill] sm:$0xff] }
 0x260   : > { %v1487_v8 = vsel %vm921_vm8, %v4997_v10, %v5031_v58  ;;  %v1488_v12 = vsel %vm921_vm8, %v5031_v58, %v5032_v32  ;;  %v1717_v37 = vsel %vm970_vm6, %v5037_v46, -inf  ;;  %v6754_v53 = vpop.permute.xlu1 %5049  ;;  %v5040_v63 = vpop.permute.xlu0 %5039  ;;  %v1489_v20 = vsel %vm921_vm8, %v5032_v32, %v5027_v18  ;;  %v7920_v56 = vld [vmem:[#allocation15_spill] sm:$0xff]  ;;  %v7922_v58 = vld [vmem:[#allocation17_spill] sm:$0xff] }
 0x261   : > { %v1586_v34 = vmax.f32 %v7918_v54, %v1487_v8  ;;  %v1587_v1 = vmax.f32 %v7919_v27, %v1488_v12  ;;  %v1749_v23 = vsel %vm994_vm15, %v1717_v37, -inf  ;;  %2328 = vmatmul.mubr.bf16.gmra.mrb[20].mxu1 %v2044_v38  ;;  %v1674_v10 = vsel %vm970_vm6, %v5022_v26, %v5036_v6  ;;  %v7921_v26 = vld [vmem:[#allocation16_spill] sm:$0xff]  ;;  %v7924_v12 = vld [vmem:[#allocation30_spill] sm:$0xff] }
 0x262   : > { %v1781_v48 = vmax.f32 %v1589_v44, %v1749_v23  ;;  %v1716_v61 = vsel %vm970_vm6, %v5036_v6, -inf  ;;  %v1955_v52 = vmax.f32 %v6642_v21, %v1858_v13  ;;  %4678 = vmatpush3.bf16.msra.mxu1 %v7920_v56  ;;  %v2339_v30 = vpack.c.bf16 %v1957_v33, %v1949_v11  ;;  %v7923_v13 = vld [vmem:[#allocation19_spill] sm:$0xff] }
 0x263   : > { %v1741_v18 = vsel %vm994_vm15, %v1716_v61, -inf  ;;  %v5052_v49 = vunpack.i.h.bf16 %v6754_v53  ;;  %v5051_v57 = vunpack.i.l.bf16 %v6754_v53  ;;  %4679 = vmatprep.subr.bf16.mxu1 %v7921_v26  ;;  %v5042_v47 = vunpack.i.h.bf16 %v5040_v63 }
 0x264   : > { %v1773_v51 = vmax.f32 %v1581_v40, %v1741_v18  ;;  %v2337_v5 = vpack.c.bf16 %v1955_v52, %v1947_v3  ;;  %v5041_v44 = vunpack.i.l.bf16 %v5040_v63  ;;  %v5055_v21 = vpop.permute.xlu1 %5054  ;;  %v5045_v22 = vpop.permute.xlu0 %5044  ;;  %2425 = vmatprep.mubr.bf16.mxu1 %v2339_v30  ;;  %v1770_v43 = vmax.f32 %v1578_v2, %v6707_v36  ;;  %v7925_v2 = vld [vmem:[#allocation20_spill] sm:$0xff] }
 0x265   : > { %v1909_v15 = vsel %vm1019_vm11, %v5052_v49, -inf  ;;  %v1908_v11 = vsel %vm1019_vm11, %v5051_v57, -inf  ;;  %v5057_v55 = vunpack.i.h.bf16 %v5055_v21  ;;  %v5056_v32 = vunpack.i.l.bf16 %v5055_v21 }
 0x266   : > { %2376 = vmatprep.mubr.bf16.mxu0 %v2337_v5  ;;  %v1941_v40 = vsel %vm1043_vm3, %v1909_v15, -inf  ;;  %v1933_v62 = vsel %vm1043_vm3, %v1908_v11, -inf  ;;  %v1679_v7 = vsel %vm970_vm6, %v5002_v9, %v5041_v44  ;;  %v1680_v3 = vsel %vm970_vm6, %v5041_v44, %v5042_v47  ;;  %4680 = vmatpush3.bf16.msra.mxu1 %v7922_v58 }
 0x267   : > { %2377 = vmatmul.mubr.bf16.vlgmr.msra.gmra.mrb[24].mxu0 %v6718_v25  ;;  %v1681_v6 = vsel %vm970_vm6, %v5042_v47, %v5037_v46  ;;  %v5047_v28 = vunpack.i.h.bf16 %v5045_v22  ;;  %v5046_v0 = vunpack.i.l.bf16 %v5045_v22  ;;  %v1965_v38 = vmax.f32 %v1773_v51, %v1933_v62  ;;  %4681 = vmatprep.subr.bf16.mxu1 %v7923_v13 }
 0x268   : > { %v1973_v33 = vmax.f32 %v1781_v48, %v1941_v40  ;;  %v1779_v59 = vmax.f32 %v1587_v1, %v1680_v3  ;;  %v1872_v45 = vsel %vm1019_vm11, %v5056_v32, %v5057_v55  ;;  %v1778_v8 = vmax.f32 %v1586_v34, %v1679_v7 }
 0x269   : > { %v1865_v9 = vsel %vm1019_vm11, %v5046_v0, %v5047_v28  ;;  %v1864_v25 = vsel %vm1019_vm11, %v4992_v17, %v5046_v0  ;;  %v1871_v46 = vsel %vm1019_vm11, %v5007_v60, %v5056_v32  ;;  %v1588_v37 = vmax.f32 %v7924_v12, %v1489_v20 }
 0x26a   : > { %v1963_v53 = vmax.f32 %v1771_v24, %v1865_v9  ;;  %v1971_v63 = vmax.f32 %v1779_v59, %v1872_v45  ;;  %v1962_v54 = vmax.f32 %v1770_v43, %v1864_v25  ;;  %v2338_v36 = vpack.c.bf16 %v1956_v50, %v1948_v16  ;;  %4682 = vmatpush3.bf16.msra.mxu1 %v7925_v2 }
 0x26b   : > { %v2343_v14 = vpack.c.bf16 %v1973_v33, %v1965_v38  ;;  %v1970_v17 = vmax.f32 %v1778_v8, %v1871_v46  ;;  %v1866_v42 = vsel %vm1019_vm11, %v5047_v28, %v5051_v57  ;;  %v1772_v60 = vmax.f32 %v1580_v29, %v1674_v10 }
 0x26c   : > { %v2341_v34 = vpack.c.bf16 %v1971_v63, %v1963_v53  ;;  %v1780_v24 = vmax.f32 %v1588_v37, %v1681_v6  ;;  %v1873_v20 = vsel %vm1019_vm11, %v5057_v55, %v5052_v49  ;;  %v7926_v35 = vmov 0  }
 0x26d   : > { %v2340_v27 = vpack.c.bf16 %v1970_v17, %v1962_v54  ;;  %2426 = vmatmul.mubr.bf16.vlgmr.msra.gmra.mrb[24].mxu1 %v2338_v36  ;;  %v1964_v31 = vmax.f32 %v1772_v60, %v1866_v42  ;;  %vm2608_vm14 = vcmask 785408  }
 0x26e   : > { %2384 = vmatprep.mubr.bf16.mxu0 %v2341_v34  ;;  %v1972_v19 = vmax.f32 %v1780_v24, %v1873_v20  ;;  %2433 = vmatprep.mubr.bf16.mxu1 %v2343_v14 }
 0x26f   : > { %2385 = vmatmul.mubr.bf16.gmra.mrb[28].mxu0 %v2340_v27 }
 0x270   : > { %2647 = vmatprep.mubr.bf16.mxu0 %v7926_v35  ;;  %v2342_v16 = vpack.c.bf16 %v1972_v19, %v1964_v31 }
 0x275   : > { %2434 = vmatmul.mubr.bf16.gmra.mrb[28].mxu1 %v2342_v16 }
 0x276   : > { %2852 = vmatprep.mubr.bf16.mxu1 %v7926_v35 }
 0x2f6   : > { %v4599_v4 = vpop.f32.mrb[16].mxu0 }
 0x2f7   : > { %v4600_v50 = vpop.f32.mrb[17].mxu0 }
 0x2f8   : > { %v4601_v39 = vadd.f32 %v4600_v50, %v4599_v4  ;;  %v4602_v41 = vpop.f32.mrb[18].mxu0  ;;  %v2574_v50 = vld [vmem:[%s7780_s5] sm:$0xff] }
 0x2f9   : > { %v4603_v29 = vpop.f32.mrb[19].mxu0 }
 0x2fa   : > { %v4604_v1 = vadd.f32 %v4603_v29, %v4602_v41  ;;  %v2576_v41 = vld [vmem:[%s7780_s5 + $0x10] sm:$0xff]  ;;  %v2577_v29 = vld [vmem:[%s7780_s5 + $0x18] sm:$0xff] }
 0x306   : > { %v4605_v23 = vpop.f32.mrb[20].mxu0 }
 0x307   : > { %v4606_v48 = vpop.f32.mrb[21].mxu0 }
 0x308   : > { %v4607_v10 = vadd.f32 %v4606_v48, %v4605_v23  ;;  %v4608_v61 = vpop.f32.mrb[22].mxu0 }
 0x309   : > { %v4609_v52 = vpop.f32.mrb[23].mxu0 }
 0x30a   : > { %v4610_v56 = vadd.f32 %v4609_v52, %v4608_v61 }
 0x320   : > { %v4627_v18 = vpop.f32.mrb[16].mxu1 }
 0x321   : > { %v4628_v30 = vpop.f32.mrb[17].mxu1 }
 0x322   : > { %v4629_v49 = vadd.f32 %v4628_v30, %v4627_v18  ;;  %v4630_v57 = vpop.f32.mrb[18].mxu1 }
 0x323   : > { %v4631_v51 = vpop.f32.mrb[19].mxu1 }
 0x324   : > { %v6813_v5 = vadd.f32 %v4629_v49, %v4601_v39  ;;  %v4632_v26 = vadd.f32 %v4631_v51, %v4630_v57  ;;  %v2575_v39 = vld [vmem:[%s7780_s5 + $0x8] sm:$0xff] }
 0x326   : > { %v6815_v47 = vadd.f32 %v4632_v26, %v4604_v1  ;;  %v7928_v1 = vld [vmem:[#allocation2_spill] sm:$0xff] }
 0x327   : > { %v688_v23 = vadd.s32 128, %v7928_v1  ;;  %vm2506_vm11 = vcmp.ge.s32.totalorder %v7928_v1, 1  ;;  %vm2548_vm10 = vcmp.lt.s32.totalorder %v7928_v1, 127 }
 0x328   : > { %v5083_v19 = vpack.i.bf16 %v6815_v47, %v6813_v5  ;;  %vm6875_vm13 = vmpackc.low %vm2506_vm11, %vm2506_vm11 }
 0x329   : > { %v2493_v48 = vand.u32 127, %v688_v23  ;;  %vm6912_vm9 = vmpackc.low %vm2548_vm10, %vm2548_vm10 }
 0x32b   : > { %vm2507_vm6 = vcmp.ge.s32.totalorder %v2493_v48, 1  ;;  %vm2549_vm5 = vcmp.lt.s32.totalorder %v2493_v48, 127 }
 0x32c   : > { %vm6871_vm12 = vmpackc.low %vm2507_vm6, %vm2507_vm6 }
 0x32d   : > { %vm6901_vm7 = vmpackc.low %vm2549_vm5, %vm2549_vm5 }
 0x334   : > { %v4633_v44 = vpop.f32.mrb[20].mxu1 }
 0x335   : > { %v4634_v21 = vpop.f32.mrb[21].mxu1 }
 0x336   : > { %v4635_v22 = vadd.f32 %v4634_v21, %v4633_v44  ;;  %v4636_v15 = vpop.f32.mrb[22].mxu1 }
 0x337   : > { %v4637_v11 = vpop.f32.mrb[23].mxu1 }
 0x338   : > { %v6817_v55 = vadd.f32 %v4635_v22, %v4607_v10  ;;  %v4638_v32 = vadd.f32 %v4637_v11, %v4636_v15 }
 0x33a   : > { %v4655_v40 = vpop.f32.mrb[24].mxu0  ;;  %v6819_v62 = vadd.f32 %v4638_v32, %v4610_v56 }
 0x33b   : > { %v4656_v7 = vpop.f32.mrb[25].mxu0 }
 0x33c   : > { %v4657_v3 = vadd.f32 %v4656_v7, %v4655_v40  ;;  %v4658_v58 = vpop.f32.mrb[26].mxu0  ;;  %v5093_v4 = vpack.i.bf16 %v6819_v62, %v6817_v55 }
 0x33d   : > { %v4659_v6 = vpop.f32.mrb[27].mxu0 }
 0x33e   : > { %v4660_v28 = vadd.f32 %v4659_v6, %v4658_v58 }
 0x340   : > { %v4683_v0 = vpop.f32.mrb[24].mxu1 }
 0x341   : > { %v4684_v38 = vpop.f32.mrb[25].mxu1 }
 0x342   : > { %v4661_v13 = vpop.f32.mrb[28].mxu0  ;;  %v4685_v33 = vadd.f32 %v4684_v38, %v4683_v0  ;;  %v4686_v59 = vpop.f32.mrb[26].mxu1 }
 0x343   : > { %v4662_v45 = vpop.f32.mrb[29].mxu0  ;;  %v4687_v43 = vpop.f32.mrb[27].mxu1 }
 0x344   : > { %v4663_v9 = vadd.f32 %v4662_v45, %v4661_v13  ;;  %v4664_v8 = vpop.f32.mrb[30].mxu0  ;;  %v6821_v25 = vadd.f32 %v4685_v33, %v4657_v3  ;;  %v4688_v46 = vadd.f32 %v4687_v43, %v4686_v59 }
 0x345   : > { %v4665_v12 = vpop.f32.mrb[31].mxu0 }
 0x346   : > { %v4666_v37 = vadd.f32 %v4665_v12, %v4664_v8  ;;  %v6823_v53 = vadd.f32 %v4688_v46, %v4660_v28  ;;  %v5058_v63 = vpack.i.bf16 %v6821_v25, %v6813_v5  ;;  %v2562_v12 = vpack.c.bf16 %v6815_v47, %v6813_v5 }
 0x348   : > { %v4689_v54 = vpop.f32.mrb[28].mxu1  ;;  %5059 = vrot.lane.b32.xlu0 %v5058_v63, %s7927_s30  ;;  %v5063_v36 = vpack.i.bf16 %v6823_v53, %v6815_v47  ;;  %v5078_v31 = vpack.i.bf16 %v6823_v53, %v6821_v25  ;;  %v2563_v8 = vpack.c.bf16 %v6823_v53, %v6821_v25 }
 0x349   : > { %v4690_v2 = vpop.f32.mrb[29].mxu1 }
 0x34a   : > { %v4691_v14 = vadd.f32 %v4690_v2, %v4689_v54  ;;  %v4692_v17 = vpop.f32.mrb[30].mxu1  ;;  %5064 = vrot.lane.b32.xlu1 %v5063_v36, %s7927_s30 }
 0x34b   : > { %v4693_v42 = vpop.f32.mrb[31].mxu1 }
 0x34c   : > { %v6831_v34 = vadd.f32 %v4691_v14, %v4663_v9  ;;  %v4694_v60 = vadd.f32 %v4693_v42, %v4692_v17 }
 0x34e   : > { %v6833_v24 = vadd.f32 %v4694_v60, %v4666_v37  ;;  %v5068_v20 = vpack.i.bf16 %v6831_v34, %v6817_v55 }
 0x350   : > { %5069 = vrot.lane.b32.xlu0 %v5068_v20, %s7927_s30  ;;  %v5073_v27 = vpack.i.bf16 %v6833_v24, %v6819_v62  ;;  %v5088_v16 = vpack.i.bf16 %v6833_v24, %v6831_v34  ;;  %v2565_v37 = vpack.c.bf16 %v6833_v24, %v6831_v34  ;;  %v2564_v20 = vpack.c.bf16 %v6819_v62, %v6817_v55 }
 0x352   : > { %5074 = vrot.lane.b32.xlu1 %v5073_v27, %s7927_s30 }
 0x354   : > { %5079 = vrot.lane.b32.xlu0 %v5078_v31, %s5438_s4 }
 0x356   : > { %5084 = vrot.lane.b32.xlu1 %v5083_v19, %s5438_s4 }
 0x358   : > { %5089 = vrot.lane.b32.xlu0 %v5088_v16, %s5438_s4 }
 0x35a   : > { %5094 = vrot.lane.b32.xlu1 %v5093_v4, %s5438_s4 }
 0x35c   : > { %2580 = vperm.xlu0 %4817, %v2574_v50  }
 0x35e   : > { %2585 = vperm.xlu1 %4816, %v2575_v39  }
 0x360   : > { %2590 = vperm.xlu0 %4817, %v2576_v41  }
 0x362   : > { %2595 = vperm.xlu1 %4816, %v2577_v29  }
 0x3ba   : > { %v5060_v10 = vpop.permute.xlu0 %5059 }
 0x3bb   : > { %v5062_v61 = vunpack.i.h.bf16 %v5060_v10  ;;  %v5061_v52 = vunpack.i.l.bf16 %v5060_v10 }
 0x3bc   : > { %v5065_v56 = vpop.permute.xlu1 %5064 }
 0x3bd   : > { %v5067_v18 = vunpack.i.h.bf16 %v5065_v56  ;;  %v5066_v30 = vunpack.i.l.bf16 %v5065_v56  ;;  %v2466_v49 = vsel %vm872_vm1, %v5061_v52, %v5062_v61  ;;  %v2478_v57 = vsel %vm872_vm1, 0.0, %v5061_v52  ;;  %v5412_v52 = vld [vmem:[%s7937_s3] sm:$0xff]   ;;  %v5413_v56 = vld [vmem:[%s7937_s3 + $0x8] sm:$0xff]  }
 0x3bf   : > { %v2467_v51 = vsel %vm872_vm1, %v5066_v30, %v5067_v18  ;;  %v2479_v26 = vsel %vm872_vm1, 0.0, %v5066_v30 }
 0x3c0   : > { %v4357_v21 = vpack.c.bf16 %v2479_v26, %v2478_v57  ;;  %v4354_v22 = vpack.c.bf16 %v2467_v51, %v2466_v49 }
 0x3c2   : > { %v5070_v11 = vpop.permute.xlu0 %5069  ;;  %4355 = vmatprep.subr.msk.bf16.mxu0 %vm6871_vm12, %v4354_v22 }
 0x3c3   : > { %v5072_v32 = vunpack.i.h.bf16 %v5070_v11  ;;  %v5071_v40 = vunpack.i.l.bf16 %v5070_v11  ;;  %4358 = vmatpush1.bf16.msk.msra.mxu0 %vm6875_vm13, %v4357_v21 }
 0x3c4   : > { %v5075_v7 = vpop.permute.xlu1 %5074 }
 0x3c5   : > { %v5077_v3 = vunpack.i.h.bf16 %v5075_v7  ;;  %v5076_v58 = vunpack.i.l.bf16 %v5075_v7  ;;  %v2468_v28 = vsel %vm872_vm1, %v5071_v40, %v5072_v32  ;;  %v2480_v0 = vsel %vm872_vm1, 0.0, %v5071_v40 }
 0x3c6   : > { %v5080_v6 = vpop.permute.xlu0 %5079 }
 0x3c7   : > { %v2469_v38 = vsel %vm872_vm1, %v5076_v58, %v5077_v3  ;;  %v2481_v13 = vsel %vm872_vm1, 0.0, %v5076_v58  ;;  %v5082_v43 = vunpack.i.h.bf16 %v5080_v6  ;;  %v5081_v9 = vunpack.i.l.bf16 %v5080_v6 }
 0x3c8   : > { %v4363_v33 = vpack.c.bf16 %v2481_v13, %v2480_v0  ;;  %v4360_v59 = vpack.c.bf16 %v2469_v38, %v2468_v28  ;;  %v5085_v45 = vpop.permute.xlu1 %5084 }
 0x3c9   : > { %v2545_v63 = vsel %vm921_vm8, %v5082_v43, 0.0  ;;  %v2544_v54 = vsel %vm921_vm8, %v5081_v9, 0.0  ;;  %v5087_v36 = vunpack.i.h.bf16 %v5085_v45  ;;  %v5086_v2 = vunpack.i.l.bf16 %v5085_v45 }
 0x3ca   : > { %4361 = vmatprep.subr.msk.bf16.mxu0 %vm6871_vm12, %v4360_v59  ;;  %v5090_v46 = vpop.permute.xlu0 %5089  ;;  %v4366_v60 = vpack.c.bf16 %v2545_v63, %v2544_v54 }
 0x3cb   : > { %4364 = vmatpush1.bf16.msk.msra.mxu0 %vm6875_vm13, %v4363_v33  ;;  %v5092_v14 = vunpack.i.h.bf16 %v5090_v46  ;;  %v5091_v17 = vunpack.i.l.bf16 %v5090_v46  ;;  %v2532_v31 = vsel %vm921_vm8, %v5086_v2, %v5081_v9  ;;  %v2533_v19 = vsel %vm921_vm8, %v5087_v36, %v5082_v43 }
 0x3cc   : > { %2619 = vmatprep.subr.bf16.mxu0 %v2563_v8  ;;  %v5095_v42 = vpop.permute.xlu1 %5094  ;;  %v4369_v29 = vpack.c.bf16 %v2533_v19, %v2532_v31 }
 0x3cd   : > { %v5097_v16 = vunpack.i.h.bf16 %v5095_v42  ;;  %v5096_v4 = vunpack.i.l.bf16 %v5095_v42  ;;  %v2547_v50 = vsel %vm921_vm8, %v5092_v14, 0.0  ;;  %v2546_v39 = vsel %vm921_vm8, %v5091_v17, 0.0 }
 0x3ce   : > { %v4372_v23 = vpack.c.bf16 %v2547_v50, %v2546_v39  ;;  %v2781_v50 = vld [vmem:[%s7782_s7 + $0x8] sm:$0xff]  ;;  %v2782_v39 = vld [vmem:[%s7782_s7 + $0x10] sm:$0xff] }
 0x3cf   : > { %2620 = vmatpush1.bf16.msra.mxu0 %v2562_v12  ;;  %v2534_v48 = vsel %vm921_vm8, %v5096_v4, %v5091_v17  ;;  %v2535_v10 = vsel %vm921_vm8, %v5097_v16, %v5092_v14  ;;  %v2780_v4 = vld [vmem:[%s7782_s7] sm:$0xff] }
 0x3d0   : > { %2621 = vmatprep.subr.bf16.mxu0 %v2565_v37  ;;  %v4375_v61 = vpack.c.bf16 %v2535_v10, %v2534_v48 }
 0x3d3   : > { %2622 = vmatpush1.bf16.msra.mxu0 %v2564_v20 }
 0x3d4   : > { %4367 = vmatprep.subr.msk.bf16.mxu0 %vm6901_vm7, %v4366_v60 }
 0x3d7   : > { %4370 = vmatpush1.bf16.msk.msra.mxu0 %vm6912_vm9, %v4369_v29  ;;  %v2783_v29 = vld [vmem:[%s7782_s7 + $0x18] sm:$0xff] }
 0x3d8   : > { %4373 = vmatprep.subr.msk.bf16.mxu0 %vm6901_vm7, %v4372_v23 }
 0x3db   : > { %4376 = vmatpush1.bf16.msk.msra.mxu0 %vm6912_vm9, %v4375_v61  ;;  %v2581_v18 = vpop.permute.xlu0 %2580 }
 0x3dd   : > { %v2586_v51 = vpop.permute.xlu1 %2585 }
 0x3de   : > { %4377 = vmatmul.mubr.msk.bf16.vlgmr.msra.gmra.mrb[32].mxu0 %vm2608_vm14, %v5412_v52 }
 0x3df   : > { %2657 = vmatprep.mubr.bf16.mxu0 %v7926_v35  ;;  %v2591_v38 = vpop.permute.xlu0 %2590 }
 0x3e1   : > { %v2596_v8 = vpop.permute.xlu1 %2595 }
 0x3e6   : > { %4378 = vmatmul.mubr.msk.bf16.gmra.mrb[36].mxu0 %vm2608_vm14, %v5413_v56 }
 0x3e7   : > { %3065 = vmatprep.mubr.bf16.mxu0 %v7926_v35 }
 0x4b1   : > { %v2649_v30 = vpop.f32.mrb[32].mxu0 }
 0x4b2   : > { %v2650_v49 = vadd.f32 %v2649_v30, %v2581_v18  ;;  %v2651_v57 = vpop.f32.mrb[33].mxu0 }
 0x4b3   : > { %v2652_v26 = vadd.f32 %v2651_v57, %v2581_v18  ;;  %v2653_v21 = vpop.f32.mrb[34].mxu0 }
 0x4b4   : > { %v6934_v22 = vmax.f32 %v2650_v49, 0.0  ;;  %v2654_v11 = vadd.f32 %v2653_v21, %v2586_v51  ;;  %v2655_v32 = vpop.f32.mrb[35].mxu0 }
 0x4b5   : > { %v6936_v40 = vmax.f32 %v2652_v26, 0.0  ;;  %v2656_v7 = vadd.f32 %v2655_v32, %v2586_v51 }
 0x4b6   : > { %v6938_v3 = vmax.f32 %v2654_v11, 0.0 }
 0x4b7   : > { %v6940_v58 = vmax.f32 %v2656_v7, 0.0  ;;  %v5098_v6 = vpack.i.bf16 %v6936_v40, %v6934_v22 }
 0x4b8   : > { %v2768_v28 = vpack.c.bf16 %v6938_v3, %v6934_v22  ;;  %v5123_v0 = vpack.i.bf16 %v6938_v3, %v6934_v22 }
 0x4b9   : > { %v2659_v13 = vpop.f32.mrb[36].mxu0  ;;  %5099 = vrot.lane.b32.xlu0 %v5098_v6, %s7927_s30  ;;  %v5103_v33 = vpack.i.bf16 %v6940_v58, %v6938_v3  ;;  %v5118_v59 = vpack.i.bf16 %v6940_v58, %v6936_v40  ;;  %v2769_v45 = vpack.c.bf16 %v6940_v58, %v6936_v40 }
 0x4ba   : > { %v2660_v43 = vadd.f32 %v2659_v13, %v2591_v38  ;;  %v2661_v9 = vpop.f32.mrb[37].mxu0 }
 0x4bb   : > { %v2662_v46 = vadd.f32 %v2661_v9, %v2591_v38  ;;  %v2663_v12 = vpop.f32.mrb[38].mxu0  ;;  %5104 = vrot.lane.b32.xlu1 %v5103_v33, %s7927_s30 }
 0x4bc   : > { %v6956_v37 = vmax.f32 %v2660_v43, 0.0  ;;  %v2664_v63 = vadd.f32 %v2663_v12, %v2596_v8  ;;  %v2665_v54 = vpop.f32.mrb[39].mxu0 }
 0x4bd   : > { %v6958_v36 = vmax.f32 %v2662_v46, 0.0  ;;  %v2666_v2 = vadd.f32 %v2665_v54, %v2596_v8 }
 0x4be   : > { %v6960_v14 = vmax.f32 %v2664_v63, 0.0 }
 0x4bf   : > { %v6962_v17 = vmax.f32 %v2666_v2, 0.0  ;;  %v5108_v42 = vpack.i.bf16 %v6958_v36, %v6956_v37 }
 0x4c0   : > { %v5133_v60 = vpack.i.bf16 %v6960_v14, %v6956_v37  ;;  %v2770_v20 = vpack.c.bf16 %v6960_v14, %v6956_v37  ;;  %v5414_v37 = vld [vmem:[%s7781_s6] sm:$0xff]  }
 0x4c1   : > { %5109 = vrot.lane.b32.xlu0 %v5108_v42, %s7927_s30  ;;  %v5113_v31 = vpack.i.bf16 %v6962_v17, %v6960_v14  ;;  %v5128_v19 = vpack.i.bf16 %v6962_v17, %v6958_v36  ;;  %v2771_v16 = vpack.c.bf16 %v6962_v17, %v6958_v36  ;;  %v5415_v14 = vld [vmem:[%s7781_s6 + $0x8] sm:$0xff]  }
 0x4c3   : > { %5114 = vrot.lane.b32.xlu1 %v5113_v31, %s7927_s30 }
 0x4c5   : > { %5119 = vrot.lane.b32.xlu0 %v5118_v59, %s5438_s4 }
 0x4c7   : > { %5124 = vrot.lane.b32.xlu1 %v5123_v0, %s5438_s4 }
 0x4c9   : > { %5129 = vrot.lane.b32.xlu0 %v5128_v19, %s5438_s4 }
 0x4cb   : > { %5134 = vrot.lane.b32.xlu1 %v5133_v60, %s5438_s4 }
 0x4cd   : > { %2786 = vperm.xlu0 %4817, %v2780_v4  }
 0x4cf   : > { %2791 = vperm.xlu1 %4816, %v2781_v50  }
 0x4d1   : > { %2796 = vperm.xlu0 %4817, %v2782_v39  }
 0x4d3   : > { %2801 = vperm.xlu1 %4816, %v2783_v29  }
 0x52b   : > { %v5100_v23 = vpop.permute.xlu0 %5099 }
 0x52c   : > { %v5102_v48 = vunpack.i.h.bf16 %v5100_v23  ;;  %v5101_v10 = vunpack.i.l.bf16 %v5100_v23 }
 0x52d   : > { %v5105_v61 = vpop.permute.xlu1 %5104 }
 0x52e   : > { %v5107_v52 = vunpack.i.h.bf16 %v5105_v61  ;;  %v5106_v56 = vunpack.i.l.bf16 %v5105_v61  ;;  %v2700_v18 = vsel %vm872_vm1, %v5101_v10, %v5102_v48  ;;  %v2712_v30 = vsel %vm872_vm1, 0.0, %v5101_v10 }
 0x530   : > { %v2701_v49 = vsel %vm872_vm1, %v5106_v56, %v5107_v52  ;;  %v2713_v57 = vsel %vm872_vm1, 0.0, %v5106_v56 }
 0x531   : > { %v4382_v51 = vpack.c.bf16 %v2701_v49, %v2700_v18  ;;  %v4385_v26 = vpack.c.bf16 %v2713_v57, %v2712_v30 }
 0x533   : > { %v5110_v21 = vpop.permute.xlu0 %5109  ;;  %4383 = vmatprep.subr.msk.bf16.mxu1 %vm6871_vm12, %v4382_v51 }
 0x534   : > { %v5112_v11 = vunpack.i.h.bf16 %v5110_v21  ;;  %v5111_v32 = vunpack.i.l.bf16 %v5110_v21  ;;  %4386 = vmatpush1.bf16.msk.msra.mxu1 %vm6875_vm13, %v4385_v26 }
 0x535   : > { %v5115_v7 = vpop.permute.xlu1 %5114 }
 0x536   : > { %v5117_v6 = vunpack.i.h.bf16 %v5115_v7  ;;  %v5116_v0 = vunpack.i.l.bf16 %v5115_v7  ;;  %v2702_v13 = vsel %vm872_vm1, %v5111_v32, %v5112_v11  ;;  %v2714_v33 = vsel %vm872_vm1, 0.0, %v5111_v32 }
 0x537   : > { %v5120_v38 = vpop.permute.xlu0 %5119 }
 0x538   : > { %v2703_v59 = vsel %vm872_vm1, %v5116_v0, %v5117_v6  ;;  %v2715_v43 = vsel %vm872_vm1, 0.0, %v5116_v0  ;;  %v5122_v12 = vunpack.i.h.bf16 %v5120_v38  ;;  %v5121_v63 = vunpack.i.l.bf16 %v5120_v38 }
 0x539   : > { %v4388_v9 = vpack.c.bf16 %v2703_v59, %v2702_v13  ;;  %v4391_v8 = vpack.c.bf16 %v2715_v43, %v2714_v33  ;;  %v5125_v46 = vpop.permute.xlu1 %5124 }
 0x53a   : > { %v2753_v36 = vsel %vm921_vm8, %v5122_v12, 0.0  ;;  %v2752_v2 = vsel %vm921_vm8, %v5121_v63, 0.0  ;;  %v5127_v17 = vunpack.i.h.bf16 %v5125_v46  ;;  %v5126_v42 = vunpack.i.l.bf16 %v5125_v46 }
 0x53b   : > { %4389 = vmatprep.subr.msk.bf16.mxu1 %vm6871_vm12, %v4388_v9  ;;  %v5130_v54 = vpop.permute.xlu0 %5129  ;;  %v4394_v4 = vpack.c.bf16 %v2753_v36, %v2752_v2 }
 0x53c   : > { %4392 = vmatpush1.bf16.msk.msra.mxu1 %vm6875_vm13, %v4391_v8  ;;  %v5132_v60 = vunpack.i.h.bf16 %v5130_v54  ;;  %v5131_v31 = vunpack.i.l.bf16 %v5130_v54  ;;  %v2740_v50 = vsel %vm921_vm8, %v5126_v42, %v5121_v63  ;;  %v2741_v40 = vsel %vm921_vm8, %v5127_v17, %v5122_v12 }
 0x53d   : > { %2824 = vmatprep.subr.bf16.mxu1 %v2769_v45  ;;  %v5135_v19 = vpop.permute.xlu1 %5134  ;;  %v4397_v22 = vpack.c.bf16 %v2741_v40, %v2740_v50  ;;  %v2994_v50 = vld [vmem:[%s7784_s9 + $0x8] sm:$0xff]  ;;  %v2995_v40 = vld [vmem:[%s7784_s9 + $0x10] sm:$0xff] }
 0x53e   : > { %v5137_v58 = vunpack.i.h.bf16 %v5135_v19  ;;  %v5136_v45 = vunpack.i.l.bf16 %v5135_v19  ;;  %v2755_v39 = vsel %vm921_vm8, %v5132_v60, 0.0  ;;  %v2754_v29 = vsel %vm921_vm8, %v5131_v31, 0.0 }
 0x53f   : > { %v4400_v3 = vpack.c.bf16 %v2755_v39, %v2754_v29 }
 0x540   : > { %2825 = vmatpush1.bf16.msra.mxu1 %v2768_v28  ;;  %v2742_v28 = vsel %vm921_vm8, %v5136_v45, %v5131_v31 }
 0x541   : > { %2826 = vmatprep.subr.bf16.mxu1 %v2771_v16  ;;  %v2743_v16 = vsel %vm921_vm8, %v5137_v58, %v5132_v60  ;;  %v2996_v58 = vld [vmem:[%s7784_s9 + $0x18] sm:$0xff] }
 0x542   : > { %v4403_v23 = vpack.c.bf16 %v2743_v16, %v2742_v28 }
 0x544   : > { %2827 = vmatpush1.bf16.msra.mxu1 %v2770_v20 }
 0x545   : > { %4395 = vmatprep.subr.msk.bf16.mxu1 %vm6901_vm7, %v4394_v4  ;;  %v2993_v4 = vld [vmem:[%s7784_s9] sm:$0xff] }
 0x548   : > { %4398 = vmatpush1.bf16.msk.msra.mxu1 %vm6912_vm9, %v4397_v22 }
 0x549   : > { %4401 = vmatprep.subr.msk.bf16.mxu1 %vm6901_vm7, %v4400_v3 }
 0x54c   : > { %4404 = vmatpush1.bf16.msk.msra.mxu1 %vm6912_vm9, %v4403_v23  ;;  %v2787_v20 = vpop.permute.xlu0 %2786 }
 0x54e   : > { %v2792_v52 = vpop.permute.xlu1 %2791 }
 0x54f   : > { %4405 = vmatmul.mubr.msk.bf16.vlgmr.msra.gmra.mrb[32].mxu1 %vm2608_vm14, %v5414_v37 }
 0x550   : > { %2862 = vmatprep.mubr.bf16.mxu1 %v7926_v35  ;;  %v2797_v0 = vpop.permute.xlu0 %2796 }
 0x552   : > { %v2802_v59 = vpop.permute.xlu1 %2801 }
 0x557   : > { %4406 = vmatmul.mubr.msk.bf16.gmra.mrb[36].mxu1 %vm2608_vm14, %v5415_v14 }
 0x558   : > { %3270 = vmatprep.mubr.bf16.mxu1 %v7926_v35 }
 0x622   : > { %v2854_v48 = vpop.f32.mrb[32].mxu1 }
 0x623   : > { %v2855_v10 = vadd.f32 %v2854_v48, %v2787_v20  ;;  %v2856_v61 = vpop.f32.mrb[33].mxu1 }
 0x624   : > { %v2857_v56 = vadd.f32 %v2856_v61, %v2787_v20  ;;  %v2858_v18 = vpop.f32.mrb[34].mxu1 }
 0x625   : > { %v2873_v30 = vadd.f32 %v2855_v10, %v6813_v5  ;;  %v2859_v49 = vadd.f32 %v2858_v18, %v2792_v52  ;;  %v2860_v57 = vpop.f32.mrb[35].mxu1 }
 0x626   : > { %v2874_v51 = vadd.f32 %v2857_v56, %v6821_v25  ;;  %v2861_v26 = vadd.f32 %v2860_v57, %v2792_v52 }
 0x627   : > { %v7047_v21 = vmax.f32 %v2873_v30, 0.0  ;;  %v2875_v11 = vadd.f32 %v2859_v49, %v6815_v47 }
 0x628   : > { %v7050_v32 = vmax.f32 %v2874_v51, 0.0  ;;  %v2876_v7 = vadd.f32 %v2861_v26, %v6823_v53 }
 0x629   : > { %v7053_v6 = vmax.f32 %v2875_v11, 0.0 }
 0x62a   : > { %v7055_v38 = vmax.f32 %v2876_v7, 0.0  ;;  %v2864_v13 = vpop.f32.mrb[36].mxu1  ;;  %v5138_v5 = vpack.i.bf16 %v7050_v32, %v7047_v21 }
 0x62b   : > { %v2865_v33 = vadd.f32 %v2864_v13, %v2797_v0  ;;  %v2866_v25 = vpop.f32.mrb[37].mxu1 }
 0x62c   : > { %v2867_v43 = vadd.f32 %v2866_v25, %v2797_v0  ;;  %v2868_v9 = vpop.f32.mrb[38].mxu1  ;;  %5139 = vrot.lane.b32.xlu0 %v5138_v5, %s7927_s30  ;;  %v5143_v47 = vpack.i.bf16 %v7055_v38, %v7053_v6  ;;  %v2982_v25 = vpack.c.bf16 %v7055_v38, %v7050_v32 }
 0x62d   : > { %v2877_v53 = vadd.f32 %v2865_v33, %v6817_v55  ;;  %v2869_v8 = vadd.f32 %v2868_v9, %v2802_v59  ;;  %v2870_v46 = vpop.f32.mrb[39].mxu1 }
 0x62e   : > { %v2878_v12 = vadd.f32 %v2867_v43, %v6831_v34  ;;  %v2871_v63 = vadd.f32 %v2870_v46, %v2802_v59  ;;  %5144 = vrot.lane.b32.xlu1 %v5143_v47, %s7927_s30  ;;  %v2981_v43 = vpack.c.bf16 %v7053_v6, %v7047_v21 }
 0x62f   : > { %v7065_v54 = vmax.f32 %v2877_v53, 0.0  ;;  %v2879_v36 = vadd.f32 %v2869_v8, %v6819_v62  ;;  %v5158_v62 = vpack.i.bf16 %v7055_v38, %v7050_v32 }
 0x630   : > { %v7068_v2 = vmax.f32 %v2878_v12, 0.0  ;;  %v2880_v17 = vadd.f32 %v2871_v63, %v6833_v24  ;;  %v5163_v24 = vpack.i.bf16 %v7053_v6, %v7047_v21 }
 0x631   : > { %v7071_v42 = vmax.f32 %v2879_v36, 0.0 }
 0x632   : > { %v7073_v60 = vmax.f32 %v2880_v17, 0.0  ;;  %v5148_v55 = vpack.i.bf16 %v7068_v2, %v7065_v54 }
 0x633   : > { %v5173_v19 = vpack.i.bf16 %v7071_v42, %v7065_v54 }
 0x634   : > { %5149 = vrot.lane.b32.xlu0 %v5148_v55, %s7927_s30  ;;  %v5153_v34 = vpack.i.bf16 %v7073_v60, %v7071_v42  ;;  %v5168_v31 = vpack.i.bf16 %v7073_v60, %v7068_v2  ;;  %v2984_v9 = vpack.c.bf16 %v7073_v60, %v7068_v2  ;;  %v2983_v55 = vpack.c.bf16 %v7071_v42, %v7065_v54 }
 0x636   : > { %5154 = vrot.lane.b32.xlu1 %v5153_v34, %s7927_s30 }
 0x638   : > { %5159 = vrot.lane.b32.xlu0 %v5158_v62, %s5438_s4 }
 0x63a   : > { %5164 = vrot.lane.b32.xlu1 %v5163_v24, %s5438_s4 }
 0x63c   : > { %5169 = vrot.lane.b32.xlu0 %v5168_v31, %s5438_s4 }
 0x63e   : > { %5174 = vrot.lane.b32.xlu1 %v5173_v19, %s5438_s4 }
 0x640   : > { %2999 = vperm.xlu0 %4817, %v2993_v4  }
 0x642   : > { %3004 = vperm.xlu1 %4816, %v2994_v50  }
 0x644   : > { %3009 = vperm.xlu0 %4817, %v2995_v40  }
 0x646   : > { %3014 = vperm.xlu1 %4816, %v2996_v58  }
 0x69e   : > { %v5140_v45 = vpop.permute.xlu0 %5139 }
 0x69f   : > { %v5142_v39 = vunpack.i.h.bf16 %v5140_v45  ;;  %v5141_v29 = vunpack.i.l.bf16 %v5140_v45 }
 0x6a0   : > { %v5145_v22 = vpop.permute.xlu1 %5144 }
 0x6a1   : > { %v5147_v3 = vunpack.i.h.bf16 %v5145_v22  ;;  %v5146_v28 = vunpack.i.l.bf16 %v5145_v22  ;;  %v2913_v16 = vsel %vm872_vm1, %v5141_v29, %v5142_v39  ;;  %v2925_v23 = vsel %vm872_vm1, 0.0, %v5141_v29  ;;  %v5416_v29 = vld [vmem:[%s7783_s8] sm:$0xff]   ;;  %v5417_v22 = vld [vmem:[%s7783_s8 + $0x8] sm:$0xff]  }
 0x6a3   : > { %v2914_v37 = vsel %vm872_vm1, %v5146_v28, %v5147_v3  ;;  %v2926_v14 = vsel %vm872_vm1, 0.0, %v5146_v28 }
 0x6a4   : > { %v4410_v20 = vpack.c.bf16 %v2914_v37, %v2913_v16  ;;  %v4413_v48 = vpack.c.bf16 %v2926_v14, %v2925_v23 }
 0x6a6   : > { %v5150_v10 = vpop.permute.xlu0 %5149  ;;  %4411 = vmatprep.subr.msk.bf16.mxu0 %vm6871_vm12, %v4410_v20 }
 0x6a7   : > { %v5152_v61 = vunpack.i.h.bf16 %v5150_v10  ;;  %v5151_v52 = vunpack.i.l.bf16 %v5150_v10  ;;  %4414 = vmatpush1.bf16.msk.msra.mxu0 %vm6875_vm13, %v4413_v48 }
 0x6a8   : > { %v5155_v56 = vpop.permute.xlu1 %5154 }
 0x6a9   : > { %v5157_v18 = vunpack.i.h.bf16 %v5155_v56  ;;  %v5156_v30 = vunpack.i.l.bf16 %v5155_v56  ;;  %v2915_v57 = vsel %vm872_vm1, %v5151_v52, %v5152_v61  ;;  %v2927_v51 = vsel %vm872_vm1, 0.0, %v5151_v52 }
 0x6aa   : > { %v5160_v49 = vpop.permute.xlu0 %5159 }
 0x6ab   : > { %v2916_v26 = vsel %vm872_vm1, %v5156_v30, %v5157_v18  ;;  %v2928_v11 = vsel %vm872_vm1, 0.0, %v5156_v30  ;;  %v5162_v5 = vunpack.i.h.bf16 %v5160_v49  ;;  %v5161_v33 = vunpack.i.l.bf16 %v5160_v49 }
 0x6ac   : > { %v4416_v7 = vpack.c.bf16 %v2916_v26, %v2915_v57  ;;  %v4419_v0 = vpack.c.bf16 %v2928_v11, %v2927_v51  ;;  %v5165_v13 = vpop.permute.xlu1 %5164 }
 0x6ad   : > { %v2966_v47 = vsel %vm921_vm8, %v5162_v5, 0.0  ;;  %v2965_v53 = vsel %vm921_vm8, %v5161_v33, 0.0  ;;  %v5167_v8 = vunpack.i.h.bf16 %v5165_v13  ;;  %v5166_v46 = vunpack.i.l.bf16 %v5165_v13 }
 0x6ae   : > { %4417 = vmatprep.subr.msk.bf16.mxu0 %vm6871_vm12, %v4416_v7  ;;  %v5170_v59 = vpop.permute.xlu0 %5169  ;;  %v4422_v17 = vpack.c.bf16 %v2966_v47, %v2965_v53 }
 0x6af   : > { %4420 = vmatpush1.bf16.msk.msra.mxu0 %vm6875_vm13, %v4419_v0  ;;  %v5172_v12 = vunpack.i.h.bf16 %v5170_v59  ;;  %v5171_v63 = vunpack.i.l.bf16 %v5170_v59  ;;  %v2953_v34 = vsel %vm921_vm8, %v5166_v46, %v5161_v33  ;;  %v2954_v62 = vsel %vm921_vm8, %v5167_v8, %v5162_v5 }
 0x6b0   : > { %3037 = vmatprep.subr.bf16.mxu0 %v2982_v25  ;;  %v5175_v36 = vpop.permute.xlu1 %5174  ;;  %v4425_v50 = vpack.c.bf16 %v2954_v62, %v2953_v34 }
 0x6b1   : > { %v5177_v24 = vunpack.i.h.bf16 %v5175_v36  ;;  %v5176_v31 = vunpack.i.l.bf16 %v5175_v36  ;;  %v2968_v19 = vsel %vm921_vm8, %v5172_v12, 0.0  ;;  %v2967_v4 = vsel %vm921_vm8, %v5171_v63, 0.0 }
 0x6b2   : > { %v4428_v40 = vpack.c.bf16 %v2968_v19, %v2967_v4  ;;  %v3199_v19 = vld [vmem:[%s7786_s11 + $0x8] sm:$0xff]  ;;  %v3200_v4 = vld [vmem:[%s7786_s11 + $0x10] sm:$0xff] }
 0x6b3   : > { %3038 = vmatpush1.bf16.msra.mxu0 %v2981_v43  ;;  %v2955_v58 = vsel %vm921_vm8, %v5176_v31, %v5171_v63  ;;  %v2956_v45 = vsel %vm921_vm8, %v5177_v24, %v5172_v12  ;;  %v3198_v31 = vld [vmem:[%s7786_s11] sm:$0xff] }
 0x6b4   : > { %3039 = vmatprep.subr.bf16.mxu0 %v2984_v9  ;;  %v4431_v39 = vpack.c.bf16 %v2956_v45, %v2955_v58 }
 0x6b7   : > { %3040 = vmatpush1.bf16.msra.mxu0 %v2983_v55 }
 0x6b8   : > { %4423 = vmatprep.subr.msk.bf16.mxu0 %vm6901_vm7, %v4422_v17 }
 0x6bb   : > { %4426 = vmatpush1.bf16.msk.msra.mxu0 %vm6912_vm9, %v4425_v50  ;;  %v3201_v50 = vld [vmem:[%s7786_s11 + $0x18] sm:$0xff] }
 0x6bc   : > { %4429 = vmatprep.subr.msk.bf16.mxu0 %vm6901_vm7, %v4428_v40 }
 0x6bf   : > { %4432 = vmatpush1.bf16.msk.msra.mxu0 %vm6912_vm9, %v4431_v39  ;;  %v3000_v3 = vpop.permute.xlu0 %2999 }
 0x6c1   : > { %v3005_v37 = vpop.permute.xlu1 %3004 }
 0x6c2   : > { %4433 = vmatmul.mubr.msk.bf16.vlgmr.msra.gmra.mrb[40].mxu0 %vm2608_vm14, %v5416_v29 }
 0x6c3   : > { %3075 = vmatprep.mubr.bf16.mxu0 %v7926_v35  ;;  %v3010_v26 = vpop.permute.xlu0 %3009 }
 0x6c5   : > { %v3015_v25 = vpop.permute.xlu1 %3014 }
 0x6ca   : > { %4434 = vmatmul.mubr.msk.bf16.gmra.mrb[44].mxu0 %vm2608_vm14, %v5417_v22 }
 0x6cb   : > { %3521 = vmatprep.mubr.bf16.mxu0 %v7926_v35 }
 0x795   : > { %v3067_v28 = vpop.f32.mrb[40].mxu0 }
 0x796   : > { %v3068_v16 = vadd.f32 %v3067_v28, %v3000_v3  ;;  %v3069_v23 = vpop.f32.mrb[41].mxu0 }
 0x797   : > { %v3070_v14 = vadd.f32 %v3069_v23, %v3000_v3  ;;  %v3071_v20 = vpop.f32.mrb[42].mxu0 }
 0x798   : > { %v7155_v48 = vmax.f32 %v3068_v16, 0.0  ;;  %v3072_v10 = vadd.f32 %v3071_v20, %v3005_v37  ;;  %v3073_v61 = vpop.f32.mrb[43].mxu0 }
 0x799   : > { %v7157_v52 = vmax.f32 %v3070_v14, 0.0  ;;  %v3074_v56 = vadd.f32 %v3073_v61, %v3005_v37 }
 0x79a   : > { %v7159_v18 = vmax.f32 %v3072_v10, 0.0 }
 0x79b   : > { %v5178_v30 = vpack.i.bf16 %v7157_v52, %v7155_v48  ;;  %v7163_v49 = vmax.f32 %v3074_v56, 0.0 }
 0x79c   : > { %v5203_v57 = vpack.i.bf16 %v7159_v18, %v7155_v48  ;;  %v3186_v51 = vpack.c.bf16 %v7159_v18, %v7155_v48 }
 0x79d   : > { %v5183_v11 = vpack.i.bf16 %v7163_v49, %v7159_v18  ;;  %v5198_v7 = vpack.i.bf16 %v7163_v49, %v7157_v52  ;;  %v3077_v0 = vpop.f32.mrb[44].mxu0  ;;  %5179 = vrot.lane.b32.xlu0 %v5178_v30, %s7927_s30  ;;  %v3187_v13 = vpack.c.bf16 %v7163_v49, %v7157_v52 }
 0x79e   : > { %v3078_v5 = vadd.f32 %v3077_v0, %v3010_v26  ;;  %v3079_v33 = vpop.f32.mrb[45].mxu0 }
 0x79f   : > { %v3080_v59 = vadd.f32 %v3079_v33, %v3010_v26  ;;  %v3081_v43 = vpop.f32.mrb[46].mxu0  ;;  %5184 = vrot.lane.b32.xlu1 %v5183_v11, %s7927_s30 }
 0x7a0   : > { %v7177_v9 = vmax.f32 %v3078_v5, 0.0  ;;  %v3082_v47 = vadd.f32 %v3081_v43, %v3015_v25  ;;  %v3083_v53 = vpop.f32.mrb[47].mxu0 }
 0x7a1   : > { %v7179_v8 = vmax.f32 %v3080_v59, 0.0  ;;  %v3084_v46 = vadd.f32 %v3083_v53, %v3015_v25 }
 0x7a2   : > { %v7181_v12 = vmax.f32 %v3082_v47, 0.0 }
 0x7a3   : > { %v5188_v63 = vpack.i.bf16 %v7179_v8, %v7177_v9  ;;  %v3093_v36 = vmax.f32 %v3084_v46, 0.0 }
 0x7a4   : > { %v5213_v17 = vpack.i.bf16 %v7181_v12, %v7177_v9  ;;  %v3188_v55 = vpack.c.bf16 %v7181_v12, %v7177_v9  ;;  %v5418_v9 = vld [vmem:[%s7785_s10] sm:$0xff]  }
 0x7a5   : > { %v5193_v34 = vpack.i.bf16 %v3093_v36, %v7181_v12  ;;  %v5208_v62 = vpack.i.bf16 %v3093_v36, %v7179_v8  ;;  %5189 = vrot.lane.b32.xlu0 %v5188_v63, %s7927_s30  ;;  %v3189_v24 = vpack.c.bf16 %v3093_v36, %v7179_v8  ;;  %v5419_v12 = vld [vmem:[%s7785_s10 + $0x8] sm:$0xff]  }
 0x7a7   : > { %5194 = vrot.lane.b32.xlu1 %v5193_v34, %s7927_s30 }
 0x7a9   : > { %5199 = vrot.lane.b32.xlu0 %v5198_v7, %s5438_s4 }
 0x7ab   : > { %5204 = vrot.lane.b32.xlu1 %v5203_v57, %s5438_s4 }
 0x7ad   : > { %5209 = vrot.lane.b32.xlu0 %v5208_v62, %s5438_s4 }
 0x7af   : > { %5214 = vrot.lane.b32.xlu1 %v5213_v17, %s5438_s4 }
 0x7b1   : > { %3204 = vperm.xlu0 %4817, %v3198_v31  }
 0x7b3   : > { %3209 = vperm.xlu1 %4816, %v3199_v19  }
 0x7b5   : > { %3214 = vperm.xlu0 %4817, %v3200_v4  }
 0x7b7   : > { %3219 = vperm.xlu1 %4816, %v3201_v50  }
 0x80f   : > { %v5180_v40 = vpop.permute.xlu0 %5179 }
 0x810   : > { %v5182_v58 = vunpack.i.h.bf16 %v5180_v40  ;;  %v5181_v45 = vunpack.i.l.bf16 %v5180_v40 }
 0x811   : > { %v5185_v39 = vpop.permute.xlu1 %5184 }
 0x812   : > { %v5187_v29 = vunpack.i.h.bf16 %v5185_v39  ;;  %v5186_v22 = vunpack.i.l.bf16 %v5185_v39  ;;  %v3118_v3 = vsel %vm872_vm1, %v5181_v45, %v5182_v58  ;;  %v3130_v28 = vsel %vm872_vm1, 0.0, %v5181_v45 }
 0x814   : > { %v3119_v16 = vsel %vm872_vm1, %v5186_v22, %v5187_v29  ;;  %v3131_v23 = vsel %vm872_vm1, 0.0, %v5186_v22 }
 0x815   : > { %v4438_v37 = vpack.c.bf16 %v3119_v16, %v3118_v3  ;;  %v4441_v14 = vpack.c.bf16 %v3131_v23, %v3130_v28 }
 0x817   : > { %v5190_v20 = vpop.permute.xlu0 %5189  ;;  %4439 = vmatprep.subr.msk.bf16.mxu1 %vm6871_vm12, %v4438_v37 }
 0x818   : > { %v5192_v10 = vunpack.i.h.bf16 %v5190_v20  ;;  %v5191_v61 = vunpack.i.l.bf16 %v5190_v20  ;;  %4442 = vmatpush1.bf16.msk.msra.mxu1 %vm6875_vm13, %v4441_v14 }
 0x819   : > { %v5195_v56 = vpop.permute.xlu1 %5194 }
 0x81a   : > { %v5197_v30 = vunpack.i.h.bf16 %v5195_v56  ;;  %v5196_v57 = vunpack.i.l.bf16 %v5195_v56  ;;  %v3120_v11 = vsel %vm872_vm1, %v5191_v61, %v5192_v10  ;;  %v3132_v7 = vsel %vm872_vm1, 0.0, %v5191_v61 }
 0x81b   : > { %v5200_v26 = vpop.permute.xlu0 %5199 }
 0x81c   : > { %v3121_v0 = vsel %vm872_vm1, %v5196_v57, %v5197_v30  ;;  %v3133_v5 = vsel %vm872_vm1, 0.0, %v5196_v57  ;;  %v5202_v43 = vunpack.i.h.bf16 %v5200_v26  ;;  %v5201_v47 = vunpack.i.l.bf16 %v5200_v26 }
 0x81d   : > { %v4444_v33 = vpack.c.bf16 %v3121_v0, %v3120_v11  ;;  %v4447_v25 = vpack.c.bf16 %v3133_v5, %v3132_v7  ;;  %v5205_v59 = vpop.permute.xlu1 %5204 }
 0x81e   : > { %v3171_v8 = vsel %vm921_vm8, %v5202_v43, 0.0  ;;  %v3170_v46 = vsel %vm921_vm8, %v5201_v47, 0.0  ;;  %v5207_v63 = vunpack.i.h.bf16 %v5205_v59  ;;  %v5206_v36 = vunpack.i.l.bf16 %v5205_v59 }
 0x81f   : > { %4445 = vmatprep.subr.msk.bf16.mxu1 %vm6871_vm12, %v4444_v33  ;;  %v5210_v53 = vpop.permute.xlu0 %5209  ;;  %v4450_v31 = vpack.c.bf16 %v3171_v8, %v3170_v46 }
 0x820   : > { %4448 = vmatpush1.bf16.msk.msra.mxu1 %vm6875_vm13, %v4447_v25  ;;  %v5212_v17 = vunpack.i.h.bf16 %v5210_v53  ;;  %v5211_v34 = vunpack.i.l.bf16 %v5210_v53  ;;  %v3158_v19 = vsel %vm921_vm8, %v5206_v36, %v5201_v47  ;;  %v3159_v52 = vsel %vm921_vm8, %v5207_v63, %v5202_v43 }
 0x821   : > { %3242 = vmatprep.subr.bf16.mxu1 %v3187_v13  ;;  %v5215_v62 = vpop.permute.xlu1 %5214  ;;  %v4453_v48 = vpack.c.bf16 %v3159_v52, %v3158_v19  ;;  %v3450_v19 = vld [vmem:[%s7788_s13 + $0x8] sm:$0xff]  ;;  %v3451_v52 = vld [vmem:[%s7788_s13 + $0x10] sm:$0xff] }
 0x822   : > { %v5217_v49 = vunpack.i.h.bf16 %v5215_v62  ;;  %v5216_v13 = vunpack.i.l.bf16 %v5215_v62  ;;  %v3173_v4 = vsel %vm921_vm8, %v5212_v17, 0.0  ;;  %v3172_v50 = vsel %vm921_vm8, %v5211_v34, 0.0 }
 0x823   : > { %v4456_v18 = vpack.c.bf16 %v3173_v4, %v3172_v50 }
 0x824   : > { %3243 = vmatpush1.bf16.msra.mxu1 %v3186_v51  ;;  %v3160_v51 = vsel %vm921_vm8, %v5216_v13, %v5211_v34 }
 0x825   : > { %3244 = vmatprep.subr.bf16.mxu1 %v3189_v24  ;;  %v3161_v24 = vsel %vm921_vm8, %v5217_v49, %v5212_v17  ;;  %v3452_v49 = vld [vmem:[%s7788_s13 + $0x18] sm:$0xff] }
 0x826   : > { %v4459_v40 = vpack.c.bf16 %v3161_v24, %v3160_v51 }
 0x828   : > { %3245 = vmatpush1.bf16.msra.mxu1 %v3188_v55 }
 0x829   : > { %4451 = vmatprep.subr.msk.bf16.mxu1 %vm6901_vm7, %v4450_v31  ;;  %v3449_v31 = vld [vmem:[%s7788_s13] sm:$0xff] }
 0x82c   : > { %4454 = vmatpush1.bf16.msk.msra.mxu1 %vm6912_vm9, %v4453_v48 }
 0x82d   : > { %4457 = vmatprep.subr.msk.bf16.mxu1 %vm6901_vm7, %v4456_v18 }
 0x830   : > { %4460 = vmatpush1.bf16.msk.msra.mxu1 %vm6912_vm9, %v4459_v40  ;;  %v3205_v55 = vpop.permute.xlu0 %3204 }
 0x832   : > { %v3210_v29 = vpop.permute.xlu1 %3209 }
 0x833   : > { %4461 = vmatmul.mubr.msk.bf16.vlgmr.msra.gmra.mrb[40].mxu1 %vm2608_vm14, %v5418_v9 }
 0x834   : > { %3280 = vmatprep.mubr.bf16.mxu1 %v7926_v35  ;;  %v3215_v57 = vpop.permute.xlu0 %3214 }
 0x836   : > { %v3220_v0 = vpop.permute.xlu1 %3219 }
 0x83b   : > { %4462 = vmatmul.mubr.msk.bf16.gmra.mrb[44].mxu1 %vm2608_vm14, %v5419_v12 }
 0x83c   : > { %3726 = vmatprep.mubr.bf16.mxu1 %v7926_v35 }
 0x906   : > { %v3272_v58 = vpop.f32.mrb[40].mxu1 }
 0x907   : > { %v3273_v45 = vadd.f32 %v3272_v58, %v3205_v55  ;;  %v3274_v39 = vpop.f32.mrb[41].mxu1 }
 0x908   : > { %v3275_v22 = vadd.f32 %v3274_v39, %v3205_v55  ;;  %v3276_v3 = vpop.f32.mrb[42].mxu1 }
 0x909   : > { %v3291_v28 = vadd.f32 %v3273_v45, %v7047_v21  ;;  %v3277_v16 = vadd.f32 %v3276_v3, %v3210_v29  ;;  %v3278_v23 = vpop.f32.mrb[43].mxu1 }
 0x90a   : > { %v3292_v37 = vadd.f32 %v3275_v22, %v7050_v32  ;;  %v3279_v14 = vadd.f32 %v3278_v23, %v3210_v29 }
 0x90b   : > { %v7263_v20 = vmax.f32 %v3291_v28, 0.0  ;;  %v3293_v10 = vadd.f32 %v3277_v16, %v7053_v6 }
 0x90c   : > { %v7266_v61 = vmax.f32 %v3292_v37, 0.0  ;;  %v3294_v56 = vadd.f32 %v3279_v14, %v7055_v38 }
 0x90d   : > { %v7269_v30 = vmax.f32 %v3293_v10, 0.0 }
 0x90e   : > { %v7271_v26 = vmax.f32 %v3294_v56, 0.0  ;;  %v3282_v11 = vpop.f32.mrb[44].mxu1  ;;  %v5218_v21 = vpack.i.bf16 %v7266_v61, %v7263_v20 }
 0x90f   : > { %v3283_v7 = vadd.f32 %v3282_v11, %v3215_v57  ;;  %v3284_v32 = vpop.f32.mrb[45].mxu1 }
 0x910   : > { %v3285_v5 = vadd.f32 %v3284_v32, %v3215_v57  ;;  %v3286_v33 = vpop.f32.mrb[46].mxu1  ;;  %5219 = vrot.lane.b32.xlu0 %v5218_v21, %s7927_s30  ;;  %v5223_v6 = vpack.i.bf16 %v7271_v26, %v7269_v30  ;;  %v3438_v32 = vpack.c.bf16 %v7271_v26, %v7266_v61 }
 0x911   : > { %v3295_v38 = vadd.f32 %v3283_v7, %v7065_v54  ;;  %v3287_v25 = vadd.f32 %v3286_v33, %v3220_v0  ;;  %v3288_v59 = vpop.f32.mrb[47].mxu1 }
 0x912   : > { %v3296_v43 = vadd.f32 %v3285_v5, %v7068_v2  ;;  %v3289_v47 = vadd.f32 %v3288_v59, %v3220_v0  ;;  %5224 = vrot.lane.b32.xlu1 %v5223_v6, %s7927_s30  ;;  %v3437_v5 = vpack.c.bf16 %v7269_v30, %v7263_v20 }
 0x913   : > { %v7281_v53 = vmax.f32 %v3295_v38, 0.0  ;;  %v3297_v8 = vadd.f32 %v3287_v25, %v7071_v42  ;;  %v5238_v42 = vpack.i.bf16 %v7271_v26, %v7266_v61 }
 0x914   : > { %v7284_v46 = vmax.f32 %v3296_v43, 0.0  ;;  %v3298_v63 = vadd.f32 %v3289_v47, %v7073_v60  ;;  %v5243_v60 = vpack.i.bf16 %v7269_v30, %v7263_v20 }
 0x915   : > { %v7287_v36 = vmax.f32 %v3297_v8, 0.0 }
 0x916   : > { %v7289_v17 = vmax.f32 %v3298_v63, 0.0  ;;  %v5228_v54 = vpack.i.bf16 %v7284_v46, %v7281_v53 }
 0x917   : > { %v5253_v62 = vpack.i.bf16 %v7287_v36, %v7281_v53 }
 0x918   : > { %5229 = vrot.lane.b32.xlu0 %v5228_v54, %s7927_s30  ;;  %v5233_v2 = vpack.i.bf16 %v7289_v17, %v7287_v36  ;;  %v5248_v34 = vpack.i.bf16 %v7289_v17, %v7284_v46  ;;  %v3440_v33 = vpack.c.bf16 %v7289_v17, %v7284_v46  ;;  %v3439_v54 = vpack.c.bf16 %v7287_v36, %v7281_v53 }
 0x91a   : > { %5234 = vrot.lane.b32.xlu1 %v5233_v2, %s7927_s30 }
 0x91c   : > { %5239 = vrot.lane.b32.xlu0 %v5238_v42, %s5438_s4 }
 0x91e   : > { %5244 = vrot.lane.b32.xlu1 %v5243_v60, %s5438_s4 }
 0x920   : > { %5249 = vrot.lane.b32.xlu0 %v5248_v34, %s5438_s4 }
 0x922   : > { %5254 = vrot.lane.b32.xlu1 %v5253_v62, %s5438_s4 }
 0x924   : > { %3455 = vperm.xlu0 %4817, %v3449_v31  }
 0x926   : > { %3460 = vperm.xlu1 %4816, %v3450_v19  }
 0x928   : > { %3465 = vperm.xlu0 %4817, %v3451_v52  }
 0x92a   : > { %3470 = vperm.xlu1 %4816, %v3452_v49  }
 0x982   : > { %v5220_v13 = vpop.permute.xlu0 %5219 }
 0x983   : > { %v5222_v4 = vunpack.i.h.bf16 %v5220_v13  ;;  %v5221_v50 = vunpack.i.l.bf16 %v5220_v13 }
 0x984   : > { %v5225_v48 = vpop.permute.xlu1 %5224 }
 0x985   : > { %v5227_v18 = vunpack.i.h.bf16 %v5225_v48  ;;  %v5226_v51 = vunpack.i.l.bf16 %v5225_v48  ;;  %v3369_v24 = vsel %vm872_vm1, %v5221_v50, %v5222_v4  ;;  %v3381_v40 = vsel %vm872_vm1, 0.0, %v5221_v50  ;;  %v5420_v50 = vld [vmem:[%s7787_s12] sm:$0xff]   ;;  %v5421_v48 = vld [vmem:[%s7787_s12 + $0x8] sm:$0xff]  }
 0x987   : > { %v3370_v9 = vsel %vm872_vm1, %v5226_v51, %v5227_v18  ;;  %v3382_v12 = vsel %vm872_vm1, 0.0, %v5226_v51 }
 0x988   : > { %v4466_v55 = vpack.c.bf16 %v3370_v9, %v3369_v24  ;;  %v4469_v58 = vpack.c.bf16 %v3382_v12, %v3381_v40 }
 0x98a   : > { %v5230_v45 = vpop.permute.xlu0 %5229  ;;  %4467 = vmatprep.subr.msk.bf16.mxu0 %vm6871_vm12, %v4466_v55 }
 0x98b   : > { %v5232_v39 = vunpack.i.h.bf16 %v5230_v45  ;;  %v5231_v29 = vunpack.i.l.bf16 %v5230_v45  ;;  %4470 = vmatpush1.bf16.msk.msra.mxu0 %vm6875_vm13, %v4469_v58 }
 0x98c   : > { %v5235_v22 = vpop.permute.xlu1 %5234 }
 0x98d   : > { %v5237_v3 = vunpack.i.h.bf16 %v5235_v22  ;;  %v5236_v28 = vunpack.i.l.bf16 %v5235_v22  ;;  %v3371_v23 = vsel %vm872_vm1, %v5231_v29, %v5232_v39  ;;  %v3383_v37 = vsel %vm872_vm1, 0.0, %v5231_v29 }
 0x98e   : > { %v5240_v16 = vpop.permute.xlu0 %5239 }
 0x98f   : > { %v3372_v14 = vsel %vm872_vm1, %v5236_v28, %v5237_v3  ;;  %v3384_v10 = vsel %vm872_vm1, 0.0, %v5236_v28  ;;  %v5242_v21 = vunpack.i.h.bf16 %v5240_v16  ;;  %v5241_v7 = vunpack.i.l.bf16 %v5240_v16 }
 0x990   : > { %v4472_v56 = vpack.c.bf16 %v3372_v14, %v3371_v23  ;;  %v4475_v57 = vpack.c.bf16 %v3384_v10, %v3383_v37  ;;  %v5245_v11 = vpop.permute.xlu1 %5244 }
 0x991   : > { %v3422_v6 = vsel %vm921_vm8, %v5242_v21, 0.0  ;;  %v3421_v38 = vsel %vm921_vm8, %v5241_v7, 0.0  ;;  %v5247_v25 = vunpack.i.h.bf16 %v5245_v11  ;;  %v5246_v59 = vunpack.i.l.bf16 %v5245_v11 }
 0x992   : > { %4473 = vmatprep.subr.msk.bf16.mxu0 %vm6871_vm12, %v4472_v56  ;;  %v5250_v0 = vpop.permute.xlu0 %5249  ;;  %v4478_v63 = vpack.c.bf16 %v3422_v6, %v3421_v38 }
 0x993   : > { %4476 = vmatpush1.bf16.msk.msra.mxu0 %vm6875_vm13, %v4475_v57  ;;  %v5252_v43 = vunpack.i.h.bf16 %v5250_v0  ;;  %v5251_v47 = vunpack.i.l.bf16 %v5250_v0  ;;  %v3409_v2 = vsel %vm921_vm8, %v5246_v59, %v5241_v7  ;;  %v3410_v42 = vsel %vm921_vm8, %v5247_v25, %v5242_v21 }
 0x994   : > { %3493 = vmatprep.subr.bf16.mxu0 %v3438_v32  ;;  %v5255_v8 = vpop.permute.xlu1 %5254  ;;  %v4481_v19 = vpack.c.bf16 %v3410_v42, %v3409_v2 }
 0x995   : > { %v5257_v60 = vunpack.i.h.bf16 %v5255_v8  ;;  %v5256_v34 = vunpack.i.l.bf16 %v5255_v8  ;;  %v3424_v62 = vsel %vm921_vm8, %v5252_v43, 0.0  ;;  %v3423_v31 = vsel %vm921_vm8, %v5251_v47, 0.0 }
 0x996   : > { %v4484_v52 = vpack.c.bf16 %v3424_v62, %v3423_v31  ;;  %v3655_v62 = vld [vmem:[%s7790_s15 + $0x8] sm:$0xff]  ;;  %v3656_v31 = vld [vmem:[%s7790_s15 + $0x10] sm:$0xff] }
 0x997   : > { %3494 = vmatpush1.bf16.msra.mxu0 %v3437_v5  ;;  %v3411_v49 = vsel %vm921_vm8, %v5256_v34, %v5251_v47  ;;  %v3412_v13 = vsel %vm921_vm8, %v5257_v60, %v5252_v43  ;;  %v3654_v34 = vld [vmem:[%s7790_s15] sm:$0xff] }
 0x998   : > { %3495 = vmatprep.subr.bf16.mxu0 %v3440_v33  ;;  %v4487_v4 = vpack.c.bf16 %v3412_v13, %v3411_v49 }
 0x99b   : > { %3496 = vmatpush1.bf16.msra.mxu0 %v3439_v54 }
 0x99c   : > { %4479 = vmatprep.subr.msk.bf16.mxu0 %vm6901_vm7, %v4478_v63 }
 0x99f   : > { %4482 = vmatpush1.bf16.msk.msra.mxu0 %vm6912_vm9, %v4481_v19  ;;  %v3657_v19 = vld [vmem:[%s7790_s15 + $0x18] sm:$0xff] }
 0x9a0   : > { %4485 = vmatprep.subr.msk.bf16.mxu0 %vm6901_vm7, %v4484_v52 }
 0x9a3   : > { %4488 = vmatpush1.bf16.msk.msra.mxu0 %vm6912_vm9, %v4487_v4  ;;  %v3456_v18 = vpop.permute.xlu0 %3455 }
 0x9a5   : > { %v3461_v9 = vpop.permute.xlu1 %3460 }
 0x9a6   : > { %4489 = vmatmul.mubr.msk.bf16.vlgmr.msra.gmra.mrb[48].mxu0 %vm2608_vm14, %v5420_v50 }
 0x9a7   : > { %3531 = vmatprep.mubr.bf16.mxu0 %v7926_v35  ;;  %v3466_v14 = vpop.permute.xlu0 %3465 }
 0x9a9   : > { %v3471_v32 = vpop.permute.xlu1 %3470 }
 0x9ae   : > { %4490 = vmatmul.mubr.msk.bf16.gmra.mrb[52].mxu0 %vm2608_vm14, %v5421_v48 }
 0x9af   : > { %3939 = vmatprep.mubr.bf16.mxu0 %v7926_v35 }
 0xa79   : > { %v3523_v51 = vpop.f32.mrb[48].mxu0 }
 0xa7a   : > { %v3524_v24 = vadd.f32 %v3523_v51, %v3456_v18  ;;  %v3525_v40 = vpop.f32.mrb[49].mxu0 }
 0xa7b   : > { %v3526_v12 = vadd.f32 %v3525_v40, %v3456_v18  ;;  %v3527_v55 = vpop.f32.mrb[50].mxu0 }
 0xa7c   : > { %v7371_v58 = vmax.f32 %v3524_v24, 0.0  ;;  %v3528_v45 = vadd.f32 %v3527_v55, %v3461_v9  ;;  %v3529_v39 = vpop.f32.mrb[51].mxu0 }
 0xa7d   : > { %v7373_v29 = vmax.f32 %v3526_v12, 0.0  ;;  %v3530_v22 = vadd.f32 %v3529_v39, %v3461_v9 }
 0xa7e   : > { %v7375_v3 = vmax.f32 %v3528_v45, 0.0 }
 0xa7f   : > { %v5258_v28 = vpack.i.bf16 %v7373_v29, %v7371_v58  ;;  %v7379_v16 = vmax.f32 %v3530_v22, 0.0 }
 0xa80   : > { %v5283_v23 = vpack.i.bf16 %v7375_v3, %v7371_v58  ;;  %v3642_v37 = vpack.c.bf16 %v7375_v3, %v7371_v58 }
 0xa81   : > { %v5263_v10 = vpack.i.bf16 %v7379_v16, %v7375_v3  ;;  %v5278_v56 = vpack.i.bf16 %v7379_v16, %v7373_v29  ;;  %v3533_v57 = vpop.f32.mrb[52].mxu0  ;;  %5259 = vrot.lane.b32.xlu0 %v5258_v28, %s7927_s30  ;;  %v3643_v11 = vpack.c.bf16 %v7379_v16, %v7373_v29 }
 0xa82   : > { %v3534_v21 = vadd.f32 %v3533_v57, %v3466_v14  ;;  %v3535_v7 = vpop.f32.mrb[53].mxu0 }
 0xa83   : > { %v3536_v0 = vadd.f32 %v3535_v7, %v3466_v14  ;;  %v3537_v5 = vpop.f32.mrb[54].mxu0  ;;  %5264 = vrot.lane.b32.xlu1 %v5263_v10, %s7927_s30 }
 0xa84   : > { %v7393_v33 = vmax.f32 %v3534_v21, 0.0  ;;  %v3538_v6 = vadd.f32 %v3537_v5, %v3471_v32  ;;  %v3539_v38 = vpop.f32.mrb[55].mxu0 }
 0xa85   : > { %v7395_v25 = vmax.f32 %v3536_v0, 0.0  ;;  %v3540_v59 = vadd.f32 %v3539_v38, %v3471_v32 }
 0xa86   : > { %v7397_v43 = vmax.f32 %v3538_v6, 0.0 }
 0xa87   : > { %v5268_v47 = vpack.i.bf16 %v7395_v25, %v7393_v33  ;;  %v3549_v8 = vmax.f32 %v3540_v59, 0.0 }
 0xa88   : > { %v5293_v63 = vpack.i.bf16 %v7397_v43, %v7393_v33  ;;  %v3644_v54 = vpack.c.bf16 %v7397_v43, %v7393_v33  ;;  %v5422_v33 = vld [vmem:[%s7789_s14] sm:$0xff]  }
 0xa89   : > { %v5273_v2 = vpack.i.bf16 %v3549_v8, %v7397_v43  ;;  %v5288_v42 = vpack.i.bf16 %v3549_v8, %v7395_v25  ;;  %5269 = vrot.lane.b32.xlu0 %v5268_v47, %s7927_s30  ;;  %v3645_v60 = vpack.c.bf16 %v3549_v8, %v7395_v25  ;;  %v5423_v43 = vld [vmem:[%s7789_s14 + $0x8] sm:$0xff]  }
 0xa8b   : > { %5274 = vrot.lane.b32.xlu1 %v5273_v2, %s7927_s30 }
 0xa8d   : > { %5279 = vrot.lane.b32.xlu0 %v5278_v56, %s5438_s4 }
 0xa8f   : > { %5284 = vrot.lane.b32.xlu1 %v5283_v23, %s5438_s4 }
 0xa91   : > { %5289 = vrot.lane.b32.xlu0 %v5288_v42, %s5438_s4 }
 0xa93   : > { %5294 = vrot.lane.b32.xlu1 %v5293_v63, %s5438_s4 }
 0xa95   : > { %3660 = vperm.xlu0 %4817, %v3654_v34  }
 0xa97   : > { %3665 = vperm.xlu1 %4816, %v3655_v62  }
 0xa99   : > { %3670 = vperm.xlu0 %4817, %v3656_v31  }
 0xa9b   : > { %3675 = vperm.xlu1 %4816, %v3657_v19  }
 0xaf3   : > { %v5260_v52 = vpop.permute.xlu0 %5259 }
 0xaf4   : > { %v5262_v49 = vunpack.i.h.bf16 %v5260_v52  ;;  %v5261_v13 = vunpack.i.l.bf16 %v5260_v52 }
 0xaf5   : > { %v5265_v4 = vpop.permute.xlu1 %5264 }
 0xaf6   : > { %v5267_v50 = vunpack.i.h.bf16 %v5265_v4  ;;  %v5266_v48 = vunpack.i.l.bf16 %v5265_v4  ;;  %v3574_v18 = vsel %vm872_vm1, %v5261_v13, %v5262_v49  ;;  %v3586_v51 = vsel %vm872_vm1, 0.0, %v5261_v13 }
 0xaf8   : > { %v3575_v24 = vsel %vm872_vm1, %v5266_v48, %v5267_v50  ;;  %v3587_v40 = vsel %vm872_vm1, 0.0, %v5266_v48 }
 0xaf9   : > { %v4494_v9 = vpack.c.bf16 %v3575_v24, %v3574_v18  ;;  %v4497_v12 = vpack.c.bf16 %v3587_v40, %v3586_v51 }
 0xafb   : > { %v5270_v55 = vpop.permute.xlu0 %5269  ;;  %4495 = vmatprep.subr.msk.bf16.mxu1 %vm6871_vm12, %v4494_v9 }
 0xafc   : > { %v5272_v45 = vunpack.i.h.bf16 %v5270_v55  ;;  %v5271_v39 = vunpack.i.l.bf16 %v5270_v55  ;;  %4498 = vmatpush1.bf16.msk.msra.mxu1 %vm6875_vm13, %v4497_v12 }
 0xafd   : > { %v5275_v22 = vpop.permute.xlu1 %5274 }
 0xafe   : > { %v5277_v28 = vunpack.i.h.bf16 %v5275_v22  ;;  %v5276_v23 = vunpack.i.l.bf16 %v5275_v22  ;;  %v3576_v10 = vsel %vm872_vm1, %v5271_v39, %v5272_v45  ;;  %v3588_v56 = vsel %vm872_vm1, 0.0, %v5271_v39 }
 0xaff   : > { %v5280_v14 = vpop.permute.xlu0 %5279 }
 0xb00   : > { %v3577_v57 = vsel %vm872_vm1, %v5276_v23, %v5277_v28  ;;  %v3589_v21 = vsel %vm872_vm1, 0.0, %v5276_v23  ;;  %v5282_v5 = vunpack.i.h.bf16 %v5280_v14  ;;  %v5281_v6 = vunpack.i.l.bf16 %v5280_v14 }
 0xb01   : > { %v4500_v7 = vpack.c.bf16 %v3577_v57, %v3576_v10  ;;  %v4503_v32 = vpack.c.bf16 %v3589_v21, %v3588_v56  ;;  %v5285_v0 = vpop.permute.xlu1 %5284 }
 0xb02   : > { %v3627_v25 = vsel %vm921_vm8, %v5282_v5, 0.0  ;;  %v3626_v59 = vsel %vm921_vm8, %v5281_v6, 0.0  ;;  %v5287_v47 = vunpack.i.h.bf16 %v5285_v0  ;;  %v5286_v8 = vunpack.i.l.bf16 %v5285_v0 }
 0xb03   : > { %4501 = vmatprep.subr.msk.bf16.mxu1 %vm6871_vm12, %v4500_v7  ;;  %v5290_v38 = vpop.permute.xlu0 %5289  ;;  %v4506_v34 = vpack.c.bf16 %v3627_v25, %v3626_v59 }
 0xb04   : > { %4504 = vmatpush1.bf16.msk.msra.mxu1 %vm6875_vm13, %v4503_v32  ;;  %v5292_v63 = vunpack.i.h.bf16 %v5290_v38  ;;  %v5291_v2 = vunpack.i.l.bf16 %v5290_v38  ;;  %v3614_v62 = vsel %vm921_vm8, %v5286_v8, %v5281_v6  ;;  %v3615_v29 = vsel %vm921_vm8, %v5287_v47, %v5282_v5 }
 0xb05   : > { %3698 = vmatprep.subr.bf16.mxu1 %v3643_v11  ;;  %v5295_v42 = vpop.permute.xlu1 %5294  ;;  %v4509_v58 = vpack.c.bf16 %v3615_v29, %v3614_v62 }
 0xb06   : > { %v5297_v16 = vunpack.i.h.bf16 %v5295_v42  ;;  %v5296_v11 = vunpack.i.l.bf16 %v5295_v42  ;;  %v3629_v31 = vsel %vm921_vm8, %v5292_v63, 0.0  ;;  %v3628_v19 = vsel %vm921_vm8, %v5291_v2, 0.0 }
 0xb07   : > { %v4512_v3 = vpack.c.bf16 %v3629_v31, %v3628_v19 }
 0xb08   : > { %3699 = vmatpush1.bf16.msra.mxu1 %v3642_v37  ;;  %v3616_v37 = vsel %vm921_vm8, %v5296_v11, %v5291_v2 }
 0xb09   : > { %3700 = vmatprep.subr.bf16.mxu1 %v3645_v60  ;;  %v3617_v60 = vsel %vm921_vm8, %v5297_v16, %v5292_v63 }
 0xb0a   : > { %v4515_v52 = vpack.c.bf16 %v3617_v60, %v3616_v37  ;;  %v3868_v37 = vld [vmem:[%s7792_s17 + $0x8] sm:$0xff]  ;;  %v3869_v60 = vld [vmem:[%s7792_s17 + $0x10] sm:$0xff] }
 0xb0c   : > { %3701 = vmatpush1.bf16.msra.mxu1 %v3644_v54 }
 0xb0d   : > { %4507 = vmatprep.subr.msk.bf16.mxu1 %vm6901_vm7, %v4506_v34 }
 0xb10   : > { %4510 = vmatpush1.bf16.msk.msra.mxu1 %vm6912_vm9, %v4509_v58 }
 0xb11   : > { %4513 = vmatprep.subr.msk.bf16.mxu1 %vm6901_vm7, %v4512_v3  ;;  %v3867_v3 = vld [vmem:[%s7792_s17] sm:$0xff] }
 0xb14   : > { %4516 = vmatpush1.bf16.msk.msra.mxu1 %vm6912_vm9, %v4515_v52  ;;  %v3661_v54 = vpop.permute.xlu0 %3660  ;;  %v3870_v52 = vld [vmem:[%s7792_s17 + $0x18] sm:$0xff] }
 0xb16   : > { %v3666_v50 = vpop.permute.xlu1 %3665 }
 0xb17   : > { %4517 = vmatmul.mubr.msk.bf16.vlgmr.msra.gmra.mrb[48].mxu1 %vm2608_vm14, %v5422_v33 }
 0xb18   : > { %3736 = vmatprep.mubr.bf16.mxu1 %v7926_v35  ;;  %v3671_v23 = vpop.permute.xlu0 %3670 }
 0xb1a   : > { %v3676_v7 = vpop.permute.xlu1 %3675 }
 0xb1f   : > { %4518 = vmatmul.mubr.msk.bf16.gmra.mrb[52].mxu1 %vm2608_vm14, %v5423_v43 }
 0xb20   : > { %4144 = vmatprep.mubr.bf16.mxu1 %v7926_v35 }
 0xbea   : > { %v3728_v49 = vpop.f32.mrb[48].mxu1 }
 0xbeb   : > { %v3729_v13 = vadd.f32 %v3728_v49, %v3661_v54  ;;  %v3730_v4 = vpop.f32.mrb[49].mxu1 }
 0xbec   : > { %v3731_v48 = vadd.f32 %v3730_v4, %v3661_v54  ;;  %v3732_v18 = vpop.f32.mrb[50].mxu1 }
 0xbed   : > { %v3747_v51 = vadd.f32 %v3729_v13, %v7263_v20  ;;  %v3733_v24 = vadd.f32 %v3732_v18, %v3666_v50  ;;  %v3734_v40 = vpop.f32.mrb[51].mxu1 }
 0xbee   : > { %v3748_v9 = vadd.f32 %v3731_v48, %v7266_v61  ;;  %v3735_v12 = vadd.f32 %v3734_v40, %v3666_v50 }
 0xbef   : > { %v7479_v55 = vmax.f32 %v3747_v51, 0.0  ;;  %v3749_v45 = vadd.f32 %v3733_v24, %v7269_v30 }
 0xbf0   : > { %v7482_v39 = vmax.f32 %v3748_v9, 0.0  ;;  %v3750_v22 = vadd.f32 %v3735_v12, %v7271_v26 }
 0xbf1   : > { %v7485_v28 = vmax.f32 %v3749_v45, 0.0 }
 0xbf2   : > { %v7487_v14 = vmax.f32 %v3750_v22, 0.0  ;;  %v3738_v10 = vpop.f32.mrb[52].mxu1  ;;  %v5298_v56 = vpack.i.bf16 %v7482_v39, %v7479_v55 }
 0xbf3   : > { %v3739_v57 = vadd.f32 %v3738_v10, %v3671_v23  ;;  %v3740_v21 = vpop.f32.mrb[53].mxu1  ;;  %v5323_v31 = vpack.i.bf16 %v7485_v28, %v7479_v55 }
 0xbf4   : > { %v3741_v32 = vadd.f32 %v3740_v21, %v3671_v23  ;;  %v3742_v0 = vpop.f32.mrb[54].mxu1  ;;  %5299 = vrot.lane.b32.xlu0 %v5298_v56, %s7927_s30  ;;  %v5303_v5 = vpack.i.bf16 %v7487_v14, %v7485_v28  ;;  %v5318_v11 = vpack.i.bf16 %v7487_v14, %v7482_v39 }
 0xbf5   : > { %v3751_v6 = vadd.f32 %v3739_v57, %v7281_v53  ;;  %v3743_v38 = vadd.f32 %v3742_v0, %v3676_v7  ;;  %v3744_v25 = vpop.f32.mrb[55].mxu1 }
 0xbf6   : > { %v3752_v59 = vadd.f32 %v3741_v32, %v7284_v46  ;;  %v3745_v47 = vadd.f32 %v3744_v25, %v3676_v7  ;;  %5304 = vrot.lane.b32.xlu1 %v5303_v5, %s7927_s30 }
 0xbf7   : > { %v7497_v8 = vmax.f32 %v3751_v6, 0.0  ;;  %v3753_v63 = vadd.f32 %v3743_v38, %v7287_v36 }
 0xbf8   : > { %v7500_v2 = vmax.f32 %v3752_v59, 0.0  ;;  %v3754_v42 = vadd.f32 %v3745_v47, %v7289_v17  ;;  %v3856_v59 = vpack.c.bf16 %v7487_v14, %v7482_v39 }
 0xbf9   : > { %v7503_v34 = vmax.f32 %v3753_v63, 0.0  ;;  %v3855_v63 = vpack.c.bf16 %v7485_v28, %v7479_v55 }
 0xbfa   : > { %v7505_v62 = vmax.f32 %v3754_v42, 0.0  ;;  %v5308_v29 = vpack.i.bf16 %v7500_v2, %v7497_v8 }
 0xbfb   : > { %v5333_v58 = vpack.i.bf16 %v7503_v34, %v7497_v8 }
 0xbfc   : > { %5309 = vrot.lane.b32.xlu0 %v5308_v29, %s7927_s30  ;;  %v5313_v16 = vpack.i.bf16 %v7505_v62, %v7503_v34  ;;  %v5328_v19 = vpack.i.bf16 %v7505_v62, %v7500_v2  ;;  %v3858_v42 = vpack.c.bf16 %v7505_v62, %v7500_v2 }
 0xbfe   : > { %5314 = vrot.lane.b32.xlu1 %v5313_v16, %s7927_s30 }
 0xc00   : > { %5319 = vrot.lane.b32.xlu0 %v5318_v11, %s5438_s4 }
 0xc02   : > { %5324 = vrot.lane.b32.xlu1 %v5323_v31, %s5438_s4 }
 0xc04   : > { %5329 = vrot.lane.b32.xlu0 %v5328_v19, %s5438_s4 }
 0xc06   : > { %5334 = vrot.lane.b32.xlu1 %v5333_v58, %s5438_s4 }
 0xc08   : > { %3873 = vperm.xlu0 %4817, %v3867_v3  }
 0xc0a   : > { %3878 = vperm.xlu1 %4816, %v3868_v37  }
 0xc0c   : > { %3883 = vperm.xlu0 %4817, %v3869_v60   ;;  %v3857_v60 = vpack.c.bf16 %v7503_v34, %v7497_v8 }
 0xc0e   : > { %3888 = vperm.xlu1 %4816, %v3870_v52  }
 0xc66   : > { %v5300_v33 = vpop.permute.xlu0 %5299 }
 0xc67   : > { %v5302_v43 = vunpack.i.h.bf16 %v5300_v33  ;;  %v5301_v54 = vunpack.i.l.bf16 %v5300_v33 }
 0xc68   : > { %v5305_v49 = vpop.permute.xlu1 %5304 }
 0xc69   : > { %v5307_v13 = vunpack.i.h.bf16 %v5305_v49  ;;  %v5306_v4 = vunpack.i.l.bf16 %v5305_v49  ;;  %v3787_v50 = vsel %vm872_vm1, %v5301_v54, %v5302_v43  ;;  %v3799_v48 = vsel %vm872_vm1, 0.0, %v5301_v54 }
 0xc6b   : > { %v3788_v18 = vsel %vm872_vm1, %v5306_v4, %v5307_v13  ;;  %v3800_v51 = vsel %vm872_vm1, 0.0, %v5306_v4 }
 0xc6c   : > { %v4522_v24 = vpack.c.bf16 %v3788_v18, %v3787_v50  ;;  %v4525_v40 = vpack.c.bf16 %v3800_v51, %v3799_v48 }
 0xc6e   : > { %v5310_v9 = vpop.permute.xlu0 %5309  ;;  %4523 = vmatprep.subr.msk.bf16.mxu0 %vm6871_vm12, %v4522_v24  ;;  %v5424_v24 = vld [vmem:[%s7791_s16] sm:$0xff]  }
 0xc6f   : > { %v5312_v12 = vunpack.i.h.bf16 %v5310_v9  ;;  %v5311_v45 = vunpack.i.l.bf16 %v5310_v9  ;;  %4526 = vmatpush1.bf16.msk.msra.mxu0 %vm6875_vm13, %v4525_v40  ;;  %v5425_v40 = vld [vmem:[%s7791_s16 + $0x8] sm:$0xff]  }
 0xc70   : > { %v5315_v22 = vpop.permute.xlu1 %5314 }
 0xc71   : > { %v5317_v23 = vunpack.i.h.bf16 %v5315_v22  ;;  %v5316_v10 = vunpack.i.l.bf16 %v5315_v22  ;;  %v3789_v57 = vsel %vm872_vm1, %v5311_v45, %v5312_v12  ;;  %v3801_v21 = vsel %vm872_vm1, 0.0, %v5311_v45 }
 0xc72   : > { %v5320_v56 = vpop.permute.xlu0 %5319 }
 0xc73   : > { %v3790_v7 = vsel %vm872_vm1, %v5316_v10, %v5317_v23  ;;  %v3802_v32 = vsel %vm872_vm1, 0.0, %v5316_v10  ;;  %v5322_v38 = vunpack.i.h.bf16 %v5320_v56  ;;  %v5321_v25 = vunpack.i.l.bf16 %v5320_v56 }
 0xc74   : > { %v4528_v0 = vpack.c.bf16 %v3790_v7, %v3789_v57  ;;  %v4531_v5 = vpack.c.bf16 %v3802_v32, %v3801_v21  ;;  %v5325_v6 = vpop.permute.xlu1 %5324 }
 0xc75   : > { %v3840_v29 = vsel %vm921_vm8, %v5322_v38, 0.0  ;;  %v3839_v16 = vsel %vm921_vm8, %v5321_v25, 0.0  ;;  %v5327_v11 = vunpack.i.h.bf16 %v5325_v6  ;;  %v5326_v31 = vunpack.i.l.bf16 %v5325_v6 }
 0xc76   : > { %4529 = vmatprep.subr.msk.bf16.mxu0 %vm6871_vm12, %v4528_v0  ;;  %v5330_v47 = vpop.permute.xlu0 %5329  ;;  %v4534_v37 = vpack.c.bf16 %v3840_v29, %v3839_v16 }
 0xc77   : > { %4532 = vmatpush1.bf16.msk.msra.mxu0 %vm6875_vm13, %v4531_v5  ;;  %v5332_v19 = vunpack.i.h.bf16 %v5330_v47  ;;  %v5331_v58 = vunpack.i.l.bf16 %v5330_v47  ;;  %v3827_v52 = vsel %vm921_vm8, %v5326_v31, %v5321_v25  ;;  %v3828_v33 = vsel %vm921_vm8, %v5327_v11, %v5322_v38 }
 0xc78   : > { %3911 = vmatprep.subr.bf16.mxu0 %v3856_v59  ;;  %v5335_v3 = vpop.permute.xlu1 %5334  ;;  %v4537_v4 = vpack.c.bf16 %v3828_v33, %v3827_v52 }
 0xc79   : > { %v5337_v43 = vunpack.i.h.bf16 %v5335_v3  ;;  %v5336_v54 = vunpack.i.l.bf16 %v5335_v3  ;;  %v3842_v49 = vsel %vm921_vm8, %v5332_v19, 0.0  ;;  %v3841_v13 = vsel %vm921_vm8, %v5331_v58, 0.0 }
 0xc7a   : > { %v4540_v50 = vpack.c.bf16 %v3842_v49, %v3841_v13 }
 0xc7b   : > { %3912 = vmatpush1.bf16.msra.mxu0 %v3855_v63  ;;  %v3829_v48 = vsel %vm921_vm8, %v5336_v54, %v5331_v58  ;;  %v3830_v18 = vsel %vm921_vm8, %v5337_v43, %v5332_v19 }
 0xc7c   : > { %3913 = vmatprep.subr.bf16.mxu0 %v3858_v42  ;;  %v4543_v51 = vpack.c.bf16 %v3830_v18, %v3829_v48 }
 0xc7f   : > { %3914 = vmatpush1.bf16.msra.mxu0 %v3857_v60 }
 0xc80   : > { %4535 = vmatprep.subr.msk.bf16.mxu0 %vm6901_vm7, %v4534_v37 }
 0xc83   : > { %4538 = vmatpush1.bf16.msk.msra.mxu0 %vm6912_vm9, %v4537_v4 }
 0xc84   : > { %4541 = vmatprep.subr.msk.bf16.mxu0 %vm6901_vm7, %v4540_v50 }
 0xc87   : > { %4544 = vmatpush1.bf16.msk.msra.mxu0 %vm6912_vm9, %v4543_v51  ;;  %v3874_v9 = vpop.permute.xlu0 %3873 }
 0xc89   : > { %v3879_v23 = vpop.permute.xlu1 %3878 }
 0xc8a   : > { %4545 = vmatmul.mubr.msk.bf16.vlgmr.msra.gmra.mrb[56].mxu0 %vm2608_vm14, %v5424_v24  ;;  %v4072_v24 = vld [vmem:[%s7794_s19] sm:$0xff] }
 0xc8b   : > { %3949 = vmatprep.mubr.bf16.mxu0 %v7926_v35  ;;  %v3884_v47 = vpop.permute.xlu0 %3883 }
 0xc8d   : > { %v3889_v19 = vpop.permute.xlu1 %3888 }
 0xc92   : > { %4546 = vmatmul.mubr.msk.bf16.gmra.mrb[60].mxu0 %vm2608_vm14, %v5425_v40  ;;  %v4073_v40 = vld [vmem:[%s7794_s19 + $0x8] sm:$0xff] }
 0xd5d   : > { %v3941_v12 = vpop.f32.mrb[56].mxu0 }
 0xd5e   : > { %v3942_v45 = vadd.f32 %v3941_v12, %v3874_v9  ;;  %v3943_v22 = vpop.f32.mrb[57].mxu0  ;;  %v4075_v12 = vld [vmem:[%s7794_s19 + $0x18] sm:$0xff] }
 0xd5f   : > { %v3944_v10 = vadd.f32 %v3943_v22, %v3874_v9  ;;  %v3945_v56 = vpop.f32.mrb[58].mxu0  ;;  %v4074_v9 = vld [vmem:[%s7794_s19 + $0x10] sm:$0xff] }
 0xd60   : > { %v7586_v57 = vmax.f32 %v3942_v45, 0.0  ;;  %v3946_v21 = vadd.f32 %v3945_v56, %v3879_v23  ;;  %v3947_v7 = vpop.f32.mrb[59].mxu0 }
 0xd61   : > { %v7588_v32 = vmax.f32 %v3944_v10, 0.0  ;;  %v3948_v0 = vadd.f32 %v3947_v7, %v3879_v23 }
 0xd62   : > { %v7590_v5 = vmax.f32 %v3946_v21, 0.0 }
 0xd63   : > { %v5338_v6 = vpack.i.bf16 %v7588_v32, %v7586_v57  ;;  %v7594_v38 = vmax.f32 %v3948_v0, 0.0 }
 0xd64   : > { %v5363_v25 = vpack.i.bf16 %v7590_v5, %v7586_v57  ;;  %v4060_v59 = vpack.c.bf16 %v7590_v5, %v7586_v57 }
 0xd65   : > { %v5343_v63 = vpack.i.bf16 %v7594_v38, %v7590_v5  ;;  %v5358_v42 = vpack.i.bf16 %v7594_v38, %v7588_v32  ;;  %v3951_v29 = vpop.f32.mrb[60].mxu0  ;;  %5339 = vrot.lane.b32.xlu0 %v5338_v6, %s7927_s30  ;;  %v4061_v16 = vpack.c.bf16 %v7594_v38, %v7588_v32 }
 0xd66   : > { %v3952_v11 = vadd.f32 %v3951_v29, %v3884_v47  ;;  %v3953_v31 = vpop.f32.mrb[61].mxu0 }
 0xd67   : > { %v3954_v58 = vadd.f32 %v3953_v31, %v3884_v47  ;;  %v3955_v3 = vpop.f32.mrb[62].mxu0  ;;  %5344 = vrot.lane.b32.xlu1 %v5343_v63, %s7927_s30 }
 0xd68   : > { %v7608_v37 = vmax.f32 %v3952_v11, 0.0  ;;  %v3956_v60 = vadd.f32 %v3955_v3, %v3889_v19  ;;  %v3957_v52 = vpop.f32.mrb[63].mxu0 }
 0xd69   : > { %v7610_v33 = vmax.f32 %v3954_v58, 0.0  ;;  %v3958_v43 = vadd.f32 %v3957_v52, %v3889_v19 }
 0xd6a   : > { %v7612_v54 = vmax.f32 %v3956_v60, 0.0 }
 0xd6b   : > { %v5348_v49 = vpack.i.bf16 %v7610_v33, %v7608_v37  ;;  %v7616_v13 = vmax.f32 %v3958_v43, 0.0 }
 0xd6c   : > { %v5373_v4 = vpack.i.bf16 %v7612_v54, %v7608_v37  ;;  %v4062_v50 = vpack.c.bf16 %v7612_v54, %v7608_v37  ;;  %v5426_v37 = vld [vmem:[%s7793_s18] sm:$0xff]  }
 0xd6d   : > { %v5353_v48 = vpack.i.bf16 %v7616_v13, %v7612_v54  ;;  %v5368_v18 = vpack.i.bf16 %v7616_v13, %v7610_v33  ;;  %5349 = vrot.lane.b32.xlu0 %v5348_v49, %s7927_s30  ;;  %v4063_v51 = vpack.c.bf16 %v7616_v13, %v7610_v33  ;;  %v5427_v54 = vld [vmem:[%s7793_s18 + $0x8] sm:$0xff]  }
 0xd6f   : > { %5354 = vrot.lane.b32.xlu1 %v5353_v48, %s7927_s30 }
 0xd71   : > { %5359 = vrot.lane.b32.xlu0 %v5358_v42, %s5438_s4 }
 0xd73   : > { %5364 = vrot.lane.b32.xlu1 %v5363_v25, %s5438_s4 }
 0xd75   : > { %5369 = vrot.lane.b32.xlu0 %v5368_v18, %s5438_s4 }
 0xd77   : > { %5374 = vrot.lane.b32.xlu1 %v5373_v4, %s5438_s4 }
 0xd79   : > { %4078 = vperm.xlu0 %4817, %v4072_v24  }
 0xd7b   : > { %4083 = vperm.xlu1 %4816, %v4073_v40  }
 0xd7d   : > { %4088 = vperm.xlu0 %4817, %v4074_v9  }
 0xd7f   : > { %4093 = vperm.xlu1 %4816, %v4075_v12  }
 0xd9c   : > { %3307 = vadd.xlane.f32.xlu0 %v7263_v20 }
 0xda0   : > { %3311 = vadd.xlane.f32.xlu0 %v7281_v53 }
 0xda3   : > { %3309 = vadd.xlane.f32.xlu1 %v7269_v30 }
 0xda4   : > { %3313 = vadd.xlane.f32.xlu0 %v7287_v36 }
 0xda7   : > { %3324 = vadd.xlane.f32.xlu1 %v7266_v61 }
 0xda8   : > { %3326 = vadd.xlane.f32.xlu0 %v7271_v26 }
 0xdab   : > { %3328 = vadd.xlane.f32.xlu1 %v7284_v46 }
 0xdac   : > { %3330 = vadd.xlane.f32.xlu0 %v7289_v17 }
 0xdd7   : > { %v5340_v45 = vpop.permute.xlu0 %5339 }
 0xdd8   : > { %v5342_v22 = vunpack.i.h.bf16 %v5340_v45  ;;  %v5341_v23 = vunpack.i.l.bf16 %v5340_v45 }
 0xdd9   : > { %v5345_v10 = vpop.permute.xlu1 %5344 }
 0xdda   : > { %v5347_v56 = vunpack.i.h.bf16 %v5345_v10  ;;  %v5346_v20 = vunpack.i.l.bf16 %v5345_v10  ;;  %v3992_v53 = vsel %vm872_vm1, %v5341_v23, %v5342_v22  ;;  %v4004_v30 = vsel %vm872_vm1, 0.0, %v5341_v23 }
 0xddc   : > { %v3993_v36 = vsel %vm872_vm1, %v5346_v20, %v5347_v56  ;;  %v4005_v61 = vsel %vm872_vm1, 0.0, %v5346_v20 }
 0xddd   : > { %v4550_v21 = vpack.c.bf16 %v3993_v36, %v3992_v53  ;;  %v4553_v26 = vpack.c.bf16 %v4005_v61, %v4004_v30 }
 0xddf   : > { %v5350_v7 = vpop.permute.xlu0 %5349  ;;  %4551 = vmatprep.subr.msk.bf16.mxu1 %vm6871_vm12, %v4550_v21 }
 0xde0   : > { %v5352_v46 = vunpack.i.h.bf16 %v5350_v7  ;;  %v5351_v17 = vunpack.i.l.bf16 %v5350_v7  ;;  %4554 = vmatpush1.bf16.msk.msra.mxu1 %vm6875_vm13, %v4553_v26 }
 0xde1   : > { %v5355_v0 = vpop.permute.xlu1 %5354 }
 0xde2   : > { %v5357_v6 = vunpack.i.h.bf16 %v5355_v0  ;;  %v5356_v25 = vunpack.i.l.bf16 %v5355_v0  ;;  %v3994_v63 = vsel %vm872_vm1, %v5351_v17, %v5352_v46  ;;  %v4006_v42 = vsel %vm872_vm1, 0.0, %v5351_v17 }
 0xde3   : > { %v5360_v47 = vpop.permute.xlu0 %5359 }
 0xde4   : > { %v3995_v29 = vsel %vm872_vm1, %v5356_v25, %v5357_v6  ;;  %v4007_v11 = vsel %vm872_vm1, 0.0, %v5356_v25  ;;  %v5362_v3 = vunpack.i.h.bf16 %v5360_v47  ;;  %v5361_v60 = vunpack.i.l.bf16 %v5360_v47 }
 0xde5   : > { %v4556_v31 = vpack.c.bf16 %v3995_v29, %v3994_v63  ;;  %v4559_v19 = vpack.c.bf16 %v4007_v11, %v4006_v42  ;;  %v5365_v58 = vpop.permute.xlu1 %5364  ;;  %vm3319_vm1 = vcmp.eq.s32.totalorder %v7928_v1, 0 }
 0xde6   : > { %v4045_v43 = vsel %vm921_vm8, %v5362_v3, 0.0  ;;  %v4044_v49 = vsel %vm921_vm8, %v5361_v60, 0.0  ;;  %v5367_v4 = vunpack.i.h.bf16 %v5365_v58  ;;  %v5366_v48 = vunpack.i.l.bf16 %v5365_v58 }
 0xde7   : > { %4557 = vmatprep.subr.msk.bf16.mxu1 %vm6871_vm12, %v4556_v31  ;;  %v5370_v52 = vpop.permute.xlu0 %5369  ;;  %v4562_v44 = vpack.c.bf16 %v4045_v43, %v4044_v49 }
 0xde8   : > { %4560 = vmatpush1.bf16.msk.msra.mxu1 %vm6875_vm13, %v4559_v19  ;;  %v5372_v18 = vunpack.i.h.bf16 %v5370_v52  ;;  %v5371_v24 = vunpack.i.l.bf16 %v5370_v52  ;;  %v4032_v15 = vsel %vm921_vm8, %v5366_v48, %v5361_v60  ;;  %v4033_v32 = vsel %vm921_vm8, %v5367_v4, %v5362_v3 }
 0xde9   : > { %4116 = vmatprep.subr.bf16.mxu1 %v4061_v16  ;;  %v5375_v40 = vpop.permute.xlu1 %5374  ;;  %v4565_v57 = vpack.c.bf16 %v4033_v32, %v4032_v15 }
 0xdea   : > { %v5377_v38 = vunpack.i.h.bf16 %v5375_v40  ;;  %v5376_v16 = vunpack.i.l.bf16 %v5375_v40  ;;  %v4047_v9 = vsel %vm921_vm8, %v5372_v18, 0.0  ;;  %v4046_v12 = vsel %vm921_vm8, %v5371_v24, 0.0 }
 0xdeb   : > { %v4568_v5 = vpack.c.bf16 %v4047_v9, %v4046_v12 }
 0xdec   : > { %4117 = vmatpush1.bf16.msra.mxu1 %v4060_v59  ;;  %v4034_v59 = vsel %vm921_vm8, %v5376_v16, %v5371_v24  ;;  %v4035_v33 = vsel %vm921_vm8, %v5377_v38, %v5372_v18  ;;  %vm3336_vm8 = vcmp.eq.s32.totalorder %v7928_v1, 1 }
 0xded   : > { %4118 = vmatprep.subr.bf16.mxu1 %v4063_v51  ;;  %v4571_v13 = vpack.c.bf16 %v4035_v33, %v4034_v59 }
 0xdf0   : > { %4119 = vmatpush1.bf16.msra.mxu1 %v4062_v50 }
 0xdf1   : > { %4563 = vmatprep.subr.msk.bf16.mxu1 %vm6901_vm7, %v4562_v44 }
 0xdf4   : > { %4566 = vmatpush1.bf16.msk.msra.mxu1 %vm6912_vm9, %v4565_v57 }
 0xdf5   : > { %4569 = vmatprep.subr.msk.bf16.mxu1 %vm6901_vm7, %v4568_v5 }
 0xdf8   : > { %4572 = vmatpush1.bf16.msk.msra.mxu1 %vm6912_vm9, %v4571_v13  ;;  %v4079_v27 = vpop.permute.xlu0 %4078 }
 0xdfa   : > { %v4084_v51 = vpop.permute.xlu1 %4083 }
 0xdfb   : > { %4573 = vmatmul.mubr.msk.bf16.vlgmr.msra.gmra.mrb[56].mxu1 %vm2608_vm14, %v5426_v37 }
 0xdfc   : > { %4154 = vmatprep.mubr.bf16.mxu1 %v7926_v35  ;;  %v4089_v50 = vpop.permute.xlu0 %4088 }
 0xdfe   : > { %v4094_v22 = vpop.permute.xlu1 %4093 }
 0xe03   : > { %4574 = vmatmul.mubr.msk.bf16.gmra.mrb[60].mxu1 %vm2608_vm14, %v5427_v54 }
 0xe29   : > { %v3308_v45 = vpop.xlane.xlu0 %3307 }
 0xe2a   : > { %v3315_v56 = vmul.f32 0.0078125, %v3308_v45 }
 0xe2c   : > { %v3320_v36 = vsel %vm3319_vm1, %v3315_v56, 0.0 }
 0xe2d   : > { %v3312_v23 = vpop.xlane.xlu0 %3311 }
 0xe2e   : > { %v3317_v61 = vmul.f32 0.0078125, %v3312_v23 }
 0xe30   : > { %v3310_v41 = vpop.xlane.xlu1 %3309  ;;  %v3322_v47 = vsel %vm3319_vm1, %v3317_v61, 0.0 }
 0xe31   : > { %v3314_v10 = vpop.xlane.xlu0 %3313  ;;  %v3316_v35 = vmul.f32 0.0078125, %v3310_v41 }
 0xe32   : > { %v3318_v7 = vmul.f32 0.0078125, %v3314_v10 }
 0xe33   : > { %v3321_v26 = vsel %vm3319_vm1, %v3316_v35, 0.0 }
 0xe34   : > { %v3325_v20 = vpop.xlane.xlu1 %3324  ;;  %v3323_v42 = vsel %vm3319_vm1, %v3318_v7, 0.0 }
 0xe35   : > { %v3332_v53 = vmul.f32 0.0078125, %v3325_v20  ;;  %v3327_v30 = vpop.xlane.xlu0 %3326 }
 0xe36   : > { %v3333_v21 = vmul.f32 0.0078125, %v3327_v30 }
 0xe37   : > { %v3337_v46 = vsel %vm3336_vm8, %v3332_v53, %v3320_v36 }
 0xe38   : > { %3341 = vst.msk [vmem:[%s7714_s25] sm:$0xff] %vm823_vm2, %v3337_v46  ;;  %v3338_v17 = vsel %vm3336_vm8, %v3333_v21, %v3321_v26  ;;  %v3329_v0 = vpop.xlane.xlu1 %3328 }
 0xe39   : > { %3342 = vst.msk [vmem:[%s7714_s25 + $0x8] sm:$0xff] %vm823_vm2, %v3338_v17  ;;  %v3334_v6 = vmul.f32 0.0078125, %v3329_v0  ;;  %v3331_v25 = vpop.xlane.xlu0 %3330 }
 0xe3a   : > { %v3335_v63 = vmul.f32 0.0078125, %v3331_v25 }
 0xe3b   : > { %v3339_v29 = vsel %vm3336_vm8, %v3334_v6, %v3322_v47 }
 0xe3c   : > { %3343 = vst.msk [vmem:[%s7714_s25 + $0x10] sm:$0xff] %vm823_vm2, %v3339_v29  ;;  %v3340_v11 = vsel %vm3336_vm8, %v3335_v63, %v3323_v42 }
 0xe3d   : > { %3344 = vst.msk [vmem:[%s7714_s25 + $0x18] sm:$0xff] %vm823_vm2, %v3340_v11 }
 0xece   : > { %v4146_v31 = vpop.f32.mrb[56].mxu1 }
 0xecf   : > { %v4147_v19 = vadd.f32 %v4146_v31, %v4079_v27  ;;  %v4148_v58 = vpop.f32.mrb[57].mxu1 }
 0xed0   : > { %v4149_v3 = vadd.f32 %v4148_v58, %v4079_v27  ;;  %v4150_v60 = vpop.f32.mrb[58].mxu1 }
 0xed1   : > { %v4165_v52 = vadd.f32 %v4147_v19, %v7479_v55  ;;  %v4151_v43 = vadd.f32 %v4150_v60, %v4084_v51  ;;  %v4152_v49 = vpop.f32.mrb[59].mxu1 }
 0xed2   : > { %v4153_v4 = vadd.f32 %v4152_v49, %v4084_v51  ;;  %v4166_v18 = vadd.f32 %v4149_v3, %v7482_v39 }
 0xed3   : > { %v4173_v48 = vmax.f32 %v4165_v52, 0.0  ;;  %v4167_v24 = vadd.f32 %v4151_v43, %v7485_v28 }
 0xed4   : > { %v4168_v44 = vadd.f32 %v4153_v4, %v7487_v14  ;;  %v4174_v32 = vmax.f32 %v4166_v18, 0.0 }
 0xed5   : > { %v4175_v40 = vmax.f32 %v4167_v24, 0.0  ;;  %4181 = vadd.xlane.f32.xlu1 %v4173_v48 }
 0xed6   : > { %v4156_v15 = vpop.f32.mrb[60].mxu1  ;;  %v4176_v55 = vmax.f32 %v4168_v44, 0.0 }
 0xed7   : > { %v4157_v38 = vadd.f32 %v4156_v15, %v4089_v50  ;;  %v4158_v16 = vpop.f32.mrb[61].mxu1  ;;  %4183 = vadd.xlane.f32.xlu0 %v4175_v40 }
 0xed8   : > { %v4159_v9 = vadd.f32 %v4158_v16, %v4089_v50  ;;  %v4160_v12 = vpop.f32.mrb[62].mxu1 }
 0xed9   : > { %v4169_v57 = vadd.f32 %v4157_v38, %v7497_v8  ;;  %v4161_v5 = vadd.f32 %v4160_v12, %v4094_v22  ;;  %v4162_v59 = vpop.f32.mrb[63].mxu1  ;;  %4197 = vadd.xlane.f32.xlu1 %v4174_v32 }
 0xeda   : > { %v4163_v39 = vadd.f32 %v4162_v59, %v4094_v22  ;;  %v4170_v28 = vadd.f32 %v4159_v9, %v7500_v2 }
 0xedb   : > { %v4177_v33 = vmax.f32 %v4169_v57, 0.0  ;;  %v4171_v14 = vadd.f32 %v4161_v5, %v7503_v34  ;;  %4199 = vadd.xlane.f32.xlu0 %v4176_v55 }
 0xedc   : > { %v4172_v37 = vadd.f32 %v4163_v39, %v7505_v62  ;;  %v4178_v54 = vmax.f32 %v4170_v28, 0.0 }
 0xedd   : > { %v4179_v13 = vmax.f32 %v4171_v14, 0.0  ;;  %4185 = vadd.xlane.f32.xlu1 %v4177_v33 }
 0xede   : > { %v4180_v27 = vmax.f32 %v4172_v37, 0.0 }
 0xedf   : > { %4187 = vadd.xlane.f32.xlu0 %v4179_v13 }
 0xee1   : > { %4201 = vadd.xlane.f32.xlu1 %v4178_v54 }
 0xee3   : > { %4203 = vadd.xlane.f32.xlu0 %v4180_v27 }
 0xf62   : > { %v4182_v8 = vpop.xlane.xlu1 %4181 }
 0xf63   : > { %v4189_v50 = vmul.f32 0.0078125, %v4182_v8 }
 0xf64   : > { %v4184_v51 = vpop.xlane.xlu0 %4183 }
 0xf65   : > { %v4190_v45 = vmul.f32 0.0078125, %v4184_v51  ;;  %v4193_v34 = vsel %vm3319_vm1, %v4189_v50, 0.0 }
 0xf66   : > { %v4198_v22 = vpop.xlane.xlu1 %4197 }
 0xf67   : > { %v4205_v2 = vmul.f32 0.0078125, %v4198_v22  ;;  %v4194_v10 = vsel %vm3319_vm1, %v4190_v45, 0.0 }
 0xf68   : > { %v4200_v23 = vpop.xlane.xlu0 %4199 }
 0xf69   : > { %v4209_v62 = vsel %vm3336_vm8, %v4205_v2, %v4193_v34  ;;  %v4206_v41 = vmul.f32 0.0078125, %v4200_v23 }
 0xf6a   : > { %4575 = vst.msk [vmem:[%s7714_s25 + $0x20] sm:$0xff] %vm823_vm2, %v4209_v62  ;;  %v4186_v56 = vpop.xlane.xlu1 %4185 }
 0xf6b   : > { %v4210_v35 = vsel %vm3336_vm8, %v4206_v41, %v4194_v10  ;;  %v4191_v20 = vmul.f32 0.0078125, %v4186_v56 }
 0xf6c   : > { %4576 = vst.msk [vmem:[%s7714_s25 + $0x28] sm:$0xff] %vm823_vm2, %v4210_v35  ;;  %v4188_v53 = vpop.xlane.xlu0 %4187 }
 0xf6d   : > { %v4192_v30 = vmul.f32 0.0078125, %v4188_v53  ;;  %v4195_v21 = vsel %vm3319_vm1, %v4191_v20, 0.0 }
 0xf6e   : > { %v4202_v36 = vpop.xlane.xlu1 %4201 }
 0xf6f   : > { %v4207_v61 = vmul.f32 0.0078125, %v4202_v36  ;;  %v4196_v17 = vsel %vm3319_vm1, %v4192_v30, 0.0 }
 0xf70   : > { %v4204_v26 = vpop.xlane.xlu0 %4203 }
 0xf71   : > { %v4211_v7 = vsel %vm3336_vm8, %v4207_v61, %v4195_v21  ;;  %v4208_v46 = vmul.f32 0.0078125, %v4204_v26 }
 0xf72   : > { %4577 = vst.msk [vmem:[%s7714_s25 + $0x30] sm:$0xff] %vm823_vm2, %v4211_v7 }
 0xf73   : > { %v4212_v0 = vsel %vm3336_vm8, %v4208_v46, %v4196_v17 }
 0xf74   : > { %4578 = vst.msk [vmem:[%s7714_s25 + $0x38] sm:$0xff] %vm823_vm2, %v4212_v0 }
 0xf75 PF: > { %s30_s1 = sadd.s32 1, %s5434_s1  }
 0xf76   : > { %p27_p5 = scmp.ge.s32.totalorder %s30_s1, 4  }
 0xf78   :  { %29 = sbr.rel (!%p27_p5) target bundleno = 6 (0x6), region = 132 }

</bundles_post_ra>
